<compile_context>
chip_gen: v6e
topology: v6e:2x2x1
jax: 0.10.0
libtpu: 0.0.40
codegen_flags: <defaults>
</compile_context>

<pallas_src>
import functools

import numpy as np

import jax
import jax.numpy as jnp
from jax.experimental import pallas as pl
from jax.experimental.pallas import tpu as pltpu


MXU_DTYPE = jnp.bfloat16  # MXU operands only; all element-wise math stays f32.


# ---------------------------------------------------------------------------
# Static planning: conv shapes, space-to-depth phase grouping for the strided
# conv pair (conv1 -> conv2), flat-grid bookkeeping.
# ---------------------------------------------------------------------------
def _phase_groups(Ho1, Wo1, pad2, s):
    """Row permutation of conv1's outputs grouped by the space-to-depth phase
    of conv2's zero-padded input, plus per-group scatter rectangles."""
    perm, groups, row0 = [], [], 0
    for p in range(s):
        ohs = [oh for oh in range(Ho1) if (pad2 + oh) % s == p]
        for q in range(s):
            ows = [ow for ow in range(Wo1) if (pad2 + ow) % s == q]
            if not ohs or not ows:
                continue
            u0 = (pad2 + ohs[0]) // s
            v0 = (pad2 + ows[0]) // s
            for oh in ohs:
                for ow in ows:
                    perm.append(oh * Wo1 + ow)
            groups.append((p * s + q, row0, u0, v0, len(ohs), len(ows)))
            row0 += len(ohs) * len(ows)
    return np.asarray(perm, np.int32), groups


def build_plan(cfg, H, W):
    s = cfg["stride"]
    hidden = cfg["hidden_channels"]
    blocks = []
    for bi in range(cfg["num_blocks"]):
        k = (bi + 1) * cfg["kernel_size"]
        pad = k // s - 1
        Ho1 = (H + 2 * pad - k) // s + 1
        Wo1 = (W + 2 * pad - k) // s + 1
        Ho2 = (Ho1 + 2 * pad - k) // s + 1
        Wo2 = (Wo1 + 2 * pad - k) // s + 1
        k2p = -(-k // s)                       # ceil(k / s)
        Ho3, Wo3 = Ho2, Wo2                    # 3x3 / residual grid (pad=1)
        Hp3, Wp3 = Ho3 + 2, Wo3 + 2
        # Space-to-depth grid of conv2's zero-padded input, enlarged (when
        # cheap, i.e. k2p <= 3) to the pad-grid size so conv2's output strip
        # maps into the pad grid with a constant row offset (single store).
        Hb = max(Ho2 + k2p - 1, Hp3)
        Wb = max(Wo2 + k2p - 1, Wp3)
        fast = (Hb == Hp3) and (Wb == Wp3)
        perm, groups = _phase_groups(Ho1, Wo1, pad, s)
        blocks.append(dict(
            k1=k, pad1=pad, Ho1=Ho1, Wo1=Wo1, M1=Ho1 * Wo1, K1=k * k,
            perm=perm, groups=groups, k2p=k2p, Hb=Hb, Wb=Wb,
            K2=k2p * k2p * s * s * (hidden // 2),
            Ho2=Ho2, Wo2=Wo2, Ho3=Ho3, Wo3=Wo3, fast=fast,
            hidden=hidden, C1h=hidden // 2,
            res_ch=cfg["res_channels"], num_stacks=cfg["num_stacks"]))
    # The PyTorch module sums the blocks' outputs, so every block must produce
    # the same spatial grid — guard that assumption explicitly.
    for b in blocks:
        assert (b["Ho3"], b["Wo3"]) == (blocks[0]["Ho3"], blocks[0]["Wo3"]), \
            "all encoder blocks must share the same output grid"
    return dict(s=s, blocks=blocks, out_ch=cfg["out_channels"], hidden=hidden,
                HoF=blocks[0]["Ho3"], WoF=blocks[0]["Wo3"],
                HpF=blocks[0]["Ho3"] + 2, WpF=blocks[0]["Wo3"] + 2)


# ---------------------------------------------------------------------------
# Parameters: raw PyTorch-layout init + one-time prepacking (hoisted out of the
# hot forward graph).
# ---------------------------------------------------------------------------
def _uniform(key, shape, bound):
    return jax.random.uniform(key, shape, jnp.float32, minval=-bound, maxval=bound)


def init_raw_params(key, cfg):
    """Weights in PyTorch Conv2d layout (Cout, Cin, kh, kw), fan-in uniform init."""
    n_convs = cfg["num_blocks"] * (3 + 2 * cfg["num_stacks"]) + 1
    kit = iter(list(jax.random.split(key, 2 * n_convs)))

    def conv(cout, cin, kh, kw):
        bound = 1.0 / float(cin * kh * kw) ** 0.5
        return (_uniform(next(kit), (cout, cin, kh, kw), bound),
                _uniform(next(kit), (cout,), bound))

    hidden, res_c = cfg["hidden_channels"], cfg["res_channels"]
    blocks = []
    in_ch = 1
    for bi in range(cfg["num_blocks"]):
        k = (bi + 1) * cfg["kernel_size"]
        c1 = conv(hidden // 2, in_ch, k, k)
        c2 = conv(hidden, hidden // 2, k, k)
        c3 = conv(hidden, hidden, 3, 3)
        res = [(conv(res_c, hidden, 3, 3), conv(hidden, res_c, 1, 1))
               for _ in range(cfg["num_stacks"])]
        blocks.append(dict(c1=c1, c2=c2, c3=c3, res=res))
    bott = conv(cfg["out_channels"], hidden, 1, 1)
    return dict(blocks=blocks, bottleneck=bott)


def _pack_w_full(w):
    # (Cout, Cin, kh, kw) -> (kh*kw*Cin, Cout), tap-major (di, dj), channel minor.
    w = np.asarray(w, np.float32)
    cout, cin, kh, kw = w.shape
    return np.transpose(w, (2, 3, 1, 0)).reshape(kh * kw * cin, cout)


def _pack_w_s2d(w, s):
    # Stride-s conv -> equivalent stride-1 conv over the space-to-depth grid.
    # Row order: (dh, dw, phase pq, cin) — matches the lane-banded z layout.
    w = np.asarray(w, np.float32)
    cout, cin, k, _ = w.shape
    kp = -(-k // s)
    wm = np.zeros((kp, kp, s * s, cin, cout), np.float32)
    for di in range(k):
        for dj in range(k):
            wm[di // s, dj // s, (di % s) * s + (dj % s)] = w[:, :, di, dj].T
    return wm.reshape(kp * kp * s * s * cin, cout)


def pack_params(raw, cfg):
    s = cfg["stride"]

    def wb(pair, packer):
        w, b = pair
        return (jnp.asarray(packer(w), MXU_DTYPE),
                jnp.asarray(np.asarray(b, np.float32).reshape(1, -1)))

    blocks = []
    for bp in raw["blocks"]:
        res = [(wb(r1, _pack_w_full), wb(r2, _pack_w_full)) for (r1, r2) in bp["res"]]
        blocks.append(dict(c1=wb(bp["c1"], _pack_w_full),
                           c2=wb(bp["c2"], lambda w: _pack_w_s2d(w, s)),
                           c3=wb(bp["c3"], _pack_w_full),
                           res=res))
    return dict(blocks=blocks, bottleneck=wb(raw["bottleneck"], _pack_w_full))


# ---------------------------------------------------------------------------
# The fused Pallas kernel (one grid step per batch chunk; default whole batch).
# ---------------------------------------------------------------------------
def _make_kernel(plan, BC):
    blocks = plan["blocks"]
    nb = len(blocks)
    s = plan["s"]
    hidden = plan["hidden"]
    HoF, WoF = plan["HoF"], plan["WoF"]
    HpF, WpF = plan["HpF"], plan["WpF"]
    HpWp = HpF * WpF
    # Shared output-strip length: row r = b*HpWp + oh*WpF + ow.
    S3 = (BC - 1) * HpWp + (HoF - 1) * WpF + WoF

    def kernel(*refs):
        it = iter(refs)
        mask_ref = next(it)                                   # (S3, hidden) 0/1 f32
        a1_refs = [next(it) for _ in range(nb)]
        blk_w = [[next(it) for _ in range(6 + 4 * bp["num_stacks"])] for bp in blocks]
        wbot, bbot = next(it), next(it)
        out_ref = next(it)
        z_refs = [next(it) for _ in range(nb)]
        pad_ref = next(it)
        patch_ref = next(it)
        assert next(it, None) is None

        def mm(a, w_ref, b_ref):
            # bf16 MXU operands, f32 accumulation + f32 bias.  Operands that are
            # already staged in bf16 (patch_ref, a1) are not re-cast.
            if a.dtype != MXU_DTYPE:
                a = a.astype(MXU_DTYPE)
            return (jnp.dot(a, w_ref[...],
                            preferred_element_type=jnp.float32) + b_ref[...])

        mask = mask_ref[...]                                  # (S3, hidden)

        acc = None
        for bi, bp in enumerate(blocks):
            z_ref = z_refs[bi]
            w = blk_w[bi]
            w1, b1, w2, b2, w3, b3 = w[:6]
            res_w = w[6:]
            C1h, hid = bp["C1h"], bp["hidden"]
            Hb, Wb, k2p = bp["Hb"], bp["Wb"], bp["k2p"]
            Ho2, Wo2, K2 = bp["Ho2"], bp["Wo2"], bp["K2"]
            HbWb = Hb * Wb
            M1 = bp["M1"]
            CG = s * s * C1h
            S2 = (BC - 1) * HbWb + (Ho2 - 1) * Wb + Wo2

            # --- conv1 + relu: whole batch chunk folded into M = BC*M1 rows.
            o1 = jnp.maximum(mm(a1_refs[bi][...], w1, b1), 0.0)          # (BC*M1, C1h)

            # --- scatter conv1 output into the flat space-to-depth grid of
            #     conv2's zero-padded input, phases packed along lanes:
            #       z[b*HbWb + u*Wb + v, pq*C1h + c] = ypad[b, u*s+p, v*s+q, c]
            z_ref[...] = jnp.zeros(z_ref.shape, jnp.float32)
            for b in range(BC):
                src0, dst0 = b * M1, b * HbWb
                for (pq, row0, u0, v0, nu, nv) in bp["groups"]:
                    for i in range(nu):
                        dst = dst0 + (u0 + i) * Wb + v0
                        src = src0 + row0 + i * nv
                        z_ref[dst:dst + nv, pq * C1h:(pq + 1) * C1h] = \
                            o1[src:src + nv, :]

            # --- conv2 + relu as a stride-1 conv over the phase-stacked grid:
            #     one wide (s*s*C1h-lane) strip copy per (dh, dw) tap.
            for t, (dh, dw) in enumerate((a, c) for a in range(k2p)
                                         for c in range(k2p)):
                off = dh * Wb + dw
                patch_ref[0:S2, t * CG:(t + 1) * CG] = (
                    z_ref[off:off + S2, :].astype(MXU_DTYPE))
            o2 = jnp.maximum(mm(patch_ref[0:S2, 0:K2], w2, b2), 0.0)      # (S2, hid)

            # --- stage relu(conv2) into the zero-padded (pad=1) 3x3 grid.
            pad_ref[...] = jnp.zeros(pad_ref.shape, jnp.float32)
            if bp["fast"]:
                # z grid == pad grid  =>  one masked strip store (S2 == S3).
                pad_ref[WpF + 1:WpF + 1 + S3, :] = o2 * mask
            else:
                for b in range(BC):
                    for oh in range(Ho2):
                        dst = b * HpWp + (oh + 1) * WpF + 1
                        src = b * HbWb + oh * Wb
                        pad_ref[dst:dst + Wo2, :] = o2[src:src + Wo2, :]

            def conv_3x3(w_ref, b_ref, relu_in):
                # K-concatenated single matmul over 9 strip copies (bf16 staging).
                for tt, (di, dj) in enumerate((a, c) for a in range(3)
                                              for c in range(3)):
                    off = di * WpF + dj
                    piece = pad_ref[off:off + S3, :]
                    if relu_in:
                        piece = jnp.maximum(piece, 0.0)
                    patch_ref[0:S3, tt * hid:(tt + 1) * hid] = piece.astype(MXU_DTYPE)
                return mm(patch_ref[0:S3, 0:9 * hid], w_ref, b_ref)

            # --- conv3 (3x3, stride 1, pad 1), no activation; single masked restage.
            h = conv_3x3(w3, b3, relu_in=False)                            # (S3, hid)
            pad_ref[WpF + 1:WpF + 1 + S3, :] = h * mask

            # --- residual stacks: h <- h + conv1x1(relu(conv3x3(relu(h)))).
            for si in range(bp["num_stacks"]):
                rw1, rb1, rw2, rb2 = res_w[4 * si: 4 * si + 4]
                mid = jnp.maximum(conv_3x3(rw1, rb1, relu_in=True), 0.0)   # (S3, res)
                r = mm(mid, rw2, rb2)                                      # (S3, hid)
                pad_ref[WpF + 1:WpF + 1 + S3, :] = (
                    pad_ref[WpF + 1:WpF + 1 + S3, :] + r * mask)

            hb = jnp.maximum(pad_ref[...], 0.0)                            # relu_3
            acc = hb if acc is None else acc + hb

        # --- bottleneck 1x1 conv over the full padded grid; one contiguous HBM
        #     store, valid-row extraction happens outside the kernel.
        out_ref[...] = mm(acc, wbot, bbot).astype(out_ref.dtype)

    return kernel


# ---------------------------------------------------------------------------
# Forward wrapper: tiny plain-JAX glue (first-conv patch matrix on the raw
# 1-channel input) + a single fused pallas_call + NCHW conversion.
# ---------------------------------------------------------------------------
def _im2col_grouped(x, k, s, pad, perm):
    xp = jnp.pad(x, ((0, 0), (pad, pad), (pad, pad), (0, 0)))
    B, Hp, Wp, C = xp.shape
    Ho = (Hp - k) // s + 1
    Wo = (Wp - k) // s + 1
    cols = []
    for di in range(k):
        for dj in range(k):
            cols.append(xp[:, di:di + s * (Ho - 1) + 1:s,
                           dj:dj + s * (Wo - 1) + 1:s, :])
    patches = jnp.concatenate(cols, axis=-1).reshape(B, Ho * Wo, k * k * C)
    return jnp.take(patches, jnp.asarray(perm, jnp.int32), axis=1)


def encoder_forward(x_bhw, packed, *, plan, batch_per_step=None):
    B, H, W = x_bhw.shape
    s = plan["s"]
    hidden = plan["hidden"]
    HoF, WoF, HpF, WpF = plan["HoF"], plan["WoF"], plan["HpF"], plan["WpF"]
    out_ch = plan["out_ch"]
    HpWp = HpF * WpF

    BC = B if batch_per_step is None else batch_per_step   # set B//2 on v7x
    assert B % BC == 0, "batch_per_step must divide the batch"
    nsteps = B // BC
    S3 = (BC - 1) * HpWp + (HoF - 1) * WpF + WoF

    x = x_bhw[..., None].astype(jnp.float32)

    args, in_specs = [], []

    def add_full(arr):
        args.append(arr)
        in_specs.append(pl.BlockSpec(arr.shape, lambda g, nd=arr.ndim: (0,) * nd))

    # Static 0/1 validity of the output-strip rows (shared by all blocks).
    mask_np = np.zeros((S3, hidden), np.float32)
    for b in range(BC):
        for oh in range(HoF):
            r0 = b * HpWp + oh * WpF
            mask_np[r0:r0 + WoF, :] = 1.0
    add_full(jnp.asarray(mask_np))

    # conv1 patch matrices (raw input only), phase-grouped rows, batch folded
    # into the matmul M dimension.
    for bp in plan["blocks"]:
        a1 = _im2col_grouped(x, bp["k1"], s, bp["pad1"], bp["perm"])
        a1 = a1.reshape(nsteps, BC * bp["M1"], bp["K1"]).astype(MXU_DTYPE)
        args.append(a1)
        in_specs.append(pl.BlockSpec((None, BC * bp["M1"], bp["K1"]),
                                     lambda g: (g, 0, 0)))

    # prepacked weights / biases (bf16 / f32), fully VMEM-resident.
    for bpk in packed["blocks"]:
        for pair in (bpk["c1"], bpk["c2"], bpk["c3"]):
            add_full(pair[0]); add_full(pair[1])
        for (r1, r2) in bpk["res"]:
            add_full(r1[0]); add_full(r1[1]); add_full(r2[0]); add_full(r2[1])
    add_full(packed["bottleneck"][0]); add_full(packed["bottleneck"][1])

    # scratch: per-block space-to-depth grid (f32), padded 3x3 grid (f32),
    # and the bf16 patch matrix that feeds every MXU matmul.
    maxL, maxK = S3, 9 * hidden
    scratch = []
    for bp in plan["blocks"]:
        HbWb = bp["Hb"] * bp["Wb"]
        S2 = (BC - 1) * HbWb + (bp["Ho2"] - 1) * bp["Wb"] + bp["Wo2"]
        maxL = max(maxL, S2)
        maxK = max(maxK, bp["K2"])
        scratch.append(pltpu.VMEM((BC * HbWb, s * s * bp["C1h"]), jnp.float32))
    scratch += [pltpu.VMEM((BC * HpWp, hidden), jnp.float32),
                pltpu.VMEM((maxL, maxK), MXU_DTYPE)]

    # Advisory cost estimate so XLA schedules the surrounding glue sensibly.
    flops = 0
    for bp in plan["blocks"]:
        HbWb = bp["Hb"] * bp["Wb"]
        S2 = (BC - 1) * HbWb + (bp["Ho2"] - 1) * bp["Wb"] + bp["Wo2"]
        flops += 2 * BC * bp["M1"] * bp["K1"] * bp["C1h"]
        flops += 2 * S2 * bp["K2"] * hidden
        flops += 2 * S3 * 9 * hidden * hidden
        flops += bp["num_stacks"] * (2 * S3 * 9 * hidden * bp["res_ch"]
                                     + 2 * S3 * bp["res_ch"] * hidden)
    flops += 2 * BC * HpWp * hidden * out_ch
    flops *= nsteps
    in_bytes = sum(int(np.prod(a.shape)) * a.dtype.itemsize for a in args)
    out_bytes = nsteps * BC * HpWp * out_ch * 4
    cost = pl.CostEstimate(flops=int(flops), transcendentals=0,
                           bytes_accessed=int(in_bytes + out_bytes))

    out = pl.pallas_call(
        _make_kernel(plan, BC),
        out_shape=jax.ShapeDtypeStruct((nsteps, BC * HpWp, out_ch), jnp.float32),
        grid=(nsteps,),
        in_specs=in_specs,
        out_specs=pl.BlockSpec((None, BC * HpWp, out_ch), lambda g: (g, 0, 0)),
        scratch_shapes=scratch,
        compiler_params=pltpu.CompilerParams(
            dimension_semantics=("parallel",),
            vmem_limit_bytes=32 * 1024 * 1024),
        cost_estimate=cost,
    )(*args)

    # Valid-row extraction + NCHW outside the kernel (tiny array).
    out = out.reshape(B, HpF, WpF, out_ch)[:, 1:1 + HoF, 1:1 + WoF, :]
    return jnp.transpose(out, (0, 3, 1, 2))   # NCHW, matching the PyTorch module


# ---------------------------------------------------------------------------
# Pure-JAX reference (mirrors the PyTorch module) for a tolerance check.
# ---------------------------------------------------------------------------
def _conv2d_ref(x, w, b, stride, pad):
    out = jax.lax.conv_general_dilated(
        x, w, window_strides=(stride, stride),
        padding=[(pad, pad), (pad, pad)],
        dimension_numbers=("NCHW", "OIHW", "NCHW"))
    return out + b.reshape(1, -1, 1, 1)


def encoder_reference(x_bhw, raw, cfg):
    s = cfg["stride"]
    x = x_bhw[:, None, :, :]
    acc = 0.0
    for bi, bp in enumerate(raw["blocks"]):
        k = (bi + 1) * cfg["kernel_size"]
        pad = k // s - 1
        h = jax.nn.relu(_conv2d_ref(x, *bp["c1"], s, pad))
        h = jax.nn.relu(_conv2d_ref(h, *bp["c2"], s, pad))
        h = _conv2d_ref(h, *bp["c3"], 1, 1)
        for (r1, r2) in bp["res"]:
            t = jax.nn.relu(h)
            t = jax.nn.relu(_conv2d_ref(t, *r1, 1, 1))
            h = h + _conv2d_ref(t, *r2, 1, 0)
        acc = acc + jax.nn.relu(h)
    return _conv2d_ref(acc, *raw["bottleneck"], 1, 0)


# ---------------------------------------------------------------------------
if __name__ == "__main__":
    # Encoder(out_channels=8, hidden_channels=32, res_channels=16,
    #         kernel_size=4, stride=2, num_blocks=1, num_stacks=2)
    cfg = dict(out_channels=8, hidden_channels=32, res_channels=16,
               kernel_size=4, stride=2, num_blocks=1, num_stacks=2)

    key = jax.random.PRNGKey(0)
    k_param, k_x = jax.random.split(key)

    raw = init_raw_params(k_param, cfg)
    packed = pack_params(raw, cfg)            # one-time weight repack (bf16, (K, Cout))

    B, H, W = 2, 16, 16                       # PyTorch forward takes (B, H, W)
    x = jax.random.normal(k_x, (B, H, W), dtype=jnp.float32)

    plan = build_plan(cfg, H, W)
    fwd = jax.jit(functools.partial(encoder_forward, plan=plan))
    out = fwd(x, packed)
    jax.block_until_ready(out)

    assert out.shape == (B, cfg["out_channels"], plan["HoF"], plan["WoF"]), out.shape

    # Numerical check against the pure-JAX reference (bf16 MXU operands ->
    # small, bounded deviation from the f32 reference).
    ref = encoder_reference(x, raw, cfg)
    np.testing.assert_allclose(np.asarray(out), np.asarray(ref), atol=0.1, rtol=0.1)

    print("KERNEL_OK")
</pallas_src>

<mosaic_0001>
module attributes {stable_mosaic.version = 11 : i64} {
  func.func @kernel(%arg0: i32, %arg1: memref<58x32xf32, #tpu.memory_space<vmem>>, %arg2: memref<1x128x16xbf16, #tpu.memory_space<vmem>>, %arg3: memref<16x16xbf16, #tpu.memory_space<vmem>>, %arg4: memref<1x16xf32, #tpu.memory_space<vmem>>, %arg5: memref<256x32xbf16, #tpu.memory_space<vmem>>, %arg6: memref<1x32xf32, #tpu.memory_space<vmem>>, %arg7: memref<288x32xbf16, #tpu.memory_space<vmem>>, %arg8: memref<1x32xf32, #tpu.memory_space<vmem>>, %arg9: memref<288x16xbf16, #tpu.memory_space<vmem>>, %arg10: memref<1x16xf32, #tpu.memory_space<vmem>>, %arg11: memref<16x32xbf16, #tpu.memory_space<vmem>>, %arg12: memref<1x32xf32, #tpu.memory_space<vmem>>, %arg13: memref<288x16xbf16, #tpu.memory_space<vmem>>, %arg14: memref<1x16xf32, #tpu.memory_space<vmem>>, %arg15: memref<16x32xbf16, #tpu.memory_space<vmem>>, %arg16: memref<1x32xf32, #tpu.memory_space<vmem>>, %arg17: memref<32x8xbf16, #tpu.memory_space<vmem>>, %arg18: memref<1x8xf32, #tpu.memory_space<vmem>>, %arg19: memref<1x72x8xf32, #tpu.memory_space<vmem>>, %arg20: memref<72x64xf32, #tpu.memory_space<vmem>>, %arg21: memref<72x32xf32, #tpu.memory_space<vmem>>, %arg22: memref<58x288xbf16, #tpu.memory_space<vmem>>) attributes {dimension_semantics = [#tpu.dimension_semantics<parallel>], iteration_bounds = array<i64: 1>, scalar_prefetch = 0 : i64, scratch_operands = 3 : i64, tpu.core_type = #tpu.core_type<tc>, window_params = [{pipeline_mode = #tpu.pipeline_mode<synchronous>, transform_indices = @transform_0, window_bounds = array<i64: 58, 32>}, {transform_indices = @transform_1, window_bounds = array<i64: 1, 128, 16>}, {pipeline_mode = #tpu.pipeline_mode<synchronous>, transform_indices = @transform_2, window_bounds = array<i64: 16, 16>}, {pipeline_mode = #tpu.pipeline_mode<synchronous>, transform_indices = @transform_3, window_bounds = array<i64: 1, 16>}, {pipeline_mode = #tpu.pipeline_mode<synchronous>, transform_indices = @transform_4, window_bounds = array<i64: 256, 32>}, {pipeline_mode = #tpu.pipeline_mode<synchronous>, transform_indices = @transform_5, window_bounds = array<i64: 1, 32>}, {pipeline_mode = #tpu.pipeline_mode<synchronous>, transform_indices = @transform_6, window_bounds = array<i64: 288, 32>}, {pipeline_mode = #tpu.pipeline_mode<synchronous>, transform_indices = @transform_7, window_bounds = array<i64: 1, 32>}, {pipeline_mode = #tpu.pipeline_mode<synchronous>, transform_indices = @transform_8, window_bounds = array<i64: 288, 16>}, {pipeline_mode = #tpu.pipeline_mode<synchronous>, transform_indices = @transform_9, window_bounds = array<i64: 1, 16>}, {pipeline_mode = #tpu.pipeline_mode<synchronous>, transform_indices = @transform_10, window_bounds = array<i64: 16, 32>}, {pipeline_mode = #tpu.pipeline_mode<synchronous>, transform_indices = @transform_11, window_bounds = array<i64: 1, 32>}, {pipeline_mode = #tpu.pipeline_mode<synchronous>, transform_indices = @transform_12, window_bounds = array<i64: 288, 16>}, {pipeline_mode = #tpu.pipeline_mode<synchronous>, transform_indices = @transform_13, window_bounds = array<i64: 1, 16>}, {pipeline_mode = #tpu.pipeline_mode<synchronous>, transform_indices = @transform_14, window_bounds = array<i64: 16, 32>}, {pipeline_mode = #tpu.pipeline_mode<synchronous>, transform_indices = @transform_15, window_bounds = array<i64: 1, 32>}, {pipeline_mode = #tpu.pipeline_mode<synchronous>, transform_indices = @transform_16, window_bounds = array<i64: 32, 8>}, {pipeline_mode = #tpu.pipeline_mode<synchronous>, transform_indices = @transform_17, window_bounds = array<i64: 1, 8>}, {transform_indices = @transform_18, window_bounds = array<i64: 1, 72, 8>}]} {
    %c0 = arith.constant 0 : index
    %c0_0 = arith.constant 0 : index
    %0 = vector.load %arg1[%c0, %c0_0] : memref<58x32xf32, #tpu.memory_space<vmem>>, vector<58x32xf32>
    %c0_1 = arith.constant 0 : index
    %c0_2 = arith.constant 0 : index
    %c0_3 = arith.constant 0 : index
    %1 = vector.load %arg2[%c0_1, %c0_2, %c0_3] : memref<1x128x16xbf16, #tpu.memory_space<vmem>>, vector<1x128x16xbf16>
    %2 = vector.shape_cast %1 : vector<1x128x16xbf16> to vector<128x16xbf16>
    %c0_4 = arith.constant 0 : index
    %c0_5 = arith.constant 0 : index
    %3 = vector.load %arg3[%c0_4, %c0_5] : memref<16x16xbf16, #tpu.memory_space<vmem>>, vector<16x16xbf16>
    %cst = arith.constant dense<0.000000e+00> : vector<128x16xf32>
    %4 = tpu.matmul %2, %3, %cst {dimension_numbers = #tpu.dot_dimension_numbers<[1], [0], [0], [1], [0, 0, 1, 1], [], []>} : vector<128x16xbf16>, vector<16x16xbf16>, vector<128x16xf32> -> vector<128x16xf32>
    %c0_6 = arith.constant 0 : index
    %c0_7 = arith.constant 0 : index
    %5 = vector.load %arg4[%c0_6, %c0_7] : memref<1x16xf32, #tpu.memory_space<vmem>>, vector<1x16xf32>
    %6 = vector.broadcast %5 : vector<1x16xf32> to vector<128x16xf32>
    %7 = arith.addf %4, %6 : vector<128x16xf32>
    %cst_8 = arith.constant 0.000000e+00 : f32
    %8 = vector.broadcast %cst_8 : f32 to vector<128x16xf32>
    %9 = arith.maximumf %7, %8 : vector<128x16xf32>
    %cst_9 = arith.constant 0.000000e+00 : f32
    %10 = vector.broadcast %cst_9 : f32 to vector<72x64xf32>
    %c0_10 = arith.constant 0 : index
    %c0_11 = arith.constant 0 : index
    %11 = vector.load %arg20[%c0_10, %c0_11] : memref<72x64xf32, #tpu.memory_space<vmem>>, vector<72x64xf32>
    tpu.vector_store %arg20[%c0_10, %c0_11], %10 {strides = array<i32>} : memref<72x64xf32, #tpu.memory_space<vmem>>, vector<72x64xf32>,
    %12 = vector.extract_strided_slice %9 {offsets = [0, 0], sizes = [4, 16], strides = [1, 1]} : vector<128x16xf32> to vector<4x16xf32>
    %c7 = arith.constant 7 : index
    %c0_12 = arith.constant 0 : index
    %13 = vector.load %arg20[%c7, %c0_12] : memref<72x64xf32, #tpu.memory_space<vmem>>, vector<4x16xf32>
    tpu.vector_store %arg20[%c7, %c0_12], %12 {strides = array<i32>} : memref<72x64xf32, #tpu.memory_space<vmem>>, vector<4x16xf32>,
    %14 = vector.extract_strided_slice %9 {offsets = [4, 0], sizes = [4, 16], strides = [1, 1]} : vector<128x16xf32> to vector<4x16xf32>
    %c13 = arith.constant 13 : index
    %c0_13 = arith.constant 0 : index
    %15 = vector.load %arg20[%c13, %c0_13] : memref<72x64xf32, #tpu.memory_space<vmem>>, vector<4x16xf32>
    tpu.vector_store %arg20[%c13, %c0_13], %14 {strides = array<i32>} : memref<72x64xf32, #tpu.memory_space<vmem>>, vector<4x16xf32>,
    %16 = vector.extract_strided_slice %9 {offsets = [8, 0], sizes = [4, 16], strides = [1, 1]} : vector<128x16xf32> to vector<4x16xf32>
    %c19 = arith.constant 19 : index
    %c0_14 = arith.constant 0 : index
    %17 = vector.load %arg20[%c19, %c0_14] : memref<72x64xf32, #tpu.memory_space<vmem>>, vector<4x16xf32>
    tpu.vector_store %arg20[%c19, %c0_14], %16 {strides = array<i32>} : memref<72x64xf32, #tpu.memory_space<vmem>>, vector<4x16xf32>,
    %18 = vector.extract_strided_slice %9 {offsets = [12, 0], sizes = [4, 16], strides = [1, 1]} : vector<128x16xf32> to vector<4x16xf32>
    %c25 = arith.constant 25 : index
    %c0_15 = arith.constant 0 : index
    %19 = vector.load %arg20[%c25, %c0_15] : memref<72x64xf32, #tpu.memory_space<vmem>>, vector<4x16xf32>
    tpu.vector_store %arg20[%c25, %c0_15], %18 {strides = array<i32>} : memref<72x64xf32, #tpu.memory_space<vmem>>, vector<4x16xf32>,
    %20 = vector.extract_strided_slice %9 {offsets = [16, 0], sizes = [4, 16], strides = [1, 1]} : vector<128x16xf32> to vector<4x16xf32>
    %c6 = arith.constant 6 : index
    %c16 = arith.constant 16 : index
    %21 = vector.load %arg20[%c6, %c16] : memref<72x64xf32, #tpu.memory_space<vmem>>, vector<4x16xf32>
    tpu.vector_store %arg20[%c6, %c16], %20 {strides = array<i32>} : memref<72x64xf32, #tpu.memory_space<vmem>>, vector<4x16xf32>,
    %22 = vector.extract_strided_slice %9 {offsets = [20, 0], sizes = [4, 16], strides = [1, 1]} : vector<128x16xf32> to vector<4x16xf32>
    %c12 = arith.constant 12 : index
    %c16_16 = arith.constant 16 : index
    %23 = vector.load %arg20[%c12, %c16_16] : memref<72x64xf32, #tpu.memory_space<vmem>>, vector<4x16xf32>
    tpu.vector_store %arg20[%c12, %c16_16], %22 {strides = array<i32>} : memref<72x64xf32, #tpu.memory_space<vmem>>, vector<4x16xf32>,
    %24 = vector.extract_strided_slice %9 {offsets = [24, 0], sizes = [4, 16], strides = [1, 1]} : vector<128x16xf32> to vector<4x16xf32>
    %c18 = arith.constant 18 : index
    %c16_17 = arith.constant 16 : index
    %25 = vector.load %arg20[%c18, %c16_17] : memref<72x64xf32, #tpu.memory_space<vmem>>, vector<4x16xf32>
    tpu.vector_store %arg20[%c18, %c16_17], %24 {strides = array<i32>} : memref<72x64xf32, #tpu.memory_space<vmem>>, vector<4x16xf32>,
    %26 = vector.extract_strided_slice %9 {offsets = [28, 0], sizes = [4, 16], strides = [1, 1]} : vector<128x16xf32> to vector<4x16xf32>
    %c24 = arith.constant 24 : index
    %c16_18 = arith.constant 16 : index
    %27 = vector.load %arg20[%c24, %c16_18] : memref<72x64xf32, #tpu.memory_space<vmem>>, vector<4x16xf32>
    tpu.vector_store %arg20[%c24, %c16_18], %26 {strides = array<i32>} : memref<72x64xf32, #tpu.memory_space<vmem>>, vector<4x16xf32>,
    %28 = vector.extract_strided_slice %9 {offsets = [32, 0], sizes = [4, 16], strides = [1, 1]} : vector<128x16xf32> to vector<4x16xf32>
    %c1 = arith.constant 1 : index
    %c32 = arith.constant 32 : index
    %29 = vector.load %arg20[%c1, %c32] : memref<72x64xf32, #tpu.memory_space<vmem>>, vector<4x16xf32>
    tpu.vector_store %arg20[%c1, %c32], %28 {strides = array<i32>} : memref<72x64xf32, #tpu.memory_space<vmem>>, vector<4x16xf32>,
    %30 = vector.extract_strided_slice %9 {offsets = [36, 0], sizes = [4, 16], strides = [1, 1]} : vector<128x16xf32> to vector<4x16xf32>
    %c7_19 = arith.constant 7 : index
    %c32_20 = arith.constant 32 : index
    %31 = vector.load %arg20[%c7_19, %c32_20] : memref<72x64xf32, #tpu.memory_space<vmem>>, vector<4x16xf32>
    tpu.vector_store %arg20[%c7_19, %c32_20], %30 {strides = array<i32>} : memref<72x64xf32, #tpu.memory_space<vmem>>, vector<4x16xf32>,
    %32 = vector.extract_strided_slice %9 {offsets = [40, 0], sizes = [4, 16], strides = [1, 1]} : vector<128x16xf32> to vector<4x16xf32>
    %c13_21 = arith.constant 13 : index
    %c32_22 = arith.constant 32 : index
    %33 = vector.load %arg20[%c13_21, %c32_22] : memref<72x64xf32, #tpu.memory_space<vmem>>, vector<4x16xf32>
    tpu.vector_store %arg20[%c13_21, %c32_22], %32 {strides = array<i32>} : memref<72x64xf32, #tpu.memory_space<vmem>>, vector<4x16xf32>,
    %34 = vector.extract_strided_slice %9 {offsets = [44, 0], sizes = [4, 16], strides = [1, 1]} : vector<128x16xf32> to vector<4x16xf32>
    %c19_23 = arith.constant 19 : index
    %c32_24 = arith.constant 32 : index
    %35 = vector.load %arg20[%c19_23, %c32_24] : memref<72x64xf32, #tpu.memory_space<vmem>>, vector<4x16xf32>
    tpu.vector_store %arg20[%c19_23, %c32_24], %34 {strides = array<i32>} : memref<72x64xf32, #tpu.memory_space<vmem>>, vector<4x16xf32>,
    %36 = vector.extract_strided_slice %9 {offsets = [48, 0], sizes = [4, 16], strides = [1, 1]} : vector<128x16xf32> to vector<4x16xf32>
    %c0_25 = arith.constant 0 : index
    %c48 = arith.constant 48 : index
    %37 = vector.load %arg20[%c0_25, %c48] : memref<72x64xf32, #tpu.memory_space<vmem>>, vector<4x16xf32>
    tpu.vector_store %arg20[%c0_25, %c48], %36 {strides = array<i32>} : memref<72x64xf32, #tpu.memory_space<vmem>>, vector<4x16xf32>,
    %38 = vector.extract_strided_slice %9 {offsets = [52, 0], sizes = [4, 16], strides = [1, 1]} : vector<128x16xf32> to vector<4x16xf32>
    %c6_26 = arith.constant 6 : index
    %c48_27 = arith.constant 48 : index
    %39 = vector.load %arg20[%c6_26, %c48_27] : memref<72x64xf32, #tpu.memory_space<vmem>>, vector<4x16xf32>
    tpu.vector_store %arg20[%c6_26, %c48_27], %38 {strides = array<i32>} : memref<72x64xf32, #tpu.memory_space<vmem>>, vector<4x16xf32>,
    %40 = vector.extract_strided_slice %9 {offsets = [56, 0], sizes = [4, 16], strides = [1, 1]} : vector<128x16xf32> to vector<4x16xf32>
    %c12_28 = arith.constant 12 : index
    %c48_29 = arith.constant 48 : index
    %41 = vector.load %arg20[%c12_28, %c48_29] : memref<72x64xf32, #tpu.memory_space<vmem>>, vector<4x16xf32>
    tpu.vector_store %arg20[%c12_28, %c48_29], %40 {strides = array<i32>} : memref<72x64xf32, #tpu.memory_space<vmem>>, vector<4x16xf32>,
    %42 = vector.extract_strided_slice %9 {offsets = [60, 0], sizes = [4, 16], strides = [1, 1]} : vector<128x16xf32> to vector<4x16xf32>
    %c18_30 = arith.constant 18 : index
    %c48_31 = arith.constant 48 : index
    %43 = vector.load %arg20[%c18_30, %c48_31] : memref<72x64xf32, #tpu.memory_space<vmem>>, vector<4x16xf32>
    tpu.vector_store %arg20[%c18_30, %c48_31], %42 {strides = array<i32>} : memref<72x64xf32, #tpu.memory_space<vmem>>, vector<4x16xf32>,
    %44 = vector.extract_strided_slice %9 {offsets = [64, 0], sizes = [4, 16], strides = [1, 1]} : vector<128x16xf32> to vector<4x16xf32>
    %c43 = arith.constant 43 : index
    %c0_32 = arith.constant 0 : index
    %45 = vector.load %arg20[%c43, %c0_32] : memref<72x64xf32, #tpu.memory_space<vmem>>, vector<4x16xf32>
    tpu.vector_store %arg20[%c43, %c0_32], %44 {strides = array<i32>} : memref<72x64xf32, #tpu.memory_space<vmem>>, vector<4x16xf32>,
    %46 = vector.extract_strided_slice %9 {offsets = [68, 0], sizes = [4, 16], strides = [1, 1]} : vector<128x16xf32> to vector<4x16xf32>
    %c49 = arith.constant 49 : index
    %c0_33 = arith.constant 0 : index
    %47 = vector.load %arg20[%c49, %c0_33] : memref<72x64xf32, #tpu.memory_space<vmem>>, vector<4x16xf32>
    tpu.vector_store %arg20[%c49, %c0_33], %46 {strides = array<i32>} : memref<72x64xf32, #tpu.memory_space<vmem>>, vector<4x16xf32>,
    %48 = vector.extract_strided_slice %9 {offsets = [72, 0], sizes = [4, 16], strides = [1, 1]} : vector<128x16xf32> to vector<4x16xf32>
    %c55 = arith.constant 55 : index
    %c0_34 = arith.constant 0 : index
    %49 = vector.load %arg20[%c55, %c0_34] : memref<72x64xf32, #tpu.memory_space<vmem>>, vector<4x16xf32>
    tpu.vector_store %arg20[%c55, %c0_34], %48 {strides = array<i32>} : memref<72x64xf32, #tpu.memory_space<vmem>>, vector<4x16xf32>,
    %50 = vector.extract_strided_slice %9 {offsets = [76, 0], sizes = [4, 16], strides = [1, 1]} : vector<128x16xf32> to vector<4x16xf32>
    %c61 = arith.constant 61 : index
    %c0_35 = arith.constant 0 : index
    %51 = vector.load %arg20[%c61, %c0_35] : memref<72x64xf32, #tpu.memory_space<vmem>>, vector<4x16xf32>
    tpu.vector_store %arg20[%c61, %c0_35], %50 {strides = array<i32>} : memref<72x64xf32, #tpu.memory_space<vmem>>, vector<4x16xf32>,
    %52 = vector.extract_strided_slice %9 {offsets = [80, 0], sizes = [4, 16], strides = [1, 1]} : vector<128x16xf32> to vector<4x16xf32>
    %c42 = arith.constant 42 : index
    %c16_36 = arith.constant 16 : index
    %53 = vector.load %arg20[%c42, %c16_36] : memref<72x64xf32, #tpu.memory_space<vmem>>, vector<4x16xf32>
    tpu.vector_store %arg20[%c42, %c16_36], %52 {strides = array<i32>} : memref<72x64xf32, #tpu.memory_space<vmem>>, vector<4x16xf32>,
    %54 = vector.extract_strided_slice %9 {offsets = [84, 0], sizes = [4, 16], strides = [1, 1]} : vector<128x16xf32> to vector<4x16xf32>
    %c48_37 = arith.constant 48 : index
    %c16_38 = arith.constant 16 : index
    %55 = vector.load %arg20[%c48_37, %c16_38] : memref<72x64xf32, #tpu.memory_space<vmem>>, vector<4x16xf32>
    tpu.vector_store %arg20[%c48_37, %c16_38], %54 {strides = array<i32>} : memref<72x64xf32, #tpu.memory_space<vmem>>, vector<4x16xf32>,
    %56 = vector.extract_strided_slice %9 {offsets = [88, 0], sizes = [4, 16], strides = [1, 1]} : vector<128x16xf32> to vector<4x16xf32>
    %c54 = arith.constant 54 : index
    %c16_39 = arith.constant 16 : index
    %57 = vector.load %arg20[%c54, %c16_39] : memref<72x64xf32, #tpu.memory_space<vmem>>, vector<4x16xf32>
    tpu.vector_store %arg20[%c54, %c16_39], %56 {strides = array<i32>} : memref<72x64xf32, #tpu.memory_space<vmem>>, vector<4x16xf32>,
    %58 = vector.extract_strided_slice %9 {offsets = [92, 0], sizes = [4, 16], strides = [1, 1]} : vector<128x16xf32> to vector<4x16xf32>
    %c60 = arith.constant 60 : index
    %c16_40 = arith.constant 16 : index
    %59 = vector.load %arg20[%c60, %c16_40] : memref<72x64xf32, #tpu.memory_space<vmem>>, vector<4x16xf32>
    tpu.vector_store %arg20[%c60, %c16_40], %58 {strides = array<i32>} : memref<72x64xf32, #tpu.memory_space<vmem>>, vector<4x16xf32>,
    %60 = vector.extract_strided_slice %9 {offsets = [96, 0], sizes = [4, 16], strides = [1, 1]} : vector<128x16xf32> to vector<4x16xf32>
    %c37 = arith.constant 37 : index
    %c32_41 = arith.constant 32 : index
    %61 = vector.load %arg20[%c37, %c32_41] : memref<72x64xf32, #tpu.memory_space<vmem>>, vector<4x16xf32>
    tpu.vector_store %arg20[%c37, %c32_41], %60 {strides = array<i32>} : memref<72x64xf32, #tpu.memory_space<vmem>>, vector<4x16xf32>,
    %62 = vector.extract_strided_slice %9 {offsets = [100, 0], sizes = [4, 16], strides = [1, 1]} : vector<128x16xf32> to vector<4x16xf32>
    %c43_42 = arith.constant 43 : index
    %c32_43 = arith.constant 32 : index
    %63 = vector.load %arg20[%c43_42, %c32_43] : memref<72x64xf32, #tpu.memory_space<vmem>>, vector<4x16xf32>
    tpu.vector_store %arg20[%c43_42, %c32_43], %62 {strides = array<i32>} : memref<72x64xf32, #tpu.memory_space<vmem>>, vector<4x16xf32>,
    %64 = vector.extract_strided_slice %9 {offsets = [104, 0], sizes = [4, 16], strides = [1, 1]} : vector<128x16xf32> to vector<4x16xf32>
    %c49_44 = arith.constant 49 : index
    %c32_45 = arith.constant 32 : index
    %65 = vector.load %arg20[%c49_44, %c32_45] : memref<72x64xf32, #tpu.memory_space<vmem>>, vector<4x16xf32>
    tpu.vector_store %arg20[%c49_44, %c32_45], %64 {strides = array<i32>} : memref<72x64xf32, #tpu.memory_space<vmem>>, vector<4x16xf32>,
    %66 = vector.extract_strided_slice %9 {offsets = [108, 0], sizes = [4, 16], strides = [1, 1]} : vector<128x16xf32> to vector<4x16xf32>
    %c55_46 = arith.constant 55 : index
    %c32_47 = arith.constant 32 : index
    %67 = vector.load %arg20[%c55_46, %c32_47] : memref<72x64xf32, #tpu.memory_space<vmem>>, vector<4x16xf32>
    tpu.vector_store %arg20[%c55_46, %c32_47], %66 {strides = array<i32>} : memref<72x64xf32, #tpu.memory_space<vmem>>, vector<4x16xf32>,
    %68 = vector.extract_strided_slice %9 {offsets = [112, 0], sizes = [4, 16], strides = [1, 1]} : vector<128x16xf32> to vector<4x16xf32>
    %c36 = arith.constant 36 : index
    %c48_48 = arith.constant 48 : index
    %69 = vector.load %arg20[%c36, %c48_48] : memref<72x64xf32, #tpu.memory_space<vmem>>, vector<4x16xf32>
    tpu.vector_store %arg20[%c36, %c48_48], %68 {strides = array<i32>} : memref<72x64xf32, #tpu.memory_space<vmem>>, vector<4x16xf32>,
    %70 = vector.extract_strided_slice %9 {offsets = [116, 0], sizes = [4, 16], strides = [1, 1]} : vector<128x16xf32> to vector<4x16xf32>
    %c42_49 = arith.constant 42 : index
    %c48_50 = arith.constant 48 : index
    %71 = vector.load %arg20[%c42_49, %c48_50] : memref<72x64xf32, #tpu.memory_space<vmem>>, vector<4x16xf32>
    tpu.vector_store %arg20[%c42_49, %c48_50], %70 {strides = array<i32>} : memref<72x64xf32, #tpu.memory_space<vmem>>, vector<4x16xf32>,
    %72 = vector.extract_strided_slice %9 {offsets = [120, 0], sizes = [4, 16], strides = [1, 1]} : vector<128x16xf32> to vector<4x16xf32>
    %c48_51 = arith.constant 48 : index
    %c48_52 = arith.constant 48 : index
    %73 = vector.load %arg20[%c48_51, %c48_52] : memref<72x64xf32, #tpu.memory_space<vmem>>, vector<4x16xf32>
    tpu.vector_store %arg20[%c48_51, %c48_52], %72 {strides = array<i32>} : memref<72x64xf32, #tpu.memory_space<vmem>>, vector<4x16xf32>,
    %74 = vector.extract_strided_slice %9 {offsets = [124, 0], sizes = [4, 16], strides = [1, 1]} : vector<128x16xf32> to vector<4x16xf32>
    %c54_53 = arith.constant 54 : index
    %c48_54 = arith.constant 48 : index
    %75 = vector.load %arg20[%c54_53, %c48_54] : memref<72x64xf32, #tpu.memory_space<vmem>>, vector<4x16xf32>
    tpu.vector_store %arg20[%c54_53, %c48_54], %74 {strides = array<i32>} : memref<72x64xf32, #tpu.memory_space<vmem>>, vector<4x16xf32>,
    %c0_55 = arith.constant 0 : index
    %c0_56 = arith.constant 0 : index
    %76 = vector.load %arg20[%c0_55, %c0_56] : memref<72x64xf32, #tpu.memory_space<vmem>>, vector<58x64xf32>
    %77 = arith.truncf %76 : vector<58x64xf32> to vector<58x64xbf16>
    %c0_57 = arith.constant 0 : index
    %c0_58 = arith.constant 0 : index
    %78 = vector.load %arg22[%c0_57, %c0_58] : memref<58x288xbf16, #tpu.memory_space<vmem>>, vector<58x64xbf16>
    tpu.vector_store %arg22[%c0_57, %c0_58], %77 {strides = array<i32>} : memref<58x288xbf16, #tpu.memory_space<vmem>>, vector<58x64xbf16>,
    %c1_59 = arith.constant 1 : index
    %c0_60 = arith.constant 0 : index
    %79 = vector.load %arg20[%c1_59, %c0_60] : memref<72x64xf32, #tpu.memory_space<vmem>>, vector<58x64xf32>
    %80 = arith.truncf %79 : vector<58x64xf32> to vector<58x64xbf16>
    %c0_61 = arith.constant 0 : index
    %c64 = arith.constant 64 : index
    %81 = vector.load %arg22[%c0_61, %c64] : memref<58x288xbf16, #tpu.memory_space<vmem>>, vector<58x64xbf16>
    tpu.vector_store %arg22[%c0_61, %c64], %80 {strides = array<i32>} : memref<58x288xbf16, #tpu.memory_space<vmem>>, vector<58x64xbf16>,
    %c6_62 = arith.constant 6 : index
    %c0_63 = arith.constant 0 : index
    %82 = vector.load %arg20[%c6_62, %c0_63] : memref<72x64xf32, #tpu.memory_space<vmem>>, vector<58x64xf32>
    %83 = arith.truncf %82 : vector<58x64xf32> to vector<58x64xbf16>
    %c0_64 = arith.constant 0 : index
    %c128 = arith.constant 128 : index
    %84 = vector.load %arg22[%c0_64, %c128] : memref<58x288xbf16, #tpu.memory_space<vmem>>, vector<58x64xbf16>
    tpu.vector_store %arg22[%c0_64, %c128], %83 {strides = array<i32>} : memref<58x288xbf16, #tpu.memory_space<vmem>>, vector<58x64xbf16>,
    %c7_65 = arith.constant 7 : index
    %c0_66 = arith.constant 0 : index
    %85 = vector.load %arg20[%c7_65, %c0_66] : memref<72x64xf32, #tpu.memory_space<vmem>>, vector<58x64xf32>
    %86 = arith.truncf %85 : vector<58x64xf32> to vector<58x64xbf16>
    %c0_67 = arith.constant 0 : index
    %c192 = arith.constant 192 : index
    %87 = vector.load %arg22[%c0_67, %c192] : memref<58x288xbf16, #tpu.memory_space<vmem>>, vector<58x64xbf16>
    tpu.vector_store %arg22[%c0_67, %c192], %86 {strides = array<i32>} : memref<58x288xbf16, #tpu.memory_space<vmem>>, vector<58x64xbf16>,
    %c0_68 = arith.constant 0 : index
    %c0_69 = arith.constant 0 : index
    %88 = vector.load %arg22[%c0_68, %c0_69] : memref<58x288xbf16, #tpu.memory_space<vmem>>, vector<58x256xbf16>
    %c0_70 = arith.constant 0 : index
    %c0_71 = arith.constant 0 : index
    %89 = vector.load %arg5[%c0_70, %c0_71] : memref<256x32xbf16, #tpu.memory_space<vmem>>, vector<256x32xbf16>
    %cst_72 = arith.constant dense<0.000000e+00> : vector<58x32xf32>
    %90 = tpu.matmul %88, %89, %cst_72 {dimension_numbers = #tpu.dot_dimension_numbers<[1], [0], [0], [1], [0, 0, 1, 1], [], []>} : vector<58x256xbf16>, vector<256x32xbf16>, vector<58x32xf32> -> vector<58x32xf32>
    %c0_73 = arith.constant 0 : index
    %c0_74 = arith.constant 0 : index
    %91 = vector.load %arg6[%c0_73, %c0_74] : memref<1x32xf32, #tpu.memory_space<vmem>>, vector<1x32xf32>
    %92 = vector.broadcast %91 : vector<1x32xf32> to vector<58x32xf32>
    %93 = arith.addf %90, %92 : vector<58x32xf32>
    %cst_75 = arith.constant 0.000000e+00 : f32
    %94 = vector.broadcast %cst_75 : f32 to vector<58x32xf32>
    %95 = arith.maximumf %93, %94 : vector<58x32xf32>
    %cst_76 = arith.constant 0.000000e+00 : f32
    %96 = vector.broadcast %cst_76 : f32 to vector<72x32xf32>
    %c0_77 = arith.constant 0 : index
    %c0_78 = arith.constant 0 : index
    %97 = vector.load %arg21[%c0_77, %c0_78] : memref<72x32xf32, #tpu.memory_space<vmem>>, vector<72x32xf32>
    tpu.vector_store %arg21[%c0_77, %c0_78], %96 {strides = array<i32>} : memref<72x32xf32, #tpu.memory_space<vmem>>, vector<72x32xf32>,
    %98 = arith.mulf %95, %0 : vector<58x32xf32>
    %c7_79 = arith.constant 7 : index
    %c0_80 = arith.constant 0 : index
    %99 = vector.load %arg21[%c7_79, %c0_80] : memref<72x32xf32, #tpu.memory_space<vmem>>, vector<58x32xf32>
    tpu.vector_store %arg21[%c7_79, %c0_80], %98 {strides = array<i32>} : memref<72x32xf32, #tpu.memory_space<vmem>>, vector<58x32xf32>,
    %c0_81 = arith.constant 0 : index
    %c0_82 = arith.constant 0 : index
    %100 = vector.load %arg21[%c0_81, %c0_82] : memref<72x32xf32, #tpu.memory_space<vmem>>, vector<58x32xf32>
    %101 = arith.truncf %100 : vector<58x32xf32> to vector<58x32xbf16>
    %c0_83 = arith.constant 0 : index
    %c0_84 = arith.constant 0 : index
    %102 = vector.load %arg22[%c0_83, %c0_84] : memref<58x288xbf16, #tpu.memory_space<vmem>>, vector<58x32xbf16>
    tpu.vector_store %arg22[%c0_83, %c0_84], %101 {strides = array<i32>} : memref<58x288xbf16, #tpu.memory_space<vmem>>, vector<58x32xbf16>,
    %c1_85 = arith.constant 1 : index
    %c0_86 = arith.constant 0 : index
    %103 = vector.load %arg21[%c1_85, %c0_86] : memref<72x32xf32, #tpu.memory_space<vmem>>, vector<58x32xf32>
    %104 = arith.truncf %103 : vector<58x32xf32> to vector<58x32xbf16>
    %c0_87 = arith.constant 0 : index
    %c32_88 = arith.constant 32 : index
    %105 = vector.load %arg22[%c0_87, %c32_88] : memref<58x288xbf16, #tpu.memory_space<vmem>>, vector<58x32xbf16>
    tpu.vector_store %arg22[%c0_87, %c32_88], %104 {strides = array<i32>} : memref<58x288xbf16, #tpu.memory_space<vmem>>, vector<58x32xbf16>,
    %c2 = arith.constant 2 : index
    %c0_89 = arith.constant 0 : index
    %106 = vector.load %arg21[%c2, %c0_89] : memref<72x32xf32, #tpu.memory_space<vmem>>, vector<58x32xf32>
    %107 = arith.truncf %106 : vector<58x32xf32> to vector<58x32xbf16>
    %c0_90 = arith.constant 0 : index
    %c64_91 = arith.constant 64 : index
    %108 = vector.load %arg22[%c0_90, %c64_91] : memref<58x288xbf16, #tpu.memory_space<vmem>>, vector<58x32xbf16>
    tpu.vector_store %arg22[%c0_90, %c64_91], %107 {strides = array<i32>} : memref<58x288xbf16, #tpu.memory_space<vmem>>, vector<58x32xbf16>,
    %c6_92 = arith.constant 6 : index
    %c0_93 = arith.constant 0 : index
    %109 = vector.load %arg21[%c6_92, %c0_93] : memref<72x32xf32, #tpu.memory_space<vmem>>, vector<58x32xf32>
    %110 = arith.truncf %109 : vector<58x32xf32> to vector<58x32xbf16>
    %c0_94 = arith.constant 0 : index
    %c96 = arith.constant 96 : index
    %111 = vector.load %arg22[%c0_94, %c96] : memref<58x288xbf16, #tpu.memory_space<vmem>>, vector<58x32xbf16>
    tpu.vector_store %arg22[%c0_94, %c96], %110 {strides = array<i32>} : memref<58x288xbf16, #tpu.memory_space<vmem>>, vector<58x32xbf16>,
    %c7_95 = arith.constant 7 : index
    %c0_96 = arith.constant 0 : index
    %112 = vector.load %arg21[%c7_95, %c0_96] : memref<72x32xf32, #tpu.memory_space<vmem>>, vector<58x32xf32>
    %113 = arith.truncf %112 : vector<58x32xf32> to vector<58x32xbf16>
    %c0_97 = arith.constant 0 : index
    %c128_98 = arith.constant 128 : index
    %114 = vector.load %arg22[%c0_97, %c128_98] : memref<58x288xbf16, #tpu.memory_space<vmem>>, vector<58x32xbf16>
    tpu.vector_store %arg22[%c0_97, %c128_98], %113 {strides = array<i32>} : memref<58x288xbf16, #tpu.memory_space<vmem>>, vector<58x32xbf16>,
    %c8 = arith.constant 8 : index
    %c0_99 = arith.constant 0 : index
    %115 = vector.load %arg21[%c8, %c0_99] : memref<72x32xf32, #tpu.memory_space<vmem>>, vector<58x32xf32>
    %116 = arith.truncf %115 : vector<58x32xf32> to vector<58x32xbf16>
    %c0_100 = arith.constant 0 : index
    %c160 = arith.constant 160 : index
    %117 = vector.load %arg22[%c0_100, %c160] : memref<58x288xbf16, #tpu.memory_space<vmem>>, vector<58x32xbf16>
    tpu.vector_store %arg22[%c0_100, %c160], %116 {strides = array<i32>} : memref<58x288xbf16, #tpu.memory_space<vmem>>, vector<58x32xbf16>,
    %c12_101 = arith.constant 12 : index
    %c0_102 = arith.constant 0 : index
    %118 = vector.load %arg21[%c12_101, %c0_102] : memref<72x32xf32, #tpu.memory_space<vmem>>, vector<58x32xf32>
    %119 = arith.truncf %118 : vector<58x32xf32> to vector<58x32xbf16>
    %c0_103 = arith.constant 0 : index
    %c192_104 = arith.constant 192 : index
    %120 = vector.load %arg22[%c0_103, %c192_104] : memref<58x288xbf16, #tpu.memory_space<vmem>>, vector<58x32xbf16>
    tpu.vector_store %arg22[%c0_103, %c192_104], %119 {strides = array<i32>} : memref<58x288xbf16, #tpu.memory_space<vmem>>, vector<58x32xbf16>,
    %c13_105 = arith.constant 13 : index
    %c0_106 = arith.constant 0 : index
    %121 = vector.load %arg21[%c13_105, %c0_106] : memref<72x32xf32, #tpu.memory_space<vmem>>, vector<58x32xf32>
    %122 = arith.truncf %121 : vector<58x32xf32> to vector<58x32xbf16>
    %c0_107 = arith.constant 0 : index
    %c224 = arith.constant 224 : index
    %123 = vector.load %arg22[%c0_107, %c224] : memref<58x288xbf16, #tpu.memory_space<vmem>>, vector<58x32xbf16>
    tpu.vector_store %arg22[%c0_107, %c224], %122 {strides = array<i32>} : memref<58x288xbf16, #tpu.memory_space<vmem>>, vector<58x32xbf16>,
    %c14 = arith.constant 14 : index
    %c0_108 = arith.constant 0 : index
    %124 = vector.load %arg21[%c14, %c0_108] : memref<72x32xf32, #tpu.memory_space<vmem>>, vector<58x32xf32>
    %125 = arith.truncf %124 : vector<58x32xf32> to vector<58x32xbf16>
    %c0_109 = arith.constant 0 : index
    %c256 = arith.constant 256 : index
    %126 = vector.load %arg22[%c0_109, %c256] : memref<58x288xbf16, #tpu.memory_space<vmem>>, vector<58x32xbf16>
    tpu.vector_store %arg22[%c0_109, %c256], %125 {strides = array<i32>} : memref<58x288xbf16, #tpu.memory_space<vmem>>, vector<58x32xbf16>,
    %c0_110 = arith.constant 0 : index
    %c0_111 = arith.constant 0 : index
    %127 = vector.load %arg22[%c0_110, %c0_111] : memref<58x288xbf16, #tpu.memory_space<vmem>>, vector<58x288xbf16>
    %c0_112 = arith.constant 0 : index
    %c0_113 = arith.constant 0 : index
    %128 = vector.load %arg7[%c0_112, %c0_113] : memref<288x32xbf16, #tpu.memory_space<vmem>>, vector<288x32xbf16>
    %cst_114 = arith.constant dense<0.000000e+00> : vector<58x32xf32>
    %129 = tpu.matmul %127, %128, %cst_114 {dimension_numbers = #tpu.dot_dimension_numbers<[1], [0], [0], [1], [0, 0, 1, 1], [], []>} : vector<58x288xbf16>, vector<288x32xbf16>, vector<58x32xf32> -> vector<58x32xf32>
    %c0_115 = arith.constant 0 : index
    %c0_116 = arith.constant 0 : index
    %130 = vector.load %arg8[%c0_115, %c0_116] : memref<1x32xf32, #tpu.memory_space<vmem>>, vector<1x32xf32>
    %131 = vector.broadcast %130 : vector<1x32xf32> to vector<58x32xf32>
    %132 = arith.addf %129, %131 : vector<58x32xf32>
    %133 = arith.mulf %132, %0 : vector<58x32xf32>
    %c7_117 = arith.constant 7 : index
    %c0_118 = arith.constant 0 : index
    %134 = vector.load %arg21[%c7_117, %c0_118] : memref<72x32xf32, #tpu.memory_space<vmem>>, vector<58x32xf32>
    tpu.vector_store %arg21[%c7_117, %c0_118], %133 {strides = array<i32>} : memref<72x32xf32, #tpu.memory_space<vmem>>, vector<58x32xf32>,
    %c0_119 = arith.constant 0 : index
    %c0_120 = arith.constant 0 : index
    %135 = vector.load %arg21[%c0_119, %c0_120] : memref<72x32xf32, #tpu.memory_space<vmem>>, vector<58x32xf32>
    %cst_121 = arith.constant 0.000000e+00 : f32
    %136 = vector.broadcast %cst_121 : f32 to vector<58x32xf32>
    %137 = arith.maximumf %135, %136 : vector<58x32xf32>
    %138 = arith.truncf %137 : vector<58x32xf32> to vector<58x32xbf16>
    %c0_122 = arith.constant 0 : index
    %c0_123 = arith.constant 0 : index
    %139 = vector.load %arg22[%c0_122, %c0_123] : memref<58x288xbf16, #tpu.memory_space<vmem>>, vector<58x32xbf16>
    tpu.vector_store %arg22[%c0_122, %c0_123], %138 {strides = array<i32>} : memref<58x288xbf16, #tpu.memory_space<vmem>>, vector<58x32xbf16>,
    %c1_124 = arith.constant 1 : index
    %c0_125 = arith.constant 0 : index
    %140 = vector.load %arg21[%c1_124, %c0_125] : memref<72x32xf32, #tpu.memory_space<vmem>>, vector<58x32xf32>
    %cst_126 = arith.constant 0.000000e+00 : f32
    %141 = vector.broadcast %cst_126 : f32 to vector<58x32xf32>
    %142 = arith.maximumf %140, %141 : vector<58x32xf32>
    %143 = arith.truncf %142 : vector<58x32xf32> to vector<58x32xbf16>
    %c0_127 = arith.constant 0 : index
    %c32_128 = arith.constant 32 : index
    %144 = vector.load %arg22[%c0_127, %c32_128] : memref<58x288xbf16, #tpu.memory_space<vmem>>, vector<58x32xbf16>
    tpu.vector_store %arg22[%c0_127, %c32_128], %143 {strides = array<i32>} : memref<58x288xbf16, #tpu.memory_space<vmem>>, vector<58x32xbf16>,
    %c2_129 = arith.constant 2 : index
    %c0_130 = arith.constant 0 : index
    %145 = vector.load %arg21[%c2_129, %c0_130] : memref<72x32xf32, #tpu.memory_space<vmem>>, vector<58x32xf32>
    %cst_131 = arith.constant 0.000000e+00 : f32
    %146 = vector.broadcast %cst_131 : f32 to vector<58x32xf32>
    %147 = arith.maximumf %145, %146 : vector<58x32xf32>
    %148 = arith.truncf %147 : vector<58x32xf32> to vector<58x32xbf16>
    %c0_132 = arith.constant 0 : index
    %c64_133 = arith.constant 64 : index
    %149 = vector.load %arg22[%c0_132, %c64_133] : memref<58x288xbf16, #tpu.memory_space<vmem>>, vector<58x32xbf16>
    tpu.vector_store %arg22[%c0_132, %c64_133], %148 {strides = array<i32>} : memref<58x288xbf16, #tpu.memory_space<vmem>>, vector<58x32xbf16>,
    %c6_134 = arith.constant 6 : index
    %c0_135 = arith.constant 0 : index
    %150 = vector.load %arg21[%c6_134, %c0_135] : memref<72x32xf32, #tpu.memory_space<vmem>>, vector<58x32xf32>
    %cst_136 = arith.constant 0.000000e+00 : f32
    %151 = vector.broadcast %cst_136 : f32 to vector<58x32xf32>
    %152 = arith.maximumf %150, %151 : vector<58x32xf32>
    %153 = arith.truncf %152 : vector<58x32xf32> to vector<58x32xbf16>
    %c0_137 = arith.constant 0 : index
    %c96_138 = arith.constant 96 : index
    %154 = vector.load %arg22[%c0_137, %c96_138] : memref<58x288xbf16, #tpu.memory_space<vmem>>, vector<58x32xbf16>
    tpu.vector_store %arg22[%c0_137, %c96_138], %153 {strides = array<i32>} : memref<58x288xbf16, #tpu.memory_space<vmem>>, vector<58x32xbf16>,
    %c7_139 = arith.constant 7 : index
    %c0_140 = arith.constant 0 : index
    %155 = vector.load %arg21[%c7_139, %c0_140] : memref<72x32xf32, #tpu.memory_space<vmem>>, vector<58x32xf32>
    %cst_141 = arith.constant 0.000000e+00 : f32
    %156 = vector.broadcast %cst_141 : f32 to vector<58x32xf32>
    %157 = arith.maximumf %155, %156 : vector<58x32xf32>
    %158 = arith.truncf %157 : vector<58x32xf32> to vector<58x32xbf16>
    %c0_142 = arith.constant 0 : index
    %c128_143 = arith.constant 128 : index
    %159 = vector.load %arg22[%c0_142, %c128_143] : memref<58x288xbf16, #tpu.memory_space<vmem>>, vector<58x32xbf16>
    tpu.vector_store %arg22[%c0_142, %c128_143], %158 {strides = array<i32>} : memref<58x288xbf16, #tpu.memory_space<vmem>>, vector<58x32xbf16>,
    %c8_144 = arith.constant 8 : index
    %c0_145 = arith.constant 0 : index
    %160 = vector.load %arg21[%c8_144, %c0_145] : memref<72x32xf32, #tpu.memory_space<vmem>>, vector<58x32xf32>
    %cst_146 = arith.constant 0.000000e+00 : f32
    %161 = vector.broadcast %cst_146 : f32 to vector<58x32xf32>
    %162 = arith.maximumf %160, %161 : vector<58x32xf32>
    %163 = arith.truncf %162 : vector<58x32xf32> to vector<58x32xbf16>
    %c0_147 = arith.constant 0 : index
    %c160_148 = arith.constant 160 : index
    %164 = vector.load %arg22[%c0_147, %c160_148] : memref<58x288xbf16, #tpu.memory_space<vmem>>, vector<58x32xbf16>
    tpu.vector_store %arg22[%c0_147, %c160_148], %163 {strides = array<i32>} : memref<58x288xbf16, #tpu.memory_space<vmem>>, vector<58x32xbf16>,
    %c12_149 = arith.constant 12 : index
    %c0_150 = arith.constant 0 : index
    %165 = vector.load %arg21[%c12_149, %c0_150] : memref<72x32xf32, #tpu.memory_space<vmem>>, vector<58x32xf32>
    %cst_151 = arith.constant 0.000000e+00 : f32
    %166 = vector.broadcast %cst_151 : f32 to vector<58x32xf32>
    %167 = arith.maximumf %165, %166 : vector<58x32xf32>
    %168 = arith.truncf %167 : vector<58x32xf32> to vector<58x32xbf16>
    %c0_152 = arith.constant 0 : index
    %c192_153 = arith.constant 192 : index
    %169 = vector.load %arg22[%c0_152, %c192_153] : memref<58x288xbf16, #tpu.memory_space<vmem>>, vector<58x32xbf16>
    tpu.vector_store %arg22[%c0_152, %c192_153], %168 {strides = array<i32>} : memref<58x288xbf16, #tpu.memory_space<vmem>>, vector<58x32xbf16>,
    %c13_154 = arith.constant 13 : index
    %c0_155 = arith.constant 0 : index
    %170 = vector.load %arg21[%c13_154, %c0_155] : memref<72x32xf32, #tpu.memory_space<vmem>>, vector<58x32xf32>
    %cst_156 = arith.constant 0.000000e+00 : f32
    %171 = vector.broadcast %cst_156 : f32 to vector<58x32xf32>
    %172 = arith.maximumf %170, %171 : vector<58x32xf32>
    %173 = arith.truncf %172 : vector<58x32xf32> to vector<58x32xbf16>
    %c0_157 = arith.constant 0 : index
    %c224_158 = arith.constant 224 : index
    %174 = vector.load %arg22[%c0_157, %c224_158] : memref<58x288xbf16, #tpu.memory_space<vmem>>, vector<58x32xbf16>
    tpu.vector_store %arg22[%c0_157, %c224_158], %173 {strides = array<i32>} : memref<58x288xbf16, #tpu.memory_space<vmem>>, vector<58x32xbf16>,
    %c14_159 = arith.constant 14 : index
    %c0_160 = arith.constant 0 : index
    %175 = vector.load %arg21[%c14_159, %c0_160] : memref<72x32xf32, #tpu.memory_space<vmem>>, vector<58x32xf32>
    %cst_161 = arith.constant 0.000000e+00 : f32
    %176 = vector.broadcast %cst_161 : f32 to vector<58x32xf32>
    %177 = arith.maximumf %175, %176 : vector<58x32xf32>
    %178 = arith.truncf %177 : vector<58x32xf32> to vector<58x32xbf16>
    %c0_162 = arith.constant 0 : index
    %c256_163 = arith.constant 256 : index
    %179 = vector.load %arg22[%c0_162, %c256_163] : memref<58x288xbf16, #tpu.memory_space<vmem>>, vector<58x32xbf16>
    tpu.vector_store %arg22[%c0_162, %c256_163], %178 {strides = array<i32>} : memref<58x288xbf16, #tpu.memory_space<vmem>>, vector<58x32xbf16>,
    %c0_164 = arith.constant 0 : index
    %c0_165 = arith.constant 0 : index
    %180 = vector.load %arg22[%c0_164, %c0_165] : memref<58x288xbf16, #tpu.memory_space<vmem>>, vector<58x288xbf16>
    %c0_166 = arith.constant 0 : index
    %c0_167 = arith.constant 0 : index
    %181 = vector.load %arg9[%c0_166, %c0_167] : memref<288x16xbf16, #tpu.memory_space<vmem>>, vector<288x16xbf16>
    %cst_168 = arith.constant dense<0.000000e+00> : vector<58x16xf32>
    %182 = tpu.matmul %180, %181, %cst_168 {dimension_numbers = #tpu.dot_dimension_numbers<[1], [0], [0], [1], [0, 0, 1, 1], [], []>} : vector<58x288xbf16>, vector<288x16xbf16>, vector<58x16xf32> -> vector<58x16xf32>
    %c0_169 = arith.constant 0 : index
    %c0_170 = arith.constant 0 : index
    %183 = vector.load %arg10[%c0_169, %c0_170] : memref<1x16xf32, #tpu.memory_space<vmem>>, vector<1x16xf32>
    %184 = vector.broadcast %183 : vector<1x16xf32> to vector<58x16xf32>
    %185 = arith.addf %182, %184 : vector<58x16xf32>
    %cst_171 = arith.constant 0.000000e+00 : f32
    %186 = vector.broadcast %cst_171 : f32 to vector<58x16xf32>
    %187 = arith.maximumf %185, %186 : vector<58x16xf32>
    %188 = arith.truncf %187 : vector<58x16xf32> to vector<58x16xbf16>
    %c0_172 = arith.constant 0 : index
    %c0_173 = arith.constant 0 : index
    %189 = vector.load %arg11[%c0_172, %c0_173] : memref<16x32xbf16, #tpu.memory_space<vmem>>, vector<16x32xbf16>
    %cst_174 = arith.constant dense<0.000000e+00> : vector<58x32xf32>
    %190 = tpu.matmul %188, %189, %cst_174 {dimension_numbers = #tpu.dot_dimension_numbers<[1], [0], [0], [1], [0, 0, 1, 1], [], []>} : vector<58x16xbf16>, vector<16x32xbf16>, vector<58x32xf32> -> vector<58x32xf32>
    %c0_175 = arith.constant 0 : index
    %c0_176 = arith.constant 0 : index
    %191 = vector.load %arg12[%c0_175, %c0_176] : memref<1x32xf32, #tpu.memory_space<vmem>>, vector<1x32xf32>
    %192 = vector.broadcast %191 : vector<1x32xf32> to vector<58x32xf32>
    %193 = arith.addf %190, %192 : vector<58x32xf32>
    %c7_177 = arith.constant 7 : index
    %c0_178 = arith.constant 0 : index
    %194 = vector.load %arg21[%c7_177, %c0_178] : memref<72x32xf32, #tpu.memory_space<vmem>>, vector<58x32xf32>
    %195 = arith.mulf %193, %0 : vector<58x32xf32>
    %196 = arith.addf %194, %195 : vector<58x32xf32>
    %c7_179 = arith.constant 7 : index
    %c0_180 = arith.constant 0 : index
    %197 = vector.load %arg21[%c7_179, %c0_180] : memref<72x32xf32, #tpu.memory_space<vmem>>, vector<58x32xf32>
    tpu.vector_store %arg21[%c7_179, %c0_180], %196 {strides = array<i32>} : memref<72x32xf32, #tpu.memory_space<vmem>>, vector<58x32xf32>,
    %c0_181 = arith.constant 0 : index
    %c0_182 = arith.constant 0 : index
    %198 = vector.load %arg21[%c0_181, %c0_182] : memref<72x32xf32, #tpu.memory_space<vmem>>, vector<58x32xf32>
    %cst_183 = arith.constant 0.000000e+00 : f32
    %199 = vector.broadcast %cst_183 : f32 to vector<58x32xf32>
    %200 = arith.maximumf %198, %199 : vector<58x32xf32>
    %201 = arith.truncf %200 : vector<58x32xf32> to vector<58x32xbf16>
    %c0_184 = arith.constant 0 : index
    %c0_185 = arith.constant 0 : index
    %202 = vector.load %arg22[%c0_184, %c0_185] : memref<58x288xbf16, #tpu.memory_space<vmem>>, vector<58x32xbf16>
    tpu.vector_store %arg22[%c0_184, %c0_185], %201 {strides = array<i32>} : memref<58x288xbf16, #tpu.memory_space<vmem>>, vector<58x32xbf16>,
    %c1_186 = arith.constant 1 : index
    %c0_187 = arith.constant 0 : index
    %203 = vector.load %arg21[%c1_186, %c0_187] : memref<72x32xf32, #tpu.memory_space<vmem>>, vector<58x32xf32>
    %cst_188 = arith.constant 0.000000e+00 : f32
    %204 = vector.broadcast %cst_188 : f32 to vector<58x32xf32>
    %205 = arith.maximumf %203, %204 : vector<58x32xf32>
    %206 = arith.truncf %205 : vector<58x32xf32> to vector<58x32xbf16>
    %c0_189 = arith.constant 0 : index
    %c32_190 = arith.constant 32 : index
    %207 = vector.load %arg22[%c0_189, %c32_190] : memref<58x288xbf16, #tpu.memory_space<vmem>>, vector<58x32xbf16>
    tpu.vector_store %arg22[%c0_189, %c32_190], %206 {strides = array<i32>} : memref<58x288xbf16, #tpu.memory_space<vmem>>, vector<58x32xbf16>,
    %c2_191 = arith.constant 2 : index
    %c0_192 = arith.constant 0 : index
    %208 = vector.load %arg21[%c2_191, %c0_192] : memref<72x32xf32, #tpu.memory_space<vmem>>, vector<58x32xf32>
    %cst_193 = arith.constant 0.000000e+00 : f32
    %209 = vector.broadcast %cst_193 : f32 to vector<58x32xf32>
    %210 = arith.maximumf %208, %209 : vector<58x32xf32>
    %211 = arith.truncf %210 : vector<58x32xf32> to vector<58x32xbf16>
    %c0_194 = arith.constant 0 : index
    %c64_195 = arith.constant 64 : index
    %212 = vector.load %arg22[%c0_194, %c64_195] : memref<58x288xbf16, #tpu.memory_space<vmem>>, vector<58x32xbf16>
    tpu.vector_store %arg22[%c0_194, %c64_195], %211 {strides = array<i32>} : memref<58x288xbf16, #tpu.memory_space<vmem>>, vector<58x32xbf16>,
    %c6_196 = arith.constant 6 : index
    %c0_197 = arith.constant 0 : index
    %213 = vector.load %arg21[%c6_196, %c0_197] : memref<72x32xf32, #tpu.memory_space<vmem>>, vector<58x32xf32>
    %cst_198 = arith.constant 0.000000e+00 : f32
    %214 = vector.broadcast %cst_198 : f32 to vector<58x32xf32>
    %215 = arith.maximumf %213, %214 : vector<58x32xf32>
    %216 = arith.truncf %215 : vector<58x32xf32> to vector<58x32xbf16>
    %c0_199 = arith.constant 0 : index
    %c96_200 = arith.constant 96 : index
    %217 = vector.load %arg22[%c0_199, %c96_200] : memref<58x288xbf16, #tpu.memory_space<vmem>>, vector<58x32xbf16>
    tpu.vector_store %arg22[%c0_199, %c96_200], %216 {strides = array<i32>} : memref<58x288xbf16, #tpu.memory_space<vmem>>, vector<58x32xbf16>,
    %c7_201 = arith.constant 7 : index
    %c0_202 = arith.constant 0 : index
    %218 = vector.load %arg21[%c7_201, %c0_202] : memref<72x32xf32, #tpu.memory_space<vmem>>, vector<58x32xf32>
    %cst_203 = arith.constant 0.000000e+00 : f32
    %219 = vector.broadcast %cst_203 : f32 to vector<58x32xf32>
    %220 = arith.maximumf %218, %219 : vector<58x32xf32>
    %221 = arith.truncf %220 : vector<58x32xf32> to vector<58x32xbf16>
    %c0_204 = arith.constant 0 : index
    %c128_205 = arith.constant 128 : index
    %222 = vector.load %arg22[%c0_204, %c128_205] : memref<58x288xbf16, #tpu.memory_space<vmem>>, vector<58x32xbf16>
    tpu.vector_store %arg22[%c0_204, %c128_205], %221 {strides = array<i32>} : memref<58x288xbf16, #tpu.memory_space<vmem>>, vector<58x32xbf16>,
    %c8_206 = arith.constant 8 : index
    %c0_207 = arith.constant 0 : index
    %223 = vector.load %arg21[%c8_206, %c0_207] : memref<72x32xf32, #tpu.memory_space<vmem>>, vector<58x32xf32>
    %cst_208 = arith.constant 0.000000e+00 : f32
    %224 = vector.broadcast %cst_208 : f32 to vector<58x32xf32>
    %225 = arith.maximumf %223, %224 : vector<58x32xf32>
    %226 = arith.truncf %225 : vector<58x32xf32> to vector<58x32xbf16>
    %c0_209 = arith.constant 0 : index
    %c160_210 = arith.constant 160 : index
    %227 = vector.load %arg22[%c0_209, %c160_210] : memref<58x288xbf16, #tpu.memory_space<vmem>>, vector<58x32xbf16>
    tpu.vector_store %arg22[%c0_209, %c160_210], %226 {strides = array<i32>} : memref<58x288xbf16, #tpu.memory_space<vmem>>, vector<58x32xbf16>,
    %c12_211 = arith.constant 12 : index
    %c0_212 = arith.constant 0 : index
    %228 = vector.load %arg21[%c12_211, %c0_212] : memref<72x32xf32, #tpu.memory_space<vmem>>, vector<58x32xf32>
    %cst_213 = arith.constant 0.000000e+00 : f32
    %229 = vector.broadcast %cst_213 : f32 to vector<58x32xf32>
    %230 = arith.maximumf %228, %229 : vector<58x32xf32>
    %231 = arith.truncf %230 : vector<58x32xf32> to vector<58x32xbf16>
    %c0_214 = arith.constant 0 : index
    %c192_215 = arith.constant 192 : index
    %232 = vector.load %arg22[%c0_214, %c192_215] : memref<58x288xbf16, #tpu.memory_space<vmem>>, vector<58x32xbf16>
    tpu.vector_store %arg22[%c0_214, %c192_215], %231 {strides = array<i32>} : memref<58x288xbf16, #tpu.memory_space<vmem>>, vector<58x32xbf16>,
    %c13_216 = arith.constant 13 : index
    %c0_217 = arith.constant 0 : index
    %233 = vector.load %arg21[%c13_216, %c0_217] : memref<72x32xf32, #tpu.memory_space<vmem>>, vector<58x32xf32>
    %cst_218 = arith.constant 0.000000e+00 : f32
    %234 = vector.broadcast %cst_218 : f32 to vector<58x32xf32>
    %235 = arith.maximumf %233, %234 : vector<58x32xf32>
    %236 = arith.truncf %235 : vector<58x32xf32> to vector<58x32xbf16>
    %c0_219 = arith.constant 0 : index
    %c224_220 = arith.constant 224 : index
    %237 = vector.load %arg22[%c0_219, %c224_220] : memref<58x288xbf16, #tpu.memory_space<vmem>>, vector<58x32xbf16>
    tpu.vector_store %arg22[%c0_219, %c224_220], %236 {strides = array<i32>} : memref<58x288xbf16, #tpu.memory_space<vmem>>, vector<58x32xbf16>,
    %c14_221 = arith.constant 14 : index
    %c0_222 = arith.constant 0 : index
    %238 = vector.load %arg21[%c14_221, %c0_222] : memref<72x32xf32, #tpu.memory_space<vmem>>, vector<58x32xf32>
    %cst_223 = arith.constant 0.000000e+00 : f32
    %239 = vector.broadcast %cst_223 : f32 to vector<58x32xf32>
    %240 = arith.maximumf %238, %239 : vector<58x32xf32>
    %241 = arith.truncf %240 : vector<58x32xf32> to vector<58x32xbf16>
    %c0_224 = arith.constant 0 : index
    %c256_225 = arith.constant 256 : index
    %242 = vector.load %arg22[%c0_224, %c256_225] : memref<58x288xbf16, #tpu.memory_space<vmem>>, vector<58x32xbf16>
    tpu.vector_store %arg22[%c0_224, %c256_225], %241 {strides = array<i32>} : memref<58x288xbf16, #tpu.memory_space<vmem>>, vector<58x32xbf16>,
    %c0_226 = arith.constant 0 : index
    %c0_227 = arith.constant 0 : index
    %243 = vector.load %arg22[%c0_226, %c0_227] : memref<58x288xbf16, #tpu.memory_space<vmem>>, vector<58x288xbf16>
    %c0_228 = arith.constant 0 : index
    %c0_229 = arith.constant 0 : index
    %244 = vector.load %arg13[%c0_228, %c0_229] : memref<288x16xbf16, #tpu.memory_space<vmem>>, vector<288x16xbf16>
    %cst_230 = arith.constant dense<0.000000e+00> : vector<58x16xf32>
    %245 = tpu.matmul %243, %244, %cst_230 {dimension_numbers = #tpu.dot_dimension_numbers<[1], [0], [0], [1], [0, 0, 1, 1], [], []>} : vector<58x288xbf16>, vector<288x16xbf16>, vector<58x16xf32> -> vector<58x16xf32>
    %c0_231 = arith.constant 0 : index
    %c0_232 = arith.constant 0 : index
    %246 = vector.load %arg14[%c0_231, %c0_232] : memref<1x16xf32, #tpu.memory_space<vmem>>, vector<1x16xf32>
    %247 = vector.broadcast %246 : vector<1x16xf32> to vector<58x16xf32>
    %248 = arith.addf %245, %247 : vector<58x16xf32>
    %cst_233 = arith.constant 0.000000e+00 : f32
    %249 = vector.broadcast %cst_233 : f32 to vector<58x16xf32>
    %250 = arith.maximumf %248, %249 : vector<58x16xf32>
    %251 = arith.truncf %250 : vector<58x16xf32> to vector<58x16xbf16>
    %c0_234 = arith.constant 0 : index
    %c0_235 = arith.constant 0 : index
    %252 = vector.load %arg15[%c0_234, %c0_235] : memref<16x32xbf16, #tpu.memory_space<vmem>>, vector<16x32xbf16>
    %cst_236 = arith.constant dense<0.000000e+00> : vector<58x32xf32>
    %253 = tpu.matmul %251, %252, %cst_236 {dimension_numbers = #tpu.dot_dimension_numbers<[1], [0], [0], [1], [0, 0, 1, 1], [], []>} : vector<58x16xbf16>, vector<16x32xbf16>, vector<58x32xf32> -> vector<58x32xf32>
    %c0_237 = arith.constant 0 : index
    %c0_238 = arith.constant 0 : index
    %254 = vector.load %arg16[%c0_237, %c0_238] : memref<1x32xf32, #tpu.memory_space<vmem>>, vector<1x32xf32>
    %255 = vector.broadcast %254 : vector<1x32xf32> to vector<58x32xf32>
    %256 = arith.addf %253, %255 : vector<58x32xf32>
    %c7_239 = arith.constant 7 : index
    %c0_240 = arith.constant 0 : index
    %257 = vector.load %arg21[%c7_239, %c0_240] : memref<72x32xf32, #tpu.memory_space<vmem>>, vector<58x32xf32>
    %258 = arith.mulf %256, %0 : vector<58x32xf32>
    %259 = arith.addf %257, %258 : vector<58x32xf32>
    %c7_241 = arith.constant 7 : index
    %c0_242 = arith.constant 0 : index
    %260 = vector.load %arg21[%c7_241, %c0_242] : memref<72x32xf32, #tpu.memory_space<vmem>>, vector<58x32xf32>
    tpu.vector_store %arg21[%c7_241, %c0_242], %259 {strides = array<i32>} : memref<72x32xf32, #tpu.memory_space<vmem>>, vector<58x32xf32>,
    %c0_243 = arith.constant 0 : index
    %c0_244 = arith.constant 0 : index
    %261 = vector.load %arg21[%c0_243, %c0_244] : memref<72x32xf32, #tpu.memory_space<vmem>>, vector<72x32xf32>
    %cst_245 = arith.constant 0.000000e+00 : f32
    %262 = vector.broadcast %cst_245 : f32 to vector<72x32xf32>
    %263 = arith.maximumf %261, %262 : vector<72x32xf32>
    %264 = arith.truncf %263 : vector<72x32xf32> to vector<72x32xbf16>
    %c0_246 = arith.constant 0 : index
    %c0_247 = arith.constant 0 : index
    %265 = vector.load %arg17[%c0_246, %c0_247] : memref<32x8xbf16, #tpu.memory_space<vmem>>, vector<32x8xbf16>
    %cst_248 = arith.constant dense<0.000000e+00> : vector<72x8xf32>
    %266 = tpu.matmul %264, %265, %cst_248 {dimension_numbers = #tpu.dot_dimension_numbers<[1], [0], [0], [1], [0, 0, 1, 1], [], []>} : vector<72x32xbf16>, vector<32x8xbf16>, vector<72x8xf32> -> vector<72x8xf32>
    %c0_249 = arith.constant 0 : index
    %c0_250 = arith.constant 0 : index
    %267 = vector.load %arg18[%c0_249, %c0_250] : memref<1x8xf32, #tpu.memory_space<vmem>>, vector<1x8xf32>
    %268 = vector.broadcast %267 : vector<1x8xf32> to vector<72x8xf32>
    %269 = arith.addf %266, %268 : vector<72x8xf32>
    %c0_251 = arith.constant 0 : index
    %c0_252 = arith.constant 0 : index
    %c0_253 = arith.constant 0 : index
    %270 = vector.load %arg19[%c0_251, %c0_252, %c0_253] : memref<1x72x8xf32, #tpu.memory_space<vmem>>, vector<1x72x8xf32>
    %271 = vector.shape_cast %270 : vector<1x72x8xf32> to vector<72x8xf32>
    %272 = vector.shape_cast %269 : vector<72x8xf32> to vector<1x72x8xf32>
    tpu.vector_store %arg19[%c0_251, %c0_252, %c0_253], %272 {strides = array<i32>} : memref<1x72x8xf32, #tpu.memory_space<vmem>>, vector<1x72x8xf32>,
    return
  }
  func.func @transform_0(%arg0: i32) -> (i32, i32) {
    %c0_i32 = arith.constant 0 : i32
    %c0_i32_0 = arith.constant 0 : i32
    %c0_i32_1 = arith.constant 0 : i32
    return %c0_i32, %c0_i32_0 : i32, i32
  }
  func.func @transform_1(%arg0: i32) -> (i32, i32, i32) {
    %c0_i32 = arith.constant 0 : i32
    %c0_i32_0 = arith.constant 0 : i32
    %c0_i32_1 = arith.constant 0 : i32
    return %arg0, %c0_i32, %c0_i32_0 : i32, i32, i32
  }
  func.func @transform_2(%arg0: i32) -> (i32, i32) {
    %c0_i32 = arith.constant 0 : i32
    %c0_i32_0 = arith.constant 0 : i32
    %c0_i32_1 = arith.constant 0 : i32
    return %c0_i32, %c0_i32_0 : i32, i32
  }
  func.func @transform_3(%arg0: i32) -> (i32, i32) {
    %c0_i32 = arith.constant 0 : i32
    %c0_i32_0 = arith.constant 0 : i32
    %c0_i32_1 = arith.constant 0 : i32
    return %c0_i32, %c0_i32_0 : i32, i32
  }
  func.func @transform_4(%arg0: i32) -> (i32, i32) {
    %c0_i32 = arith.constant 0 : i32
    %c0_i32_0 = arith.constant 0 : i32
    %c0_i32_1 = arith.constant 0 : i32
    return %c0_i32, %c0_i32_0 : i32, i32
  }
  func.func @transform_5(%arg0: i32) -> (i32, i32) {
    %c0_i32 = arith.constant 0 : i32
    %c0_i32_0 = arith.constant 0 : i32
    %c0_i32_1 = arith.constant 0 : i32
    return %c0_i32, %c0_i32_0 : i32, i32
  }
  func.func @transform_6(%arg0: i32) -> (i32, i32) {
    %c0_i32 = arith.constant 0 : i32
    %c0_i32_0 = arith.constant 0 : i32
    %c0_i32_1 = arith.constant 0 : i32
    return %c0_i32, %c0_i32_0 : i32, i32
  }
  func.func @transform_7(%arg0: i32) -> (i32, i32) {
    %c0_i32 = arith.constant 0 : i32
    %c0_i32_0 = arith.constant 0 : i32
    %c0_i32_1 = arith.constant 0 : i32
    return %c0_i32, %c0_i32_0 : i32, i32
  }
  func.func @transform_8(%arg0: i32) -> (i32, i32) {
    %c0_i32 = arith.constant 0 : i32
    %c0_i32_0 = arith.constant 0 : i32
    %c0_i32_1 = arith.constant 0 : i32
    return %c0_i32, %c0_i32_0 : i32, i32
  }
  func.func @transform_9(%arg0: i32) -> (i32, i32) {
    %c0_i32 = arith.constant 0 : i32
    %c0_i32_0 = arith.constant 0 : i32
    %c0_i32_1 = arith.constant 0 : i32
    return %c0_i32, %c0_i32_0 : i32, i32
  }
  func.func @transform_10(%arg0: i32) -> (i32, i32) {
    %c0_i32 = arith.constant 0 : i32
    %c0_i32_0 = arith.constant 0 : i32
    %c0_i32_1 = arith.constant 0 : i32
    return %c0_i32, %c0_i32_0 : i32, i32
  }
  func.func @transform_11(%arg0: i32) -> (i32, i32) {
    %c0_i32 = arith.constant 0 : i32
    %c0_i32_0 = arith.constant 0 : i32
    %c0_i32_1 = arith.constant 0 : i32
    return %c0_i32, %c0_i32_0 : i32, i32
  }
  func.func @transform_12(%arg0: i32) -> (i32, i32) {
    %c0_i32 = arith.constant 0 : i32
    %c0_i32_0 = arith.constant 0 : i32
    %c0_i32_1 = arith.constant 0 : i32
    return %c0_i32, %c0_i32_0 : i32, i32
  }
  func.func @transform_13(%arg0: i32) -> (i32, i32) {
    %c0_i32 = arith.constant 0 : i32
    %c0_i32_0 = arith.constant 0 : i32
    %c0_i32_1 = arith.constant 0 : i32
    return %c0_i32, %c0_i32_0 : i32, i32
  }
  func.func @transform_14(%arg0: i32) -> (i32, i32) {
    %c0_i32 = arith.constant 0 : i32
    %c0_i32_0 = arith.constant 0 : i32
    %c0_i32_1 = arith.constant 0 : i32
    return %c0_i32, %c0_i32_0 : i32, i32
  }
  func.func @transform_15(%arg0: i32) -> (i32, i32) {
    %c0_i32 = arith.constant 0 : i32
    %c0_i32_0 = arith.constant 0 : i32
    %c0_i32_1 = arith.constant 0 : i32
    return %c0_i32, %c0_i32_0 : i32, i32
  }
  func.func @transform_16(%arg0: i32) -> (i32, i32) {
    %c0_i32 = arith.constant 0 : i32
    %c0_i32_0 = arith.constant 0 : i32
    %c0_i32_1 = arith.constant 0 : i32
    return %c0_i32, %c0_i32_0 : i32, i32
  }
  func.func @transform_17(%arg0: i32) -> (i32, i32) {
    %c0_i32 = arith.constant 0 : i32
    %c0_i32_0 = arith.constant 0 : i32
    %c0_i32_1 = arith.constant 0 : i32
    return %c0_i32, %c0_i32_0 : i32, i32
  }
  func.func @transform_18(%arg0: i32) -> (i32, i32, i32) {
    %c0_i32 = arith.constant 0 : i32
    %c0_i32_0 = arith.constant 0 : i32
    %c0_i32_1 = arith.constant 0 : i32
    return %arg0, %c0_i32, %c0_i32_0 : i32, i32, i32
  }
}

</mosaic_0001>

<bundles_post_ra>
// kernel: encoder_forward.1
= control target key start
LH: loop header
LB: loop body
LE: loop exit
PB: predicated region body
PF: predicated region fallthrough
CT: control target
= control target key end

     0   :  { %vm139_vm0 = vcmask 130048   ;;  %vm277_vm1 = vcmask 523264   ;;  %v5279_v9 = vmov 0.0   ;;  %vm287_vm2 = vcmask 125952   ;;  %s5280_s21 = smov 16   ;;  %s5281_s22 = smov 48   ;;  %s6509_s2 = inlined_call_operand.vmem [shape: bf16[16,16], index: 2, kind: input, shape index: {}]   ;;  %s6510_s1 = inlined_call_operand.vmem [shape: bf16[1,128,16], index: 1, kind: input, shape index: {}]   ;;  %s6511_s3 = inlined_call_operand.vmem [shape: f32[1,16], index: 3, kind: input, shape index: {}]   ;;  %s6512_s4 = inlined_call_operand.vmem [shape: bf16[256,32], index: 4, kind: input, shape index: {}]   ;;  %s6513_s6 = inlined_call_operand.vmem [shape: bf16[288,32], index: 6, kind: input, shape index: {}]   ;;  %s6514_s5 = inlined_call_operand.vmem [shape: f32[1,32], index: 5, kind: input, shape index: {}]   ;;  %s6515_s0 = inlined_call_operand.vmem [shape: f32[58,32], index: 0, kind: input, shape index: {}]   ;;  %s6516_s8 = inlined_call_operand.vmem [shape: bf16[288,16], index: 8, kind: input, shape index: {}]   ;;  %s6517_s7 = inlined_call_operand.vmem [shape: f32[1,32], index: 7, kind: input, shape index: {}]   ;;  %s6518_s10 = inlined_call_operand.vmem [shape: bf16[16,32], index: 10, kind: input, shape index: {}]   ;;  %s6519_s9 = inlined_call_operand.vmem [shape: f32[1,16], index: 9, kind: input, shape index: {}]   ;;  %s6520_s12 = inlined_call_operand.vmem [shape: bf16[288,16], index: 12, kind: input, shape index: {}]   ;;  %s6521_s11 = inlined_call_operand.vmem [shape: f32[1,32], index: 11, kind: input, shape index: {}]   ;;  %s6522_s14 = inlined_call_operand.vmem [shape: bf16[16,32], index: 14, kind: input, shape index: {}]   ;;  %s6523_s13 = inlined_call_operand.vmem [shape: f32[1,16], index: 13, kind: input, shape index: {}]   ;;  %s6524_s16 = inlined_call_operand.vmem [shape: bf16[32,8], index: 16, kind: input, shape index: {}]   ;;  %s6525_s15 = inlined_call_operand.vmem [shape: f32[1,32], index: 15, kind: input, shape index: {}]   ;;  %s6526_s17 = inlined_call_operand.vmem [shape: f32[1,8], index: 17, kind: input, shape index: {}]   ;;  %s6527_s18 = inlined_call_operand.vmem [shape: f32[1,72,8], index: 18, kind: output, shape index: {}]  }
   0x1   :  { %6529 = sst [smem:[#allocation5_spill]] %s6509_s2  ;;  %280 = vst.msk [vmem:[#allocation2 + $0x10] sm:$0xff] %vm277_vm1, %v5279_v9  ;;  %281 = vst.msk [vmem:[#allocation2 + $0x18] sm:$0xff] %vm277_vm1, %v5279_v9  ;;  %vm289_vm3 = vcmask 130052   ;;  %v5150_v59 = vld [vmem:[%s6512_s4 + $0x78] sm:$0xff]   ;;  %v5152_v61 = vld [vmem:[%s6512_s4 + $0x70] sm:$0xff]  }
   0x2   :  { %6530 = sst [smem:[#allocation6_spill]] %s6510_s1  ;;  %278 = vst.msk [vmem:[#allocation2] sm:$0xff] %vm277_vm1, %v5279_v9  ;;  %279 = vst.msk [vmem:[#allocation2 + $0x8] sm:$0xff] %vm277_vm1, %v5279_v9  ;;  %v5151_v60 = vld [vmem:[%s6512_s4 + $0x38] sm:$0xff]   ;;  %v5153_v62 = vld [vmem:[%s6512_s4 + $0x30] sm:$0xff]   ;;  %vm297_vm4 = vcmask 257152  }
   0x3   :  { %6531 = sst [smem:[#allocation7_spill]] %s6511_s3  ;;  %282 = vst.msk [vmem:[#allocation2 + $0x20] sm:$0xff] %vm277_vm1, %v5279_v9  ;;  %283 = vst.msk [vmem:[#allocation2 + $0x28] sm:$0xff] %vm277_vm1, %v5279_v9  ;;  %s5282_s3 = smov 32   ;;  %v5154_v63 = vld [vmem:[%s6512_s4 + $0x68] sm:$0xff]   ;;  %vm299_vm5 = vcmask 261252  }
   0x4   :  { %s6532_s29 = sld [smem:[#allocation5_spill]]  ;;  %284 = vst.msk [vmem:[#allocation2 + $0x30] sm:$0xff] %vm277_vm1, %v5279_v9  ;;  %285 = vst.msk [vmem:[#allocation2 + $0x38] sm:$0xff] %vm277_vm1, %v5279_v9  ;;  %vm311_vm6 = vcmask 388352   ;;  %vm313_vm7 = vcmask 392452   ;;  %vm325_vm8 = vcmask 519552  }
   0x5   :  { %s6533_s19 = sld [smem:[#allocation6_spill]]  ;;  %286 = vst.msk [vmem:[#allocation2 + $0x40] sm:$0xff] %vm277_vm1, %v5279_v9  ;;  %vm327_vm9 = vcmask 523652   ;;  %vm415_vm10 = vcmask 519168   ;;  %s5283_s1 = smov 64   ;;  %vm423_vm11 = vcmask 516096  }
   0x6   :  { %s6534_s20 = sld [smem:[#allocation7_spill]]  ;;  %vm481_vm12 = vcmask 1043968   ;;  %vm489_vm13 = vcmask 1040896   ;;  %vm859_vm14 = vcmask 261120   ;;  %vm934_vm15 = vcmask 253952  }
   0x7   :  { %860 = vst.msk [vmem:[#allocation3] sm:$0xff] %vm859_vm14, %v5279_v9  ;;  %861 = vst.msk [vmem:[#allocation3 + $0x8] sm:$0xff] %vm859_vm14, %v5279_v9  ;;  %vm926_vm1 = vcmask 257024  }
   0x8   :  { %862 = vst.msk [vmem:[#allocation3 + $0x10] sm:$0xff] %vm859_vm14, %v5279_v9  ;;  %863 = vst.msk [vmem:[#allocation3 + $0x18] sm:$0xff] %vm859_vm14, %v5279_v9 }
   0x9   :  { %864 = vst.msk [vmem:[#allocation3 + $0x20] sm:$0xff] %vm859_vm14, %v5279_v9  ;;  %865 = vst.msk [vmem:[#allocation3 + $0x28] sm:$0xff] %vm859_vm14, %v5279_v9 }
   0xa   :  { %v5141_v0 = vld [vmem:[%s6532_s29] sm:$0xff]   ;;  %866 = vst.msk [vmem:[#allocation3 + $0x30] sm:$0xff] %vm859_vm14, %v5279_v9  ;;  %867 = vst.msk [vmem:[#allocation3 + $0x38] sm:$0xff] %vm859_vm14, %v5279_v9 }
   0xb   :  { %v5142_v1 = vld [vmem:[%s6533_s19] sm:$0xff]   ;;  %5032 = vmatprep.subr.bf16.mxu1 %v5141_v0  ;;  %v5143_v2 = vld [vmem:[%s6533_s19 + $0x8] sm:$0xff]   ;;  %v5144_v3 = vld [vmem:[%s6533_s19 + $0x10] sm:$0xff]   ;;  %868 = vst.msk [vmem:[#allocation3 + $0x40] sm:$0xff] %vm859_vm14, %v5279_v9 }
   0xc   :  { %5033 = vmatpush3.bf16.msra.mxu1 %v5141_v0  ;;  %5034 = vmatprep.mubr.msk.bf16.mxu1 %vm139_vm0, %v5142_v1  ;;  %v5145_v4 = vld [vmem:[%s6533_s19 + $0x18] sm:$0xff]   ;;  %v5146_v5 = vld [vmem:[%s6533_s19 + $0x20] sm:$0xff]   ;;  %v5147_v6 = vld [vmem:[%s6533_s19 + $0x28] sm:$0xff]  }
   0xd   :  { %v5148_v7 = vld [vmem:[%s6533_s19 + $0x30] sm:$0xff]   ;;  %v5149_v8 = vld [vmem:[%s6533_s19 + $0x38] sm:$0xff]   ;;  %v5428_v10 = vld [vmem:[%s6534_s20] ss:$0 sm:$0xff]  ;;  %4837 = vmatprep.subr.bf16.mxu1 %v5150_v59  ;;  %s5284_s20 = smov 96  }
   0xe   :  { %v5155_v0 = vld [vmem:[%s6512_s4 + $0x28] sm:$0xff]  }
   0xf   :  { %5035 = vmatmul.mubr.msk.bf16.vlgmr.msra.gmra.mxu1 %vm139_vm0, %v5143_v2 }
  0x10   :  { %5038 = vmatprep.mubr.msk.bf16.mxu1 %vm139_vm0, %v5144_v3  ;;  %4838 = vmatpush3.bf16.msra.mxu1 %v5151_v60  ;;  %v5156_v3 = vld [vmem:[%s6512_s4 + $0x60] sm:$0xff]  }
  0x11   :  { %4839 = vmatprep.subr.bf16.mxu1 %v5152_v61 }
  0x14   :  { %4840 = vmatpush3.bf16.msra.mxu1 %v5153_v62 }
  0x15   :  { %4841 = vmatprep.subr.bf16.mxu1 %v5154_v63 }
  0x17   :  { %5039 = vmatmul.mubr.msk.bf16.gmra.mxu1 %vm139_vm0, %v5145_v4  ;;  %v5157_v4 = vld [vmem:[%s6512_s4 + $0x20] sm:$0xff]  }
  0x18   :  { %5042 = vmatprep.mubr.msk.bf16.mxu1 %vm139_vm0, %v5146_v5  ;;  %4842 = vmatpush3.bf16.msra.mxu1 %v5155_v0  ;;  %v5158_v5 = vld [vmem:[%s6512_s4 + $0x58] sm:$0xff]  }
  0x19   :  { %4843 = vmatprep.subr.bf16.mxu1 %v5156_v3 }
  0x1c   :  { %4844 = vmatpush3.bf16.msra.mxu1 %v5157_v4 }
  0x1d   :  { %4845 = vmatprep.subr.bf16.mxu1 %v5158_v5 }
  0x1f   :  { %5043 = vmatmul.mubr.msk.bf16.gmra.mxu1 %vm139_vm0, %v5147_v6 }
  0x20   :  { %5046 = vmatprep.mubr.msk.bf16.mxu1 %vm139_vm0, %v5148_v7 }
  0x27   :  { %5047 = vmatmul.mubr.msk.bf16.gmra.mxu1 %vm139_vm0, %v5149_v8  ;;  %v5159_v8 = vld [vmem:[%s6512_s4 + $0x18] sm:$0xff]  }
  0x28   :  { %4846 = vmatpush3.bf16.msra.mxu1 %v5159_v8 }
  0xcf   :  { %v5036_v11 = vpop.f32.mrf.mxu1 }
  0xd0   :  { %v207_v12 = vadd.f32 %v5036_v11, %v5428_v10 }
  0xd1   :  { %v198_v13 = vpop.f32.mrf.mxu1 }
  0xd2   :  { %v263_v14 = vmax.f32 %v207_v12, 0.0  ;;  %v199_v15 = vadd.f32 %v5428_v10, %v198_v13 }
  0xd3   :  { %v5037_v16 = vpop.f32.mrf.mxu1 }
  0xd4   :  { %v261_v17 = vmax.f32 %v199_v15, 0.0  ;;  %v210_v18 = vadd.f32 %v5037_v16, %v5428_v10  ;;  %294 = vrot.lane.b32.xlu0 %v263_v14, %s5280_s21  ;;  %v5160_v14 = vld [vmem:[%s6512_s4 + $0x50] sm:$0xff]  }
  0xd5   :  { %v201_v19 = vpop.f32.mrf.mxu1  ;;  %4847 = vmatprep.subr.bf16.mxu1 %v5160_v14 }
  0xd6   :  { %v264_v20 = vmax.f32 %v210_v18, 0.0  ;;  %v202_v21 = vadd.f32 %v5428_v10, %v201_v19  ;;  %288 = vst.msk [vmem:[#allocation2 + $0x7] sm:$0xf] %vm287_vm2, %v261_v17 }
  0xd7   :  { %290 = vst.msk [vmem:[#allocation2 + $0x9] sm:$0xf0] %vm289_vm3, %v261_v17  ;;  %v5040_v22 = vpop.f32.mrf.mxu1  ;;  %v5161_v17 = vld [vmem:[%s6512_s4 + $0x10] sm:$0xff]  }
  0xd8   :  { %v262_v23 = vmax.f32 %v202_v21, 0.0  ;;  %v223_v24 = vadd.f32 %v5040_v22, %v5428_v10  ;;  %302 = vrot.lane.b32.xlu0 %v264_v20, %s5280_s21  ;;  %4848 = vmatpush3.bf16.msra.mxu1 %v5161_v17  ;;  %v5162_v22 = vld [vmem:[%s6512_s4 + $0x48] sm:$0xff]  }
  0xd9   :  { %v214_v25 = vpop.f32.mrf.mxu1  ;;  %4849 = vmatprep.subr.bf16.mxu1 %v5162_v22 }
  0xda   :  { %291 = vst.msk [vmem:[#allocation2 + $0x13] sm:$0xf] %vm287_vm2, %v262_v23  ;;  %v267_v26 = vmax.f32 %v223_v24, 0.0  ;;  %v215_v27 = vadd.f32 %v5428_v10, %v214_v25  ;;  %v5163_v24 = vld [vmem:[%s6512_s4 + $0x8] sm:$0xff]  }
  0xdb   :  { %292 = vst.msk [vmem:[#allocation2 + $0x15] sm:$0xf0] %vm289_vm3, %v262_v23  ;;  %v5041_v28 = vpop.f32.mrf.mxu1 }
  0xdc   :  { %v265_v29 = vmax.f32 %v215_v27, 0.0  ;;  %322 = vrot.lane.b32.xlu0 %v267_v26, %s5281_s22  ;;  %v226_v33 = vadd.f32 %v5041_v28, %v5428_v10  ;;  %4850 = vmatpush3.bf16.msra.mxu1 %v5163_v24 }
  0xdd   :  { %v217_v30 = vpop.f32.mrf.mxu1 }
  0xde   :  { %v218_v31 = vadd.f32 %v5428_v10, %v217_v30  ;;  %308 = vrot.lane.b32.xlu1 %v265_v29, %s5282_s3  ;;  %v268_v38 = vmax.f32 %v226_v33, 0.0 }
  0xdf   :  { %v5044_v32 = vpop.f32.mrf.mxu1 }
  0xe0   :  { %v266_v34 = vmax.f32 %v218_v31, 0.0  ;;  %v239_v50 = vadd.f32 %v5044_v32, %v5428_v10 }
  0xe1   :  { %v230_v35 = vpop.f32.mrf.mxu1 }
  0xe2   :  { %v231_v36 = vadd.f32 %v5428_v10, %v230_v35  ;;  %316 = vrot.lane.b32.xlu1 %v266_v34, %s5282_s3  ;;  %v271_v56 = vmax.f32 %v239_v50, 0.0 }
  0xe3   :  { %v5045_v37 = vpop.f32.mrf.mxu1 }
  0xe4   :  { %v269_v39 = vmax.f32 %v231_v36, 0.0  ;;  %v242_v43 = vadd.f32 %v5045_v37, %v5428_v10 }
  0xe5   :  { %v233_v40 = vpop.f32.mrf.mxu1 }
  0xe6   :  { %335 = vst.msk [vmem:[#allocation2 + $0x2b] sm:$0xf] %vm287_vm2, %v269_v39  ;;  %v234_v41 = vadd.f32 %v5428_v10, %v233_v40  ;;  %330 = vrot.lane.b32.xlu1 %v268_v38, %s5281_s22  ;;  %v272_v51 = vmax.f32 %v242_v43, 0.0 }
  0xe7   :  { %336 = vst.msk [vmem:[#allocation2 + $0x2d] sm:$0xf0] %vm289_vm3, %v269_v39  ;;  %v5048_v42 = vpop.f32.mrf.mxu1  ;;  %v5164_v39 = vld [vmem:[%s6512_s4 + $0x40] sm:$0xff]  }
  0xe8   :  { %v270_v44 = vmax.f32 %v234_v41, 0.0  ;;  %v255_v45 = vadd.f32 %v5048_v42, %v5428_v10  ;;  %v5165_v42 = vld [vmem:[%s6512_s4] sm:$0xff]   ;;  %4851 = vmatprep.subr.bf16.mxu1 %v5164_v39 }
  0xe9   :  { %v246_v46 = vpop.f32.mrf.mxu1  ;;  %4852 = vmatpush3.bf16.msra.mxu1 %v5165_v42 }
  0xea   :  { %337 = vst.msk [vmem:[#allocation2 + $0x37] sm:$0xf] %vm287_vm2, %v270_v44  ;;  %v275_v47 = vmax.f32 %v255_v45, 0.0  ;;  %v247_v48 = vadd.f32 %v5428_v10, %v246_v46  ;;  %vm884_vm2 = vcmask 254976  }
  0xeb   :  { %338 = vst.msk [vmem:[#allocation2 + $0x39] sm:$0xf0] %vm289_vm3, %v270_v44  ;;  %v5049_v49 = vpop.f32.mrf.mxu1  ;;  %vm992_vm3 = vcmask 519424  }
  0xec   :  { %v273_v52 = vmax.f32 %v247_v48, 0.0  ;;  %364 = vrot.lane.b32.xlu1 %v275_v47, %s5281_s22  ;;  %v258_v53 = vadd.f32 %v5049_v49, %v5428_v10 }
  0xed   :  { %v249_v54 = vpop.f32.mrf.mxu1 }
  0xee   :  { %352 = vrot.lane.b32.xlu0 %v273_v52, %s5282_s3  ;;  %v250_v55 = vadd.f32 %v5428_v10, %v249_v54  ;;  %v276_v57 = vmax.f32 %v258_v53, 0.0 }
  0xf0   :  { %346 = vrot.lane.b32.xlu1 %v272_v51, %s5280_s21  ;;  %v274_v58 = vmax.f32 %v250_v55, 0.0 }
  0xf2   :  { %340 = vrot.lane.b32.xlu0 %v271_v56, %s5280_s21 }
  0xf4   :  { %370 = vrot.lane.b32.xlu1 %v276_v57, %s5281_s22 }
  0xf6   :  { %358 = vrot.lane.b32.xlu0 %v274_v58, %s5282_s3 }
 0x146   :  { %v295_v1 = vpop.permute.xlu0 %294 }
 0x147   :  { %298 = vst.msk [vmem:[#allocation2 + $0x6] sm:$0xf] %vm297_vm4, %v295_v1 }
 0x148   :  { %300 = vst.msk [vmem:[#allocation2 + $0x8] sm:$0xf0] %vm299_vm5, %v295_v1 }
 0x14a   :  { %v303_v2 = vpop.permute.xlu0 %302 }
 0x14b   :  { %305 = vst.msk [vmem:[#allocation2 + $0x12] sm:$0xf] %vm297_vm4, %v303_v2 }
 0x14c   :  { %306 = vst.msk [vmem:[#allocation2 + $0x14] sm:$0xf0] %vm299_vm5, %v303_v2 }
 0x14e   :  { %v323_v7 = vpop.permute.xlu0 %322 }
 0x150   :  { %v309_v6 = vpop.permute.xlu1 %308 }
 0x151   :  { %312 = vst.msk [vmem:[#allocation2 + $0x1] sm:$0xf] %vm311_vm6, %v309_v6 }
 0x152   :  { %314 = vst.msk [vmem:[#allocation2 + $0x3] sm:$0xf0] %vm313_vm7, %v309_v6 }
 0x153   :  { %326 = vst.msk [vmem:[#allocation2] sm:$0xf] %vm325_vm8, %v323_v7  ;;  %v378_v10 = vld [vmem:[#allocation2 + $0x18] sm:$0xff] }
 0x154   :  { %328 = vst.msk [vmem:[#allocation2 + $0x2] sm:$0xf0] %vm327_vm9, %v323_v7  ;;  %v4583_v11 = vpack.c.bf16 %v378_v10, %v378_v10  ;;  %v317_v12 = vpop.permute.xlu1 %316  ;;  %v541_v28 = vld [vmem:[#allocation2 + $0x17] sm:$0xff] }
 0x155   :  { %319 = vst.msk [vmem:[#allocation2 + $0xd] sm:$0xf] %vm311_vm6, %v317_v12  ;;  %v4606_v45 = vpack.c.bf16 %v541_v28, %v541_v28  ;;  %v428_v46 = vld [vmem:[#allocation2 + $0x19] sm:$0xff] }
 0x156   :  { %320 = vst.msk [vmem:[#allocation2 + $0xf] sm:$0xf0] %vm313_vm7, %v317_v12  ;;  %v4591_v50 = vpack.c.bf16 %v428_v46, %v428_v46 }
 0x157   :  { %419 = vst.msk [vmem:[#allocation4 + $0x24] sm:$0xf] %vm415_vm10, %v4583_v11 }
 0x158   :  { %v331_v13 = vpop.permute.xlu1 %330 }
 0x159   :  { %333 = vst.msk [vmem:[#allocation2 + $0xc] sm:$0xf] %vm325_vm8, %v331_v13 }
 0x15a   :  { %334 = vst.msk [vmem:[#allocation2 + $0xe] sm:$0xf0] %vm327_vm9, %v331_v13 }
 0x15b   :  { %v425_v15 = vld [vmem:[#allocation2 + $0x1] sm:$0xff] }
 0x15c   :  { %v375_v16 = vld [vmem:[#allocation2] sm:$0xff]  ;;  %v4588_v18 = vpack.c.bf16 %v425_v15, %v425_v15 }
 0x15d   :  { %v4580_v19 = vpack.c.bf16 %v375_v16, %v375_v16  ;;  %v493_v20 = vld [vmem:[#allocation2 + $0x16] sm:$0xff] }
 0x15e   :  { %457 = vrot.lane.b32.xlu0 %v4588_v18, %s5283_s1  ;;  %v4598_v21 = vpack.c.bf16 %v493_v20, %v493_v20  ;;  %v365_v23 = vpop.permute.xlu1 %364 }
 0x15f   :  { %416 = vst.msk [vmem:[#allocation4] sm:$0xf] %vm415_vm10, %v4580_v19 }
 0x160   :  { %533 = vst.msk [vmem:[#allocation4 + $0x1c] sm:$0xf] %vm415_vm10, %v4598_v21  ;;  %v353_v25 = vpop.permute.xlu0 %352  ;;  %v426_v26 = vld [vmem:[#allocation2 + $0x9] sm:$0xff] }
 0x161   :  { %v539_v27 = vld [vmem:[#allocation2 + $0x7] sm:$0xff]  ;;  %355 = vst.msk [vmem:[#allocation2 + $0x25] sm:$0xf] %vm311_vm6, %v353_v25  ;;  %v4589_v29 = vpack.c.bf16 %v426_v26, %v426_v26  ;;  %v540_v31 = vld [vmem:[#allocation2 + $0xf] sm:$0xff] }
 0x162   :  { %v4604_v30 = vpack.c.bf16 %v539_v27, %v539_v27  ;;  %v376_v32 = vld [vmem:[#allocation2 + $0x8] sm:$0xff]  ;;  %367 = vst.msk [vmem:[#allocation2 + $0x24] sm:$0xf] %vm325_vm8, %v365_v23  ;;  %v347_v34 = vpop.permute.xlu1 %346  ;;  %v377_v38 = vld [vmem:[#allocation2 + $0x10] sm:$0xff]  ;;  %v4605_v44 = vpack.c.bf16 %v540_v31, %v540_v31 }
 0x163   :  { %v491_v33 = vld [vmem:[#allocation2 + $0x6] sm:$0xff]  ;;  %v4581_v35 = vpack.c.bf16 %v376_v32, %v376_v32  ;;  %v492_v37 = vld [vmem:[#allocation2 + $0xe] sm:$0xff]  ;;  %349 = vst.msk [vmem:[#allocation2 + $0x36] sm:$0xf] %vm297_vm4, %v347_v34  ;;  %459 = vrot.lane.b32.xlu1 %v4589_v29, %s5283_s1  ;;  %v4582_v41 = vpack.c.bf16 %v377_v38, %v377_v38 }
 0x164   :  { %v4596_v36 = vpack.c.bf16 %v491_v33, %v491_v33  ;;  %350 = vst.msk [vmem:[#allocation2 + $0x38] sm:$0xf0] %vm299_vm5, %v347_v34  ;;  %571 = vrot.lane.b32.xlu0 %v4604_v30, %s5283_s1  ;;  %v4597_v40 = vpack.c.bf16 %v492_v37, %v492_v37  ;;  %v341_v43 = vpop.permute.xlu0 %340  ;;  %v427_v47 = vld [vmem:[#allocation2 + $0x11] sm:$0xff] }
 0x165   :  { %417 = vst.msk [vmem:[#allocation4 + $0xc] sm:$0xf] %vm415_vm10, %v4581_v35  ;;  %418 = vst.msk [vmem:[#allocation4 + $0x18] sm:$0xf] %vm415_vm10, %v4582_v41  ;;  %v4590_v51 = vpack.c.bf16 %v427_v47, %v427_v47 }
 0x166   :  { %531 = vst.msk [vmem:[#allocation4 + $0x4] sm:$0xf] %vm415_vm10, %v4596_v36  ;;  %532 = vst.msk [vmem:[#allocation4 + $0x10] sm:$0xf] %vm415_vm10, %v4597_v40  ;;  %v371_v48 = vpop.permute.xlu1 %370 }
 0x167   :  { %343 = vst.msk [vmem:[#allocation2 + $0x2a] sm:$0xf] %vm297_vm4, %v341_v43  ;;  %573 = vrot.lane.b32.xlu1 %v4605_v44, %s5283_s1  ;;  %vm1058_vm4 = vcmask 781824  }
 0x168   :  { %344 = vst.msk [vmem:[#allocation2 + $0x2c] sm:$0xf0] %vm299_vm5, %v341_v43  ;;  %575 = vrot.lane.b32.xlu0 %v4606_v45, %s5283_s1  ;;  %v359_v49 = vpop.permute.xlu0 %358  ;;  %vm1124_vm5 = vcmask 1044224  }
 0x169   :  { %356 = vst.msk [vmem:[#allocation2 + $0x27] sm:$0xf0] %vm313_vm7, %v353_v25  ;;  %362 = vst.msk [vmem:[#allocation2 + $0x33] sm:$0xf0] %vm313_vm7, %v359_v49  ;;  %v542_v52 = vld [vmem:[#allocation2 + $0x1f] sm:$0xff]  ;;  %vm1066_vm7 = vcmask 778752  }
 0x16a   :  { %368 = vst.msk [vmem:[#allocation2 + $0x26] sm:$0xf0] %vm327_vm9, %v365_v23  ;;  %v429_v53 = vld [vmem:[#allocation2 + $0x21] sm:$0xff]  ;;  %374 = vst.msk [vmem:[#allocation2 + $0x32] sm:$0xf0] %vm327_vm9, %v371_v48  ;;  %v4607_v55 = vpack.c.bf16 %v542_v52, %v542_v52  ;;  %vm5285_vm9 = vmmov 0  }
 0x16b   :  { %361 = vst.msk [vmem:[#allocation2 + $0x31] sm:$0xf] %vm311_vm6, %v359_v49  ;;  %v494_v54 = vld [vmem:[#allocation2 + $0x1e] sm:$0xff]  ;;  %463 = vrot.lane.b32.xlu1 %v4591_v50, %s5283_s1  ;;  %v4592_v59 = vpack.c.bf16 %v429_v53, %v429_v53  ;;  %vm1000_vm6 = vcmask 516352  }
 0x16c   :  { %373 = vst.msk [vmem:[#allocation2 + $0x30] sm:$0xf] %vm325_vm8, %v371_v48  ;;  %v4599_v56 = vpack.c.bf16 %v494_v54, %v494_v54  ;;  %v379_v57 = vld [vmem:[#allocation2 + $0x20] sm:$0xff]  ;;  %v498_v58 = vld [vmem:[#allocation2 + $0x3e] sm:$0x3]  ;;  %461 = vrot.lane.b32.xlu0 %v4590_v51, %s5283_s1  ;;  %vm1132_vm8 = vcmask 1041152  }
 0x16d   :  { %v4584_v60 = vpack.c.bf16 %v379_v57, %v379_v57  ;;  %v4603_v61 = vpack.c.bf16 %v498_v58, %v498_v58  ;;  %v546_v23 = vld [vmem:[#allocation2 + $0x3f] sm:$0x3]  ;;  %v1253_v57 = vld [vmem:[#allocation3 + $0x44] sm:$0x3] }
 0x16e   :  { %534 = vst.msk [vmem:[#allocation4 + $0x28] sm:$0xf] %vm415_vm10, %v4599_v56  ;;  %v4611_v24 = vpack.c.bf16 %v546_v23, %v546_v23  ;;  %v4667_v58 = vpack.c.bf16 %v1253_v57, %v1253_v57  ;;  %v62_v23 = vld [vmem:[%s6515_s0 + $0x10] sm:$0xff] }
 0x16f   :  { %420 = vst.msk [vmem:[#allocation4 + $0x30] sm:$0xf] %vm415_vm10, %v4584_v60  ;;  %577 = vrot.lane.b32.xlu1 %v4607_v55, %s5283_s1  ;;  %v5168_v60 = vld [vmem:[%s6513_s6 + $0x80] sm:$0xff]  }
 0x170   :  { %538 = vst.msk [vmem:[#allocation4 + $0x58] sm:$0x1] %vm423_vm11, %v4603_v61  ;;  %465 = vrot.lane.b32.xlu0 %v4592_v59, %s5283_s1  ;;  %v5167_v59 = vld [vmem:[%s6513_s6 + $0x88] sm:$0xff]  }
 0x171   :  { %v543_v62 = vld [vmem:[#allocation2 + $0x27] sm:$0xff]  ;;  %v497_v12 = vld [vmem:[#allocation2 + $0x36] sm:$0xff]  ;;  %5050 = vmatprep.subr.bf16.mxu1 %v5167_v59 }
 0x172   :  { %v495_v63 = vld [vmem:[#allocation2 + $0x26] sm:$0xff]  ;;  %v4608_v1 = vpack.c.bf16 %v543_v62, %v543_v62  ;;  %v382_v13 = vld [vmem:[#allocation2 + $0x38] sm:$0x3]  ;;  %v4602_v15 = vpack.c.bf16 %v497_v12, %v497_v12  ;;  %v1381_v61 = vld [vmem:[#allocation3 + $0x46] sm:$0x3] }
 0x173   :  { %v380_v0 = vld [vmem:[#allocation2 + $0x28] sm:$0xff]  ;;  %v4600_v2 = vpack.c.bf16 %v495_v63, %v495_v63  ;;  %v431_v6 = vld [vmem:[#allocation2 + $0x31] sm:$0xff]  ;;  %v4587_v16 = vpack.c.bf16 %v382_v13, %v382_v13  ;;  %v432_v20 = vld [vmem:[#allocation2 + $0x39] sm:$0x3]  ;;  %v4683_v62 = vpack.c.bf16 %v1381_v61, %v1381_v61 }
 0x174   :  { %v4585_v3 = vpack.c.bf16 %v380_v0, %v380_v0  ;;  %v430_v4 = vld [vmem:[#allocation2 + $0x29] sm:$0xff]  ;;  %579 = vrot.lane.b32.xlu0 %v4608_v1, %s5283_s1  ;;  %v4594_v17 = vpack.c.bf16 %v431_v6, %v431_v6  ;;  %v545_v19 = vld [vmem:[#allocation2 + $0x37] sm:$0xff]  ;;  %537 = vst.msk [vmem:[#allocation4 + $0x4c] sm:$0xf] %vm415_vm10, %v4602_v15  ;;  %v4595_v22 = vpack.c.bf16 %v432_v20, %v432_v20  ;;  %v5613_v0 = vld [vmem:[%s6514_s5] ss:$0 sm:$0xff] }
 0x175   :  { %535 = vst.msk [vmem:[#allocation4 + $0x34] sm:$0xf] %vm415_vm10, %v4600_v2  ;;  %v4593_v5 = vpack.c.bf16 %v430_v4, %v430_v4  ;;  %v544_v7 = vld [vmem:[#allocation2 + $0x2f] sm:$0xff]  ;;  %v4610_v21 = vpack.c.bf16 %v545_v19, %v545_v19  ;;  %v5173_v19 = vld [vmem:[%s6513_s6 + $0x38] sm:$0xff]  }
 0x176   :  { %421 = vst.msk [vmem:[#allocation4 + $0x3c] sm:$0xf] %vm415_vm10, %v4585_v3  ;;  %v381_v8 = vld [vmem:[#allocation2 + $0x30] sm:$0xff]  ;;  %v4609_v18 = vpack.c.bf16 %v544_v7, %v544_v7 }
 0x177   :  { %v4586_v10 = vpack.c.bf16 %v381_v8, %v381_v8  ;;  %v496_v11 = vld [vmem:[#allocation2 + $0x2e] sm:$0xff]  ;;  %467 = vrot.lane.b32.xlu1 %v4593_v5, %s5283_s1  ;;  %424 = vst.msk [vmem:[#allocation4 + $0x54] sm:$0x1] %vm423_vm11, %v4587_v16  ;;  %v5619_v5 = vld [vmem:[%s6515_s0] sm:$0xff] }
 0x178   :  { %v4601_v14 = vpack.c.bf16 %v496_v11, %v496_v11  ;;  %469 = vrot.lane.b32.xlu0 %v4594_v17, %s5283_s1  ;;  %1421 = vst.msk [vmem:[#allocation4 + $0x5c] sm:$0x1] %vm934_vm15, %v4683_v62  ;;  %v5172_v11 = vld [vmem:[%s6513_s6 + $0x78] sm:$0xff]   ;;  %v5174_v20 = vld [vmem:[%s6513_s6 + $0x70] sm:$0xff]   ;;  %v5179_v62 = vld [vmem:[%s6513_s6 + $0x20] sm:$0xff]  }
 0x179   :  { %422 = vst.msk [vmem:[#allocation4 + $0x48] sm:$0xf] %vm415_vm10, %v4586_v10  ;;  %4877 = vmatprep.subr.bf16.mxu0 %v5172_v11 }
 0x17a   :  { %536 = vst.msk [vmem:[#allocation4 + $0x40] sm:$0xf] %vm415_vm10, %v4601_v14  ;;  %v5629_v14 = vld [vmem:[%s6515_s0 + $0x8] sm:$0xff]  ;;  %4878 = vmatpush3.bf16.msra.mxu0 %v5173_v19 }
 0x17b   :  { %581 = vrot.lane.b32.xlu1 %v4609_v18, %s5283_s1  ;;  %4879 = vmatprep.subr.bf16.mxu0 %v5174_v20  ;;  %v5181_v20 = vld [vmem:[%s6513_s6 + $0x18] sm:$0xff]  }
 0x17c   :  { %583 = vrot.lane.b32.xlu0 %v4610_v21, %s5283_s1 }
 0x17f   :  { %471 = vrot.lane.b32.xlu1 %v4595_v22, %s5283_s1 }
 0x183   :  { %585 = vrot.lane.b32.xlu1 %v4611_v24, %s5283_s1 }
 0x187   :  { %1292 = vrot.lane.b32.xlu1 %v4667_v58, %s5283_s1 }
 0x1d0   :  { %v458_v25 = vpop.permute.xlu0 %457 }
 0x1d1   :  { %482 = vst.msk [vmem:[#allocation4] sm:$0xf] %vm481_vm12, %v458_v25 }
 0x1d5   :  { %v460_v26 = vpop.permute.xlu1 %459 }
 0x1d6   :  { %v572_v27 = vpop.permute.xlu0 %571  ;;  %483 = vst.msk [vmem:[#allocation4 + $0xc] sm:$0xf] %vm481_vm12, %v460_v26 }
 0x1d7   :  { %595 = vst.msk [vmem:[#allocation4 + $0x4] sm:$0xf] %vm481_vm12, %v572_v27  ;;  %v5175_v27 = vld [vmem:[%s6513_s6 + $0x30] sm:$0xff]  }
 0x1d8   :  { %4880 = vmatpush3.bf16.msra.mxu0 %v5175_v27 }
 0x1d9   :  { %v574_v28 = vpop.permute.xlu1 %573 }
 0x1da   :  { %v576_v29 = vpop.permute.xlu0 %575  ;;  %596 = vst.msk [vmem:[#allocation4 + $0x10] sm:$0xf] %vm481_vm12, %v574_v28  ;;  %v5176_v28 = vld [vmem:[%s6513_s6 + $0x68] sm:$0xff]  }
 0x1db   :  { %597 = vst.msk [vmem:[#allocation4 + $0x1c] sm:$0xf] %vm481_vm12, %v576_v29  ;;  %4881 = vmatprep.subr.bf16.mxu0 %v5176_v28 }
 0x1dd   :  { %v464_v30 = vpop.permute.xlu1 %463 }
 0x1de   :  { %v462_v31 = vpop.permute.xlu0 %461  ;;  %485 = vst.msk [vmem:[#allocation4 + $0x24] sm:$0xf] %vm481_vm12, %v464_v30  ;;  %v603_v32 = vld [vmem:[#allocation4] sm:$0xff] }
 0x1df   :  { %484 = vst.msk [vmem:[#allocation4 + $0x18] sm:$0xf] %vm481_vm12, %v462_v31 }
 0x1e1   :  { %v604_v33 = vld [vmem:[#allocation4 + $0xc] sm:$0xff]  ;;  %v578_v34 = vpop.permute.xlu1 %577 }
 0x1e2   :  { %v466_v35 = vpop.permute.xlu0 %465  ;;  %598 = vst.msk [vmem:[#allocation4 + $0x28] sm:$0xf] %vm481_vm12, %v578_v34  ;;  %v4216_v36 = vcombine.high %v603_v32, %v604_v33  ;;  %v4215_v37 = vcombine.low %v603_v32, %v604_v33  ;;  %v63_v32 = vld [vmem:[%s6515_s0 + $0x18] sm:$0xff] }
 0x1e3   :  { %486 = vst.msk [vmem:[#allocation4 + $0x30] sm:$0xf] %vm481_vm12, %v466_v35 }
 0x1e4   :  { %818 = vmatprep.mubr.bf16.mxu1 %v4216_v36 }
 0x1e5   :  { %819 = vmatmul.mubr.bf16.vlgmr.msra.gmra.mxu1 %v4215_v37 }
 0x1e6   :  { %v580_v38 = vpop.permute.xlu0 %579  ;;  %v605_v40 = vld [vmem:[#allocation4 + $0x18] sm:$0xff]  ;;  %5051 = vmatpush3.bf16.msra.mxu1 %v5167_v59 }
 0x1e7   :  { %599 = vst.msk [vmem:[#allocation4 + $0x34] sm:$0xf] %vm481_vm12, %v580_v38  ;;  %5052 = vmatprep.subr.bf16.mxu1 %v5168_v60 }
 0x1e9   :  { %v468_v39 = vpop.permute.xlu1 %467  ;;  %v606_v41 = vld [vmem:[#allocation4 + $0x24] sm:$0xff] }
 0x1ea   :  { %487 = vst.msk [vmem:[#allocation4 + $0x3c] sm:$0xf] %vm481_vm12, %v468_v39  ;;  %v470_v42 = vpop.permute.xlu0 %469  ;;  %v4218_v44 = vcombine.high %v605_v40, %v606_v41  ;;  %v4217_v45 = vcombine.low %v605_v40, %v606_v41  ;;  %5053 = vmatpush3.bf16.msra.mxu1 %v5168_v60 }
 0x1eb   :  { %488 = vst.msk [vmem:[#allocation4 + $0x48] sm:$0xf] %vm481_vm12, %v470_v42 }
 0x1ec   :  { %826 = vmatprep.mubr.bf16.mxu1 %v4218_v44  ;;  %v5178_v44 = vld [vmem:[%s6513_s6 + $0x60] sm:$0xff]  }
 0x1ed   :  { %v582_v43 = vpop.permute.xlu1 %581  ;;  %827 = vmatmul.mubr.bf16.gmra.mxu1 %v4217_v45 }
 0x1ee   :  { %600 = vst.msk [vmem:[#allocation4 + $0x40] sm:$0xf] %vm481_vm12, %v582_v43  ;;  %v584_v46 = vpop.permute.xlu0 %583  ;;  %v607_v48 = vld [vmem:[#allocation4 + $0x30] sm:$0xff]  ;;  %v5177_v43 = vld [vmem:[%s6513_s6 + $0x28] sm:$0xff]  }
 0x1ef   :  { %601 = vst.msk [vmem:[#allocation4 + $0x4c] sm:$0xf] %vm481_vm12, %v584_v46  ;;  %4882 = vmatpush3.bf16.msra.mxu0 %v5177_v43 }
 0x1f0   :  { %4883 = vmatprep.subr.bf16.mxu0 %v5178_v44 }
 0x1f1   :  { %v472_v47 = vpop.permute.xlu1 %471 }
 0x1f2   :  { %490 = vst.msk [vmem:[#allocation4 + $0x54] sm:$0x1] %vm489_vm13, %v472_v47 }
 0x1f3   :  { %4884 = vmatpush3.bf16.msra.mxu0 %v5179_v62  ;;  %v5187_v62 = vld [vmem:[%s6513_s6] sm:$0xff]  }
 0x1f5   :  { %v608_v49 = vld [vmem:[#allocation4 + $0x3c] sm:$0xff]  ;;  %v586_v50 = vpop.permute.xlu1 %585 }
 0x1f6   :  { %602 = vst.msk [vmem:[#allocation4 + $0x58] sm:$0x1] %vm489_vm13, %v586_v50  ;;  %v4220_v51 = vcombine.high %v607_v48, %v608_v49  ;;  %v4219_v52 = vcombine.low %v607_v48, %v608_v49  ;;  %v609_v53 = vld [vmem:[#allocation4 + $0x48] sm:$0xff]  ;;  %v64_v48 = vld [vmem:[%s6515_s0 + $0x20] sm:$0xff] }
 0x1f8   :  { %834 = vmatprep.mubr.bf16.mxu1 %v4220_v51 }
 0x1f9   :  { %835 = vmatmul.mubr.bf16.gmra.mxu1 %v4219_v52 }
 0x1fd   :  { %v610_v54 = vld [vmem:[#allocation4 + $0x54] sm:$0x11] }
 0x1fe   :  { %v4222_v55 = vcombine.high %v609_v53, %v610_v54  ;;  %v4221_v56 = vcombine.low %v609_v53, %v610_v54 }
 0x200   :  { %842 = vmatprep.mubr.bf16.mxu1 %v4222_v55 }
 0x201   :  { %843 = vmatmul.mubr.bf16.gmra.mxu1 %v4221_v56 }
 0x2a5   :  { %v4853_v63 = vpop.f32.mrf.mxu1 }
 0x2a7   :  { %v4854_v1 = vpop.f32.mrf.mxu1 }
 0x2a8   :  { %v4855_v2 = vadd.f32 %v4854_v1, %v4853_v63  ;;  %v5180_v63 = vld [vmem:[%s6513_s6 + $0x58] sm:$0xff]  }
 0x2a9   :  { %v4856_v3 = vpop.f32.mrf.mxu1  ;;  %4885 = vmatprep.subr.bf16.mxu0 %v5180_v63 }
 0x2aa   :  { %v821_v4 = vadd.f32 %v4855_v2, %v5613_v0  ;;  %4886 = vmatpush3.bf16.msra.mxu0 %v5181_v20  ;;  %v2358_v20 = vld [vmem:[#allocation3 + $0x46] sm:$0x3] }
 0x2ab   :  { %v4857_v6 = vpop.f32.mrf.mxu1 }
 0x2ac   :  { %v851_v7 = vmax.f32 %v821_v4, 0.0  ;;  %v4858_v8 = vadd.f32 %v4857_v6, %v4856_v3 }
 0x2ad   :  { %v4859_v10 = vpop.f32.mrf.mxu1 }
 0x2ae   :  { %v869_v12 = vmul.f32 %v851_v7, %v5619_v5  ;;  %v824_v13 = vadd.f32 %v4858_v8, %v5613_v0  ;;  %v65_v8 = vld [vmem:[%s6515_s0 + $0x28] sm:$0xff] }
 0x2af   :  { %v4860_v15 = vpop.f32.mrf.mxu1 }
 0x2b0   :  { %877 = vst.msk [vmem:[#allocation3 + $0x7] sm:$0xff] %vm859_vm14, %v869_v12  ;;  %v852_v16 = vmax.f32 %v824_v13, 0.0  ;;  %v4861_v17 = vadd.f32 %v4860_v15, %v4859_v10 }
 0x2b1   :  { %v4862_v18 = vpop.f32.mrf.mxu1 }
 0x2b2   :  { %v870_v21 = vmul.f32 %v852_v16, %v5629_v14  ;;  %v829_v22 = vadd.f32 %v4861_v17, %v5613_v0 }
 0x2b3   :  { %v4863_v24 = vpop.f32.mrf.mxu1 }
 0x2b4   :  { %878 = vst.msk [vmem:[#allocation3 + $0xf] sm:$0xff] %vm859_vm14, %v870_v21  ;;  %v853_v25 = vmax.f32 %v829_v22, 0.0  ;;  %v4864_v26 = vadd.f32 %v4863_v24, %v4862_v18 }
 0x2b6   :  { %v871_v29 = vmul.f32 %v853_v25, %v62_v23  ;;  %v832_v30 = vadd.f32 %v4864_v26, %v5613_v0  ;;  %v66_v25 = vld [vmem:[%s6515_s0 + $0x30] sm:$0xff] }
 0x2b7   :  { %v936_v33 = vld [vmem:[#allocation3 + $0x1] sm:$0xff] }
 0x2b8   :  { %879 = vst.msk [vmem:[#allocation3 + $0x17] sm:$0xff] %vm859_vm14, %v871_v29  ;;  %v854_v34 = vmax.f32 %v832_v30, 0.0  ;;  %v4620_v36 = vpack.c.bf16 %v936_v33, %v936_v33  ;;  %v886_v37 = vld [vmem:[#allocation3] sm:$0xff]  ;;  %v5182_v33 = vld [vmem:[%s6513_s6 + $0x50] sm:$0xff]  }
 0x2b9   :  { %v4865_v31 = vpop.f32.mrf.mxu1  ;;  %v1134_v38 = vld [vmem:[#allocation3 + $0x7] sm:$0xff]  ;;  %v4612_v41 = vpack.c.bf16 %v886_v37, %v886_v37  ;;  %4887 = vmatprep.subr.bf16.mxu0 %v5182_v33 }
 0x2ba   :  { %v1002_v40 = vld [vmem:[#allocation3 + $0x2] sm:$0xff]  ;;  %v4644_v42 = vpack.c.bf16 %v1134_v38, %v1134_v38  ;;  %v872_v45 = vmul.f32 %v854_v34, %v63_v32  ;;  %968 = vrot.lane.b32.xlu0 %v4620_v36, %s5282_s3  ;;  %v67_v38 = vld [vmem:[%s6515_s0 + $0x38] sm:$0x3] }
 0x2bb   :  { %v4866_v35 = vpop.f32.mrf.mxu1  ;;  %v1374_v47 = vld [vmem:[#allocation3 + $0xe] sm:$0xff]  ;;  %927 = vst.msk [vmem:[#allocation4] sm:$0xf] %vm926_vm1, %v4612_v41  ;;  %v4628_v53 = vpack.c.bf16 %v1002_v40, %v1002_v40  ;;  %v1068_v55 = vld [vmem:[#allocation3 + $0x6] sm:$0xff] }
 0x2bc   :  { %v4867_v39 = vadd.f32 %v4866_v35, %v4865_v31  ;;  %v937_v50 = vld [vmem:[#allocation3 + $0x9] sm:$0xff]  ;;  %1174 = vst.msk [vmem:[#allocation4 + $0x4] sm:$0xf] %vm926_vm1, %v4644_v42  ;;  %v4637_v56 = vpack.c.bf16 %v1374_v47, %v1374_v47  ;;  %v4636_v12 = vpack.c.bf16 %v1068_v55, %v1068_v55 }
 0x2bd   :  { %v4868_v46 = vpop.f32.mrf.mxu1  ;;  %880 = vst.msk [vmem:[#allocation3 + $0x1f] sm:$0xff] %vm859_vm14, %v872_v45  ;;  %v4621_v52 = vpack.c.bf16 %v937_v50, %v937_v50  ;;  %v1003_v54 = vld [vmem:[#allocation3 + $0xa] sm:$0xff]  ;;  %v5185_v50 = vld [vmem:[%s6513_s6 + $0x8] sm:$0xff]  }
 0x2be   :  { %v837_v49 = vadd.f32 %v4867_v39, %v5613_v0  ;;  %v1182_v57 = vld [vmem:[#allocation3 + $0x8] sm:$0xff]  ;;  %1034 = vrot.lane.b32.xlu0 %v4628_v53, %s5283_s1  ;;  %1414 = vst.msk [vmem:[#allocation4 + $0x8] sm:$0xf] %vm926_vm1, %v4637_v56  ;;  %v4629_v11 = vpack.c.bf16 %v1003_v54, %v1003_v54 }
 0x2bf   :  { %v4869_v51 = vpop.f32.mrf.mxu1  ;;  %v4652_v60 = vpack.c.bf16 %v1182_v57, %v1182_v57  ;;  %v1135_v61 = vld [vmem:[#allocation3 + $0xf] sm:$0xff]  ;;  %970 = vrot.lane.b32.xlu1 %v4621_v52, %s5282_s3  ;;  %v1136_v18 = vld [vmem:[#allocation3 + $0x17] sm:$0xff] }
 0x2c0   :  { %v855_v58 = vmax.f32 %v837_v49, 0.0  ;;  %v4870_v59 = vadd.f32 %v4869_v51, %v4868_v46  ;;  %v4645_v2 = vpack.c.bf16 %v1135_v61, %v1135_v61  ;;  %v1375_v3 = vld [vmem:[#allocation3 + $0x16] sm:$0xff]  ;;  %v4646_v21 = vpack.c.bf16 %v1136_v18, %v1136_v18  ;;  %v1246_v27 = vld [vmem:[#allocation3 + $0xc] sm:$0xff] }
 0x2c1   :  { %v4871_v1 = vpop.f32.mrf.mxu1  ;;  %v1183_v7 = vld [vmem:[#allocation3 + $0x10] sm:$0xff]  ;;  %928 = vst.msk [vmem:[#allocation4 + $0xc] sm:$0xf] %vm926_vm1, %v4652_v60  ;;  %v5683_v15 = vpack.c.bf16 %v1375_v3, %v1375_v3  ;;  %v5183_v35 = vld [vmem:[%s6513_s6 + $0x10] sm:$0xff]   ;;  %v4660_v41 = vpack.c.bf16 %v1246_v27, %v1246_v27  ;;  %v5186_v61 = vld [vmem:[%s6513_s6 + $0x40] sm:$0xff]  }
 0x2c2   :  { %v873_v4 = vmul.f32 %v855_v58, %v64_v48  ;;  %v840_v6 = vadd.f32 %v4870_v59, %v5613_v0  ;;  %v4653_v13 = vpack.c.bf16 %v1183_v7, %v1183_v7  ;;  %1175 = vst.msk [vmem:[#allocation4 + $0x10] sm:$0xf] %vm926_vm1, %v4645_v2  ;;  %1100 = vrot.lane.b32.xlu0 %v4636_v12, %s5284_s20  ;;  %1176 = vst.msk [vmem:[#allocation4 + $0x1c] sm:$0xf] %vm926_vm1, %v4646_v21  ;;  %v1310_v42 = vld [vmem:[#allocation3 + $0xd] sm:$0xff]  ;;  %v1311_v55 = vld [vmem:[#allocation3 + $0x15] sm:$0xff] }
 0x2c3   :  { %v4872_v10 = vpop.f32.mrf.mxu1  ;;  %1036 = vrot.lane.b32.xlu1 %v4629_v11, %s5283_s1  ;;  %1415 = vst.msk [vmem:[#allocation4 + $0x14] sm:$0xf] %vm926_vm1, %v5683_v15  ;;  %4888 = vmatpush3.bf16.msra.mxu0 %v5183_v35  ;;  %v1247_v46 = vld [vmem:[#allocation3 + $0x14] sm:$0xff]  ;;  %v4668_v54 = vpack.c.bf16 %v1310_v42, %v1310_v42  ;;  %v4669_v2 = vpack.c.bf16 %v1311_v55, %v1311_v55 }
 0x2c4   :  { %881 = vst.msk [vmem:[#allocation3 + $0x27] sm:$0xff] %vm859_vm14, %v873_v4  ;;  %v856_v16 = vmax.f32 %v840_v6, 0.0  ;;  %v4873_v17 = vadd.f32 %v4872_v10, %v4871_v1  ;;  %v1376_v22 = vld [vmem:[#allocation3 + $0x1e] sm:$0xff]  ;;  %v4661_v53 = vpack.c.bf16 %v1247_v46, %v1247_v46  ;;  %v938_v57 = vld [vmem:[#allocation3 + $0x11] sm:$0xff] }
 0x2c5   :  { %v4874_v19 = vpop.f32.mrf.mxu1  ;;  %929 = vst.msk [vmem:[#allocation4 + $0x18] sm:$0xf] %vm926_vm1, %v4653_v13  ;;  %v5699_v28 = vpack.c.bf16 %v1376_v22, %v1376_v22  ;;  %v1184_v29 = vld [vmem:[#allocation3 + $0x18] sm:$0xff]  ;;  %v4622_v3 = vpack.c.bf16 %v938_v57, %v938_v57 }
 0x2c6   :  { %v874_v23 = vmul.f32 %v856_v16, %v65_v8  ;;  %v845_v24 = vadd.f32 %v4873_v17, %v5613_v0  ;;  %v5703_v32 = vpack.c.bf16 %v1184_v29, %v1184_v29  ;;  %v1137_v34 = vld [vmem:[#allocation3 + $0x1f] sm:$0xff]  ;;  %1214 = vrot.lane.b32.xlu0 %v4652_v60, %s5282_s3  ;;  %v1004_v8 = vld [vmem:[#allocation3 + $0x12] sm:$0xff] }
 0x2c7   :  { %v4875_v26 = vpop.f32.mrf.mxu1  ;;  %1102 = vrot.lane.b32.xlu1 %v4637_v56, %s5284_s20  ;;  %1416 = vst.msk [vmem:[#allocation4 + $0x20] sm:$0xf] %vm926_vm1, %v5699_v28  ;;  %v4647_v36 = vpack.c.bf16 %v1137_v34, %v1137_v34  ;;  %v939_v7 = vld [vmem:[#allocation3 + $0x19] sm:$0xff] }
 0x2c8   :  { %882 = vst.msk [vmem:[#allocation3 + $0x2f] sm:$0xff] %vm859_vm14, %v874_v23  ;;  %v857_v30 = vmax.f32 %v845_v24, 0.0  ;;  %v4876_v31 = vadd.f32 %v4875_v26, %v4874_v19  ;;  %v4623_v18 = vpack.c.bf16 %v939_v7, %v939_v7  ;;  %v4630_v19 = vpack.c.bf16 %v1004_v8, %v1004_v8  ;;  %v1005_v23 = vld [vmem:[#allocation3 + $0x1a] sm:$0xff] }
 0x2c9   :  { %930 = vst.msk [vmem:[#allocation4 + $0x24] sm:$0xf] %vm926_vm1, %v5703_v32  ;;  %1177 = vst.msk [vmem:[#allocation4 + $0x28] sm:$0xf] %vm926_vm1, %v4647_v36  ;;  %v2366_v26 = vmax.f32 %v2358_v20, 0.0  ;;  %v4631_v29 = vpack.c.bf16 %v1005_v23, %v1005_v23  ;;  %v1248_v33 = vld [vmem:[#allocation3 + $0x1c] sm:$0xff] }
 0x2ca   :  { %v875_v37 = vmul.f32 %v857_v30, %v66_v25  ;;  %v848_v39 = vadd.f32 %v4876_v31, %v5613_v0  ;;  %v5166_v45 = vld [vmem:[#allocation4 + $0x8] ss:$12 sps:$4 sm:$0xff]   ;;  %1278 = vrot.lane.b32.xlu0 %v4660_v41, %s5283_s1  ;;  %v5184_v0 = vld [vmem:[%s6513_s6 + $0x48] sm:$0xff]   ;;  %v4662_v35 = vpack.c.bf16 %v1248_v33, %v1248_v33 }
 0x2cb   :  { %v1377_v40 = vld [vmem:[#allocation3 + $0x26] sm:$0xff]  ;;  %1216 = vrot.lane.b32.xlu1 %v4653_v13, %s5282_s3  ;;  %5054 = vmatprep.mubr.msk.bf16.mxu1 %vm859_vm14, %v5166_v45  ;;  %v4755_v31 = vpack.c.bf16 %v2366_v26, %v2366_v26 }
 0x2cc   :  { %v1185_v43 = vld [vmem:[#allocation3 + $0x20] sm:$0xff]  ;;  %883 = vst.msk [vmem:[#allocation3 + $0x37] sm:$0xff] %vm859_vm14, %v875_v37  ;;  %v858_v44 = vmax.f32 %v848_v39, 0.0  ;;  %v5723_v47 = vpack.c.bf16 %v1377_v40, %v1377_v40  ;;  %4889 = vmatprep.subr.bf16.mxu0 %v5184_v0 }
 0x2cd   :  { %v5725_v48 = vpack.c.bf16 %v1185_v43, %v1185_v43  ;;  %v1138_v51 = vld [vmem:[#allocation3 + $0x27] sm:$0xff]  ;;  %4890 = vmatpush3.bf16.msra.mxu0 %v5185_v50  ;;  %v1312_v37 = vld [vmem:[#allocation3 + $0x1d] sm:$0xff] }
 0x2ce   :  { %v876_v49 = vmul.f32 %v858_v44, %v67_v38  ;;  %1417 = vst.msk [vmem:[#allocation4 + $0x2c] sm:$0xf] %vm926_vm1, %v5723_v47  ;;  %v4648_v56 = vpack.c.bf16 %v1138_v51, %v1138_v51  ;;  %1342 = vrot.lane.b32.xlu0 %v4668_v54, %s5284_s20  ;;  %4891 = vmatprep.subr.bf16.mxu0 %v5186_v61  ;;  %v1249_v36 = vld [vmem:[#allocation3 + $0x24] sm:$0xff] }
 0x2cf   :  { %931 = vst.msk [vmem:[#allocation4 + $0x30] sm:$0xf] %vm926_vm1, %v5725_v48  ;;  %v1378_v52 = vld [vmem:[#allocation3 + $0x2e] sm:$0xff]  ;;  %1280 = vrot.lane.b32.xlu1 %v4661_v53, %s5283_s1  ;;  %v4670_v38 = vpack.c.bf16 %v1312_v37, %v1312_v37  ;;  %v1313_v39 = vld [vmem:[#allocation3 + $0x25] sm:$0xff] }
 0x2d0   :  { %885 = vst.msk [vmem:[#allocation3 + $0x3f] sm:$0x3] %vm884_vm2, %v876_v49  ;;  %v5741_v58 = vpack.c.bf16 %v1378_v52, %v1378_v52  ;;  %v1186_v59 = vld [vmem:[#allocation3 + $0x28] sm:$0xff] }
 0x2d1   :  { %v5745_v60 = vpack.c.bf16 %v1186_v59, %v1186_v59  ;;  %1178 = vst.msk [vmem:[#allocation4 + $0x34] sm:$0xf] %vm926_vm1, %v4648_v56  ;;  %v1139_v63 = vld [vmem:[#allocation3 + $0x2f] sm:$0xff]  ;;  %4892 = vmatpush3.bf16.msra.mxu0 %v5187_v62  ;;  %v1006_v42 = vld [vmem:[#allocation3 + $0x22] sm:$0xff] }
 0x2d2   :  { %1418 = vst.msk [vmem:[#allocation4 + $0x38] sm:$0xf] %vm926_vm1, %v5741_v58  ;;  %v4649_v6 = vpack.c.bf16 %v1139_v63, %v1139_v63  ;;  %972 = vrot.lane.b32.xlu0 %v4622_v3, %s5282_s3  ;;  %v941_v41 = vld [vmem:[#allocation3 + $0x29] sm:$0xff]  ;;  %v4632_v44 = vpack.c.bf16 %v1006_v42, %v1006_v42 }
 0x2d3   :  { %v1379_v1 = vld [vmem:[#allocation3 + $0x36] sm:$0xff]  ;;  %932 = vst.msk [vmem:[#allocation4 + $0x3c] sm:$0xf] %vm926_vm1, %v5745_v60  ;;  %1344 = vrot.lane.b32.xlu1 %v4669_v2, %s5284_s20  ;;  %v4625_v43 = vpack.c.bf16 %v941_v41, %v941_v41  ;;  %v1007_v45 = vld [vmem:[#allocation3 + $0x2a] sm:$0xff] }
 0x2d4   :  { %v1187_v4 = vld [vmem:[#allocation3 + $0x30] sm:$0xff]  ;;  %v5758_v10 = vpack.c.bf16 %v1379_v1, %v1379_v1  ;;  %1179 = vst.msk [vmem:[#allocation4 + $0x40] sm:$0xf] %vm926_vm1, %v4649_v6  ;;  %v893_v13 = vld [vmem:[#allocation3 + $0x38] sm:$0x3]  ;;  %v4633_v46 = vpack.c.bf16 %v1007_v45, %v1007_v45 }
 0x2d5   :  { %v5760_v11 = vpack.c.bf16 %v1187_v4, %v1187_v4  ;;  %v5169_v12 = vld [vmem:[#allocation4 + $0x20] ss:$12 sps:$4 sm:$0xff]   ;;  %v4619_v21 = vpack.c.bf16 %v893_v13, %v893_v13  ;;  %v943_v56 = vld [vmem:[#allocation3 + $0x39] sm:$0x3]  ;;  %v1317_v6 = vld [vmem:[#allocation3 + $0x45] sm:$0x3] }
 0x2d6   :  { %1419 = vst.msk [vmem:[#allocation4 + $0x44] sm:$0xf] %vm926_vm1, %v5758_v10  ;;  %v1140_v16 = vld [vmem:[#allocation3 + $0x37] sm:$0xff]  ;;  %5055 = vmatmul.mubr.msk.bf16.vlgmr.msra.gmra.mxu1 %vm859_vm14, %v5169_v12  ;;  %1038 = vrot.lane.b32.xlu0 %v4630_v19, %s5283_s1  ;;  %v1314_v50 = vld [vmem:[#allocation3 + $0x2d] sm:$0xff]  ;;  %v4675_v12 = vpack.c.bf16 %v1317_v6, %v1317_v6 }
 0x2d7   :  { %933 = vst.msk [vmem:[#allocation4 + $0x48] sm:$0xf] %vm926_vm1, %v5760_v11  ;;  %v1380_v17 = vld [vmem:[#allocation3 + $0x3e] sm:$0xff]  ;;  %v4650_v22 = vpack.c.bf16 %v1140_v16, %v1140_v16  ;;  %974 = vrot.lane.b32.xlu1 %v4623_v18, %s5282_s3  ;;  %v1251_v49 = vld [vmem:[#allocation3 + $0x34] sm:$0xff]  ;;  %v4672_v52 = vpack.c.bf16 %v1314_v50, %v1314_v50 }
 0x2d8   :  { %v4682_v24 = vpack.c.bf16 %v1380_v17, %v1380_v17  ;;  %935 = vst.msk [vmem:[#allocation4 + $0x54] sm:$0x1] %vm934_vm15, %v4619_v21  ;;  %v1141_v25 = vld [vmem:[#allocation3 + $0x3f] sm:$0x3]  ;;  %v4665_v51 = vpack.c.bf16 %v1251_v49, %v1251_v49  ;;  %v1315_v53 = vld [vmem:[#allocation3 + $0x35] sm:$0xff] }
 0x2d9   :  { %1180 = vst.msk [vmem:[#allocation4 + $0x4c] sm:$0xf] %vm926_vm1, %v4650_v22  ;;  %v4651_v27 = vpack.c.bf16 %v1141_v25, %v1141_v25  ;;  %v942_v54 = vld [vmem:[#allocation3 + $0x31] sm:$0xff]  ;;  %v1189_v62 = vld [vmem:[#allocation3 + $0x40] sm:$0x3] }
 0x2da   :  { %1420 = vst.msk [vmem:[#allocation4 + $0x50] sm:$0xf] %vm926_vm1, %v4682_v24  ;;  %1104 = vrot.lane.b32.xlu0 %v5683_v15, %s5284_s20  ;;  %v4663_v15 = vpack.c.bf16 %v1249_v36, %v1249_v36  ;;  %v4626_v55 = vpack.c.bf16 %v942_v54, %v942_v54  ;;  %v1008_v57 = vld [vmem:[#allocation3 + $0x32] sm:$0xff]  ;;  %v4659_v1 = vpack.c.bf16 %v1189_v62, %v1189_v62  ;;  %v1075_v3 = vld [vmem:[#allocation3 + $0x3e] sm:$0x3] }
 0x2db   :  { %1181 = vst.msk [vmem:[#allocation4 + $0x58] sm:$0x1] %vm934_vm15, %v4651_v27  ;;  %1040 = vrot.lane.b32.xlu1 %v4631_v29, %s5283_s1  ;;  %v4634_v59 = vpack.c.bf16 %v1008_v57, %v1008_v57  ;;  %v1188_v63 = vld [vmem:[#allocation3 + $0x38] sm:$0xff]  ;;  %v4643_v7 = vpack.c.bf16 %v1075_v3, %v1075_v3 }
 0x2dc   :  { %v4658_v2 = vpack.c.bf16 %v1188_v63, %v1188_v63  ;;  %v1252_v4 = vld [vmem:[#allocation3 + $0x3c] sm:$0xff] }
 0x2dd   :  { %v5170_v30 = vld [vmem:[#allocation4 + $0x38] ss:$12 sps:$4 sm:$0xff]   ;;  %v4666_v8 = vpack.c.bf16 %v1252_v4, %v1252_v4 }
 0x2de   :  { %5058 = vmatprep.mubr.msk.bf16.mxu1 %vm859_vm14, %v5170_v30  ;;  %1218 = vrot.lane.b32.xlu0 %v5703_v32, %s5282_s3  ;;  %v4671_v32 = vpack.c.bf16 %v1313_v39, %v1313_v39 }
 0x2df   :  { %1106 = vrot.lane.b32.xlu1 %v5699_v28, %s5284_s20  ;;  %v940_v28 = vld [vmem:[#allocation3 + $0x21] sm:$0xff] }
 0x2e0   :  { %v4624_v40 = vpack.c.bf16 %v940_v28, %v940_v28 }
 0x2e1   :  { %v5171_v34 = vld [vmem:[#allocation4 + $0x50] ss:$12 sps:$4 sm:$0x1f]  }
 0x2e2   :  { %2406 = vst.msk [vmem:[#allocation4 + $0x5c] sm:$0x1] %vm934_vm15, %v4755_v31  ;;  %5059 = vmatmul.mubr.msk.bf16.gmra.mxu1 %vm859_vm14, %v5171_v34  ;;  %1282 = vrot.lane.b32.xlu0 %v4662_v35, %s5283_s1 }
 0x2e3   :  { %1220 = vrot.lane.b32.xlu1 %v5725_v48, %s5282_s3  ;;  %v1250_v48 = vld [vmem:[#allocation3 + $0x2c] sm:$0xff] }
 0x2e4   :  { %v4664_v0 = vpack.c.bf16 %v1250_v48, %v1250_v48 }
 0x2e6   :  { %1346 = vrot.lane.b32.xlu0 %v4670_v38, %s5284_s20 }
 0x2e7   :  { %1284 = vrot.lane.b32.xlu1 %v4663_v15, %s5283_s1 }
 0x2ea   :  { %976 = vrot.lane.b32.xlu0 %v4624_v40, %s5282_s3 }
 0x2eb   :  { %1348 = vrot.lane.b32.xlu1 %v4671_v32, %s5284_s20 }
 0x2ee   :  { %1042 = vrot.lane.b32.xlu0 %v4632_v44, %s5283_s1 }
 0x2ef   :  { %978 = vrot.lane.b32.xlu1 %v4625_v43, %s5282_s3 }
 0x2f2   :  { %1108 = vrot.lane.b32.xlu0 %v5723_v47, %s5284_s20  ;;  %v4673_v47 = vpack.c.bf16 %v1315_v53, %v1315_v53 }
 0x2f3   :  { %1044 = vrot.lane.b32.xlu1 %v4633_v46, %s5283_s1 }
 0x2f6   :  { %1222 = vrot.lane.b32.xlu0 %v5745_v60, %s5282_s3  ;;  %v1009_v60 = vld [vmem:[#allocation3 + $0x3a] sm:$0x3] }
 0x2f7   :  { %1110 = vrot.lane.b32.xlu1 %v5741_v58, %s5284_s20  ;;  %v4627_v58 = vpack.c.bf16 %v943_v56, %v943_v56  ;;  %v4635_v61 = vpack.c.bf16 %v1009_v60, %v1009_v60 }
 0x2fa   :  { %1286 = vrot.lane.b32.xlu0 %v4664_v0, %s5283_s1 }
 0x2fb   :  { %1224 = vrot.lane.b32.xlu1 %v5760_v11, %s5282_s3  ;;  %v1316_v11 = vld [vmem:[#allocation3 + $0x3d] sm:$0xff] }
 0x2fc   :  { %v4674_v13 = vpack.c.bf16 %v1316_v11, %v1316_v11 }
 0x2fe   :  { %1350 = vrot.lane.b32.xlu0 %v4672_v52, %s5284_s20 }
 0x2ff   :  { %1288 = vrot.lane.b32.xlu1 %v4665_v51, %s5283_s1 }
 0x302   :  { %980 = vrot.lane.b32.xlu0 %v4626_v55, %s5282_s3 }
 0x303   :  { %1352 = vrot.lane.b32.xlu1 %v4673_v47, %s5284_s20 }
 0x306   :  { %1046 = vrot.lane.b32.xlu0 %v4634_v59, %s5283_s1 }
 0x307   :  { %982 = vrot.lane.b32.xlu1 %v4627_v58, %s5282_s3 }
 0x30a   :  { %1112 = vrot.lane.b32.xlu0 %v5758_v10, %s5284_s20  ;;  %v5820_v10 = vpop.permute.xlu1 %1292 }
 0x30b   :  { %1048 = vrot.lane.b32.xlu1 %v4635_v61, %s5283_s1 }
 0x30e   :  { %1226 = vrot.lane.b32.xlu0 %v4658_v2, %s5282_s3 }
 0x30f   :  { %1228 = vrot.lane.b32.xlu1 %v4659_v1, %s5282_s3 }
 0x312   :  { %1290 = vrot.lane.b32.xlu0 %v4666_v8, %s5283_s1 }
 0x313   :  { %1114 = vrot.lane.b32.xlu1 %v4643_v7, %s5284_s20 }
 0x316   :  { %1354 = vrot.lane.b32.xlu0 %v4674_v13, %s5284_s20 }
 0x317   :  { %1356 = vrot.lane.b32.xlu1 %v4675_v12, %s5284_s20 }
 0x32c   :  { %v969_v16 = vpop.permute.xlu0 %968 }
 0x32d   :  { %993 = vst.msk [vmem:[#allocation4] sm:$0xf] %vm992_vm3, %v969_v16 }
 0x330   :  { %v1035_v18 = vpop.permute.xlu0 %1034 }
 0x331   :  { %v971_v17 = vpop.permute.xlu1 %970  ;;  %1059 = vst.msk [vmem:[#allocation4] sm:$0xf] %vm1058_vm4, %v1035_v18 }
 0x332   :  { %994 = vst.msk [vmem:[#allocation4 + $0xc] sm:$0xf] %vm992_vm3, %v971_v17 }
 0x334   :  { %v1101_v20 = vpop.permute.xlu0 %1100 }
 0x335   :  { %v1037_v19 = vpop.permute.xlu1 %1036  ;;  %1125 = vst.msk [vmem:[#allocation4] sm:$0xf] %vm1124_vm5, %v1101_v20 }
 0x336   :  { %1060 = vst.msk [vmem:[#allocation4 + $0xc] sm:$0xf] %vm1058_vm4, %v1037_v19 }
 0x338   :  { %v1215_v22 = vpop.permute.xlu0 %1214 }
 0x339   :  { %v1103_v21 = vpop.permute.xlu1 %1102  ;;  %1238 = vst.msk [vmem:[#allocation4 + $0x4] sm:$0xf] %vm992_vm3, %v1215_v22  ;;  %v5190_v22 = vld [vmem:[%s6516_s8 + $0x80] sm:$0xff]  }
 0x33a   :  { %1126 = vst.msk [vmem:[#allocation4 + $0xc] sm:$0xf] %vm1124_vm5, %v1103_v21  ;;  %v5189_v21 = vld [vmem:[%s6516_s8 + $0x88] sm:$0xff]  }
 0x33b   :  { %5062 = vmatprep.subr.bf16.mxu1 %v5189_v21 }
 0x33c   :  { %v1279_v24 = vpop.permute.xlu0 %1278  ;;  %5063 = vmatpush3.bf16.msra.mxu1 %v5189_v21 }
 0x33d   :  { %v1217_v23 = vpop.permute.xlu1 %1216  ;;  %1302 = vst.msk [vmem:[#allocation4 + $0x4] sm:$0xf] %vm1058_vm4, %v1279_v24  ;;  %5064 = vmatprep.subr.bf16.mxu1 %v5190_v22 }
 0x33e   :  { %1239 = vst.msk [vmem:[#allocation4 + $0x10] sm:$0xf] %vm992_vm3, %v1217_v23 }
 0x340   :  { %v1343_v26 = vpop.permute.xlu0 %1342  ;;  %5065 = vmatpush3.bf16.msra.mxu1 %v5190_v22  ;;  %v5200_v22 = vld [vmem:[%s6516_s8 + $0x60] sm:$0xff]  }
 0x341   :  { %v1281_v25 = vpop.permute.xlu1 %1280  ;;  %1366 = vst.msk [vmem:[#allocation4 + $0x4] sm:$0xf] %vm1124_vm5, %v1343_v26  ;;  %v5883_v26 = vld [vmem:[%s6517_s7] ss:$0 sm:$0xff] }
 0x342   :  { %1303 = vst.msk [vmem:[#allocation4 + $0x10] sm:$0xf] %vm1058_vm4, %v1281_v25 }
 0x344   :  { %v973_v29 = vpop.permute.xlu0 %972 }
 0x345   :  { %v1345_v27 = vpop.permute.xlu1 %1344  ;;  %995 = vst.msk [vmem:[#allocation4 + $0x18] sm:$0xf] %vm992_vm3, %v973_v29 }
 0x346   :  { %1367 = vst.msk [vmem:[#allocation4 + $0x10] sm:$0xf] %vm1124_vm5, %v1345_v27 }
 0x348   :  { %v1039_v31 = vpop.permute.xlu0 %1038  ;;  %v1422_v33 = vld [vmem:[#allocation4] sm:$0xff] }
 0x349   :  { %v975_v30 = vpop.permute.xlu1 %974  ;;  %1061 = vst.msk [vmem:[#allocation4 + $0x18] sm:$0xf] %vm1058_vm4, %v1039_v31 }
 0x34a   :  { %996 = vst.msk [vmem:[#allocation4 + $0x24] sm:$0xf] %vm992_vm3, %v975_v30 }
 0x34c   :  { %v1105_v36 = vpop.permute.xlu0 %1104 }
 0x34d   :  { %v1424_v34 = vld [vmem:[#allocation4 + $0xc] sm:$0xff]  ;;  %v1041_v35 = vpop.permute.xlu1 %1040  ;;  %1127 = vst.msk [vmem:[#allocation4 + $0x18] sm:$0xf] %vm1124_vm5, %v1105_v36 }
 0x34e   :  { %1062 = vst.msk [vmem:[#allocation4 + $0x24] sm:$0xf] %vm1058_vm4, %v1041_v35  ;;  %v4313_v37 = vcombine.high %v1422_v33, %v1424_v34  ;;  %v4312_v15 = vcombine.low %v1422_v33, %v1424_v34 }
 0x350   :  { %1693 = vmatprep.mubr.bf16.mxu0 %v4313_v37  ;;  %v1219_v39 = vpop.permute.xlu0 %1218 }
 0x351   :  { %v1107_v38 = vpop.permute.xlu1 %1106  ;;  %1694 = vmatmul.mubr.bf16.vlgmr.msra.gmra.mxu0 %v4312_v15  ;;  %1240 = vst.msk [vmem:[#allocation4 + $0x1c] sm:$0xf] %vm992_vm3, %v1219_v39 }
 0x352   :  { %1128 = vst.msk [vmem:[#allocation4 + $0x24] sm:$0xf] %vm1124_vm5, %v1107_v38 }
 0x354   :  { %v1283_v32 = vpop.permute.xlu0 %1282 }
 0x355   :  { %v1221_v28 = vpop.permute.xlu1 %1220  ;;  %1304 = vst.msk [vmem:[#allocation4 + $0x1c] sm:$0xf] %vm1058_vm4, %v1283_v32 }
 0x356   :  { %1241 = vst.msk [vmem:[#allocation4 + $0x28] sm:$0xf] %vm992_vm3, %v1221_v28 }
 0x358   :  { %v1347_v41 = vpop.permute.xlu0 %1346 }
 0x359   :  { %v1285_v40 = vpop.permute.xlu1 %1284  ;;  %1368 = vst.msk [vmem:[#allocation4 + $0x1c] sm:$0xf] %vm1124_vm5, %v1347_v41 }
 0x35a   :  { %1305 = vst.msk [vmem:[#allocation4 + $0x28] sm:$0xf] %vm1058_vm4, %v1285_v40 }
 0x35c   :  { %v977_v43 = vpop.permute.xlu0 %976 }
 0x35d   :  { %v1349_v42 = vpop.permute.xlu1 %1348  ;;  %997 = vst.msk [vmem:[#allocation4 + $0x30] sm:$0xf] %vm992_vm3, %v977_v43  ;;  %v5194_v43 = vld [vmem:[%s6516_s8 + $0x78] sm:$0xff]  }
 0x35e   :  { %1369 = vst.msk [vmem:[#allocation4 + $0x28] sm:$0xf] %vm1124_vm5, %v1349_v42  ;;  %4923 = vmatprep.subr.bf16.mxu0 %v5194_v43 }
 0x360   :  { %v1043_v45 = vpop.permute.xlu0 %1042  ;;  %v1426_v46 = vld [vmem:[#allocation4 + $0x18] sm:$0xff] }
 0x361   :  { %v979_v44 = vpop.permute.xlu1 %978  ;;  %1063 = vst.msk [vmem:[#allocation4 + $0x30] sm:$0xf] %vm1058_vm4, %v1043_v45 }
 0x362   :  { %998 = vst.msk [vmem:[#allocation4 + $0x3c] sm:$0xf] %vm992_vm3, %v979_v44 }
 0x364   :  { %v1109_v49 = vpop.permute.xlu0 %1108 }
 0x365   :  { %v1428_v48 = vld [vmem:[#allocation4 + $0x24] sm:$0xff]  ;;  %v1045_v0 = vpop.permute.xlu1 %1044  ;;  %1129 = vst.msk [vmem:[#allocation4 + $0x30] sm:$0xf] %vm1124_vm5, %v1109_v49 }
 0x366   :  { %1064 = vst.msk [vmem:[#allocation4 + $0x3c] sm:$0xf] %vm1058_vm4, %v1045_v0  ;;  %v4316_v50 = vcombine.high %v1426_v46, %v1428_v48  ;;  %v4315_v51 = vcombine.low %v1426_v46, %v1428_v48 }
 0x368   :  { %1701 = vmatprep.mubr.bf16.mxu0 %v4316_v50  ;;  %v1223_v53 = vpop.permute.xlu0 %1222 }
 0x369   :  { %v1111_v52 = vpop.permute.xlu1 %1110  ;;  %1702 = vmatmul.mubr.bf16.gmra.mxu0 %v4315_v51  ;;  %1242 = vst.msk [vmem:[#allocation4 + $0x34] sm:$0xf] %vm992_vm3, %v1223_v53 }
 0x36a   :  { %1130 = vst.msk [vmem:[#allocation4 + $0x3c] sm:$0xf] %vm1124_vm5, %v1111_v52 }
 0x36c   :  { %v1287_v47 = vpop.permute.xlu0 %1286 }
 0x36d   :  { %v1225_v54 = vpop.permute.xlu1 %1224  ;;  %1306 = vst.msk [vmem:[#allocation4 + $0x34] sm:$0xf] %vm1058_vm4, %v1287_v47 }
 0x36e   :  { %1243 = vst.msk [vmem:[#allocation4 + $0x40] sm:$0xf] %vm992_vm3, %v1225_v54 }
 0x370   :  { %v1351_v56 = vpop.permute.xlu0 %1350 }
 0x371   :  { %v1289_v55 = vpop.permute.xlu1 %1288  ;;  %1370 = vst.msk [vmem:[#allocation4 + $0x34] sm:$0xf] %vm1124_vm5, %v1351_v56 }
 0x372   :  { %1307 = vst.msk [vmem:[#allocation4 + $0x40] sm:$0xf] %vm1058_vm4, %v1289_v55 }
 0x374   :  { %v981_v58 = vpop.permute.xlu0 %980 }
 0x375   :  { %v1353_v57 = vpop.permute.xlu1 %1352  ;;  %999 = vst.msk [vmem:[#allocation4 + $0x48] sm:$0xf] %vm992_vm3, %v981_v58 }
 0x376   :  { %1371 = vst.msk [vmem:[#allocation4 + $0x40] sm:$0xf] %vm1124_vm5, %v1353_v57 }
 0x378   :  { %v1047_v60 = vpop.permute.xlu0 %1046  ;;  %v1430_v61 = vld [vmem:[#allocation4 + $0x30] sm:$0xff] }
 0x379   :  { %v983_v59 = vpop.permute.xlu1 %982  ;;  %1065 = vst.msk [vmem:[#allocation4 + $0x48] sm:$0xf] %vm1058_vm4, %v1047_v60  ;;  %v5196_v60 = vld [vmem:[%s6516_s8 + $0x70] sm:$0xff]  }
 0x37a   :  { %1001 = vst.msk [vmem:[#allocation4 + $0x54] sm:$0x1] %vm1000_vm6, %v983_v59  ;;  %v5195_v59 = vld [vmem:[%s6516_s8 + $0x38] sm:$0xff]  }
 0x37b   :  { %4924 = vmatpush3.bf16.msra.mxu0 %v5195_v59 }
 0x37c   :  { %v1113_v1 = vpop.permute.xlu0 %1112  ;;  %4925 = vmatprep.subr.bf16.mxu0 %v5196_v60 }
 0x37d   :  { %v1432_v62 = vld [vmem:[#allocation4 + $0x3c] sm:$0xff]  ;;  %v1049_v63 = vpop.permute.xlu1 %1048  ;;  %1131 = vst.msk [vmem:[#allocation4 + $0x48] sm:$0xf] %vm1124_vm5, %v1113_v1 }
 0x37e   :  { %1067 = vst.msk [vmem:[#allocation4 + $0x54] sm:$0x1] %vm1066_vm7, %v1049_v63  ;;  %v4319_v2 = vcombine.high %v1430_v61, %v1432_v62  ;;  %v4318_v3 = vcombine.low %v1430_v61, %v1432_v62 }
 0x380   :  { %1709 = vmatprep.mubr.bf16.mxu0 %v4319_v2  ;;  %v1227_v6 = vpop.permute.xlu0 %1226 }
 0x381   :  { %v1229_v4 = vpop.permute.xlu1 %1228  ;;  %1710 = vmatmul.mubr.bf16.gmra.mxu0 %v4318_v3  ;;  %1244 = vst.msk [vmem:[#allocation4 + $0x4c] sm:$0xf] %vm992_vm3, %v1227_v6  ;;  %v5197_v6 = vld [vmem:[%s6516_s8 + $0x30] sm:$0xff]  }
 0x382   :  { %1245 = vst.msk [vmem:[#allocation4 + $0x58] sm:$0x1] %vm1000_vm6, %v1229_v4  ;;  %4926 = vmatpush3.bf16.msra.mxu0 %v5197_v6 }
 0x383   :  { %1309 = vst.msk [vmem:[#allocation4 + $0x58] sm:$0x1] %vm1066_vm7, %v5820_v10  ;;  %v2214_v10 = vld [vmem:[#allocation3 + $0x44] sm:$0x3] }
 0x384   :  { %v1291_v8 = vpop.permute.xlu0 %1290  ;;  %v2222_v19 = vmax.f32 %v2214_v10, 0.0 }
 0x385   :  { %v1115_v7 = vpop.permute.xlu1 %1114  ;;  %1308 = vst.msk [vmem:[#allocation4 + $0x4c] sm:$0xf] %vm1058_vm4, %v1291_v8 }
 0x386   :  { %1133 = vst.msk [vmem:[#allocation4 + $0x54] sm:$0x1] %vm1132_vm8, %v1115_v7  ;;  %v4739_v20 = vpack.c.bf16 %v2222_v19, %v2222_v19  ;;  %v5199_v19 = vld [vmem:[%s6516_s8 + $0x28] sm:$0xff]  }
 0x388   :  { %v1355_v12 = vpop.permute.xlu0 %1354  ;;  %2261 = vrot.lane.b32.xlu1 %v4739_v20, %s5283_s1 }
 0x389   :  { %v1357_v11 = vpop.permute.xlu1 %1356  ;;  %1372 = vst.msk [vmem:[#allocation4 + $0x4c] sm:$0xf] %vm1124_vm5, %v1355_v12  ;;  %v5198_v12 = vld [vmem:[%s6516_s8 + $0x68] sm:$0xff]  }
 0x38a   :  { %1373 = vst.msk [vmem:[#allocation4 + $0x58] sm:$0x1] %vm1132_vm8, %v1357_v11  ;;  %4927 = vmatprep.subr.bf16.mxu0 %v5198_v12  ;;  %v5209_v12 = vld [vmem:[%s6516_s8] sm:$0xff]  }
 0x38b   :  { %4928 = vmatpush3.bf16.msra.mxu0 %v5199_v19 }
 0x38c   :  { %4929 = vmatprep.subr.bf16.mxu0 %v5200_v22 }
 0x390   :  { %v1434_v16 = vld [vmem:[#allocation4 + $0x48] sm:$0xff] }
 0x391   :  { %v1436_v13 = vld [vmem:[#allocation4 + $0x54] sm:$0x11] }
 0x392   :  { %v4322_v17 = vcombine.high %v1434_v16, %v1436_v13  ;;  %v4321_v18 = vcombine.low %v1434_v16, %v1436_v13 }
 0x394   :  { %1717 = vmatprep.mubr.bf16.mxu0 %v4322_v17 }
 0x395   :  { %1718 = vmatmul.mubr.bf16.gmra.mxu0 %v4321_v18 }
 0x396   :  { %v5878_v23 = vpop.f32.mrf.mxu1 }
 0x398   :  { %v1760_v25 = vpop.f32.mrf.mxu1 }
 0x39a   :  { %v5886_v33 = vpop.f32.mrf.mxu1 }
 0x39c   :  { %v1763_v38 = vpop.f32.mrf.mxu1 }
 0x411   :  { %v4893_v24 = vpop.f32.mrf.mxu0 }
 0x413   :  { %v4894_v27 = vpop.f32.mrf.mxu0 }
 0x414   :  { %v4895_v29 = vadd.f32 %v4894_v27, %v4893_v24  ;;  %v5256_v24 = vld [vmem:[%s6515_s0 + $0x10] sm:$0xff] }
 0x415   :  { %v4896_v30 = vpop.f32.mrf.mxu0 }
 0x416   :  { %v1696_v31 = vadd.f32 %v4895_v29, %v5883_v26 }
 0x417   :  { %v4897_v34 = vpop.f32.mrf.mxu0 }
 0x418   :  { %v1761_v35 = vadd.f32 %v1760_v25, %v1696_v31  ;;  %v4898_v36 = vadd.f32 %v4897_v34, %v4896_v30  ;;  %v5202_v34 = vld [vmem:[%s6516_s8 + $0x58] sm:$0xff]  }
 0x41a   :  { %v1791_v37 = vmul.f32 %v1761_v35, %v5619_v5  ;;  %v1699_v15 = vadd.f32 %v4898_v36, %v5883_v26  ;;  %v5257_v35 = vld [vmem:[%s6515_s0 + $0x18] sm:$0xff] }
 0x41c   :  { %1799 = vst.msk [vmem:[#allocation3 + $0x7] sm:$0xff] %vm859_vm14, %v1791_v37  ;;  %v1764_v39 = vadd.f32 %v1763_v38, %v1699_v15  ;;  %v5204_v38 = vld [vmem:[%s6516_s8 + $0x50] sm:$0xff]  }
 0x41e   :  { %v1792_v28 = vmul.f32 %v1764_v39, %v5629_v14 }
 0x420   :  { %1800 = vst.msk [vmem:[#allocation3 + $0xf] sm:$0xff] %vm859_vm14, %v1792_v28 }
 0x423   :  { %v1863_v32 = vld [vmem:[#allocation3 + $0x1] sm:$0xff] }
 0x424   :  { %v1935_v40 = vld [vmem:[#allocation3 + $0x2] sm:$0xff]  ;;  %v1871_v41 = vmax.f32 %v1863_v32, 0.0 }
 0x425   :  { %v1807_v42 = vld [vmem:[#allocation3] sm:$0xff]  ;;  %v1943_v5 = vmax.f32 %v1935_v40, 0.0 }
 0x426   :  { %v2079_v44 = vld [vmem:[#allocation3 + $0x7] sm:$0xff]  ;;  %v1815_v45 = vmax.f32 %v1807_v42, 0.0  ;;  %v4692_v48 = vpack.c.bf16 %v1871_v41, %v1871_v41 }
 0x427   :  { %v2087_v46 = vmax.f32 %v2079_v44, 0.0  ;;  %v2007_v0 = vld [vmem:[#allocation3 + $0x6] sm:$0xff]  ;;  %v2008_v14 = vld [vmem:[#allocation3 + $0xe] sm:$0xff]  ;;  %v4700_v56 = vpack.c.bf16 %v1943_v5, %v1943_v5 }
 0x428   :  { %v1864_v49 = vld [vmem:[#allocation3 + $0x9] sm:$0xff]  ;;  %v4684_v51 = vpack.c.bf16 %v1815_v45, %v1815_v45  ;;  %1903 = vrot.lane.b32.xlu0 %v4692_v48, %s5282_s3  ;;  %v2016_v54 = vmax.f32 %v2008_v14, 0.0  ;;  %v2015_v57 = vmax.f32 %v2007_v0, 0.0  ;;  %v5206_v48 = vld [vmem:[%s6516_s8 + $0x48] sm:$0xff]  }
 0x429   :  { %v1936_v50 = vld [vmem:[#allocation3 + $0xa] sm:$0xff]  ;;  %v4716_v52 = vpack.c.bf16 %v2087_v46, %v2087_v46  ;;  %v1872_v53 = vmax.f32 %v1864_v49, 0.0  ;;  %v4899_v55 = vpop.f32.mrf.mxu0 }
 0x42a   :  { %v2135_v47 = vld [vmem:[#allocation3 + $0x8] sm:$0xff]  ;;  %1855 = vst.msk [vmem:[#allocation4] sm:$0xf] %vm926_vm1, %v4684_v51  ;;  %v1944_v63 = vmax.f32 %v1936_v50, 0.0  ;;  %v4709_v1 = vpack.c.bf16 %v2016_v54, %v2016_v54  ;;  %v4708_v17 = vpack.c.bf16 %v2015_v57, %v2015_v57 }
 0x42b   :  { %v2143_v58 = vmax.f32 %v2135_v47, 0.0  ;;  %2127 = vst.msk [vmem:[#allocation4 + $0x4] sm:$0xf] %vm926_vm1, %v4716_v52  ;;  %v2080_v61 = vld [vmem:[#allocation3 + $0xf] sm:$0xff]  ;;  %v4693_v62 = vpack.c.bf16 %v1872_v53, %v1872_v53  ;;  %v4900_v3 = vpop.f32.mrf.mxu0  ;;  %v5961_v53 = vpop.f32.mrf.mxu1 }
 0x42c   :  { %v2088_v2 = vmax.f32 %v2080_v61, 0.0  ;;  %v4901_v7 = vadd.f32 %v4900_v3, %v4899_v55  ;;  %1975 = vrot.lane.b32.xlu0 %v4700_v56, %s5283_s1  ;;  %2399 = vst.msk [vmem:[#allocation4 + $0x8] sm:$0xf] %vm926_vm1, %v4709_v1  ;;  %v4701_v16 = vpack.c.bf16 %v1944_v63, %v1944_v63  ;;  %v2207_v10 = vld [vmem:[#allocation3 + $0xc] sm:$0xff]  ;;  %v5207_v61 = vld [vmem:[%s6516_s8 + $0x8] sm:$0xff]  }
 0x42d   :  { %v4724_v4 = vpack.c.bf16 %v2143_v58, %v2143_v58  ;;  %1905 = vrot.lane.b32.xlu1 %v4693_v62, %s5282_s3  ;;  %v4902_v11 = vpop.f32.mrf.mxu0  ;;  %v2215_v29 = vmax.f32 %v2207_v10, 0.0  ;;  %v2279_v30 = vld [vmem:[#allocation3 + $0xd] sm:$0xff]  ;;  %v5208_v62 = vld [vmem:[%s6516_s8 + $0x40] sm:$0xff]   ;;  %v1776_v6 = vpop.f32.mrf.mxu1 }
 0x42e   :  { %v4717_v8 = vpack.c.bf16 %v2088_v2, %v2088_v2  ;;  %v1704_v13 = vadd.f32 %v4901_v7, %v5883_v26  ;;  %v2287_v15 = vmax.f32 %v2279_v30, 0.0  ;;  %v5205_v46 = vld [vmem:[%s6516_s8 + $0x10] sm:$0xff]  }
 0x42f   :  { %1856 = vst.msk [vmem:[#allocation4 + $0xc] sm:$0xf] %vm926_vm1, %v4724_v4  ;;  %v4903_v18 = vpop.f32.mrf.mxu0  ;;  %v4732_v37 = vpack.c.bf16 %v2215_v29, %v2215_v29 }
 0x430   :  { %2128 = vst.msk [vmem:[#allocation4 + $0x10] sm:$0xf] %vm926_vm1, %v4717_v8  ;;  %v1769_v20 = vadd.f32 %v5878_v23, %v1704_v13  ;;  %v4904_v21 = vadd.f32 %v4903_v18, %v4902_v11  ;;  %2047 = vrot.lane.b32.xlu0 %v4708_v17, %s5284_s20  ;;  %v5201_v23 = vld [vmem:[%s6516_s8 + $0x20] sm:$0xff]   ;;  %v4740_v39 = vpack.c.bf16 %v2287_v15, %v2287_v15 }
 0x431   :  { %1977 = vrot.lane.b32.xlu1 %v4701_v16, %s5283_s1  ;;  %4930 = vmatpush3.bf16.msra.mxu0 %v5201_v23  ;;  %v5258_v23 = vld [vmem:[%s6515_s0 + $0x20] sm:$0xff] }
 0x432   :  { %v1793_v25 = vmul.f32 %v5256_v24, %v1769_v20  ;;  %v1707_v27 = vadd.f32 %v4904_v21, %v5883_v26  ;;  %4931 = vmatprep.subr.bf16.mxu0 %v5202_v34  ;;  %v5986_v21 = vpop.f32.mrf.mxu1 }
 0x434   :  { %1801 = vst.msk [vmem:[#allocation3 + $0x17] sm:$0xff] %vm859_vm14, %v1793_v25  ;;  %v1772_v31 = vadd.f32 %v5886_v33, %v1707_v27  ;;  %2175 = vrot.lane.b32.xlu0 %v4724_v4, %s5282_s3  ;;  %v5203_v33 = vld [vmem:[%s6516_s8 + $0x18] sm:$0xff]  }
 0x435   :  { %2049 = vrot.lane.b32.xlu1 %v4709_v1, %s5284_s20  ;;  %4932 = vmatpush3.bf16.msra.mxu0 %v5203_v33 }
 0x436   :  { %v1794_v36 = vmul.f32 %v5257_v35, %v1772_v31  ;;  %4933 = vmatprep.subr.bf16.mxu0 %v5204_v38  ;;  %v5259_v38 = vld [vmem:[%s6515_s0 + $0x28] sm:$0xff] }
 0x438   :  { %1802 = vst.msk [vmem:[#allocation3 + $0x1f] sm:$0xff] %vm859_vm14, %v1794_v36  ;;  %2247 = vrot.lane.b32.xlu0 %v4732_v37, %s5283_s1  ;;  %v1779_v37 = vpop.f32.mrf.mxu1 }
 0x439   :  { %4934 = vmatpush3.bf16.msra.mxu0 %v5205_v46 }
 0x43a   :  { %4935 = vmatprep.subr.bf16.mxu0 %v5206_v48 }
 0x43b   :  { %v2136_v28 = vld [vmem:[#allocation3 + $0x10] sm:$0xff] }
 0x43c   :  { %v1865_v32 = vld [vmem:[#allocation3 + $0x11] sm:$0xff]  ;;  %2319 = vrot.lane.b32.xlu0 %v4740_v39, %s5284_s20  ;;  %v2144_v41 = vmax.f32 %v2136_v28, 0.0 }
 0x43d   :  { %v2208_v40 = vld [vmem:[#allocation3 + $0x14] sm:$0xff]  ;;  %v1873_v42 = vmax.f32 %v1865_v32, 0.0  ;;  %4936 = vmatpush3.bf16.msra.mxu0 %v5207_v61 }
 0x43e   :  { %v1937_v43 = vld [vmem:[#allocation3 + $0x12] sm:$0xff]  ;;  %v2216_v5 = vmax.f32 %v2208_v40, 0.0  ;;  %v4725_v49 = vpack.c.bf16 %v2144_v41, %v2144_v41  ;;  %4937 = vmatprep.subr.bf16.mxu0 %v5208_v62 }
 0x43f   :  { %v2009_v44 = vld [vmem:[#allocation3 + $0x16] sm:$0xff]  ;;  %v4694_v50 = vpack.c.bf16 %v1873_v42, %v1873_v42  ;;  %v1945_v14 = vmax.f32 %v1937_v43, 0.0  ;;  %v2010_v56 = vld [vmem:[#allocation3 + $0x1e] sm:$0xff] }
 0x440   :  { %v2017_v45 = vmax.f32 %v2009_v44, 0.0  ;;  %v5958_v0 = vld [vmem:[#allocation3 + $0x17] sm:$0xff]  ;;  %2177 = vrot.lane.b32.xlu1 %v4725_v49, %s5282_s3  ;;  %1857 = vst.msk [vmem:[#allocation4 + $0x18] sm:$0xf] %vm926_vm1, %v4725_v49  ;;  %v2018_v60 = vmax.f32 %v2010_v56, 0.0  ;;  %v5973_v63 = vld [vmem:[#allocation3 + $0x1f] sm:$0xff]  ;;  %v4733_v1 = vpack.c.bf16 %v2216_v5, %v2216_v5 }
 0x441   :  { %v2280_v51 = vld [vmem:[#allocation3 + $0x15] sm:$0xff]  ;;  %v2089_v52 = vmax.f32 %v5958_v0, 0.0  ;;  %1907 = vrot.lane.b32.xlu0 %v4694_v50, %s5282_s3  ;;  %v4905_v58 = vpop.f32.mrf.mxu0  ;;  %v4702_v2 = vpack.c.bf16 %v1945_v14, %v1945_v14  ;;  %v2090_v4 = vmax.f32 %v5973_v63, 0.0  ;;  %4938 = vmatpush3.bf16.msra.mxu0 %v5209_v12  ;;  %v2281_v15 = vld [vmem:[#allocation3 + $0x1d] sm:$0xff] }
 0x442   :  { %v4710_v54 = vpack.c.bf16 %v2017_v45, %v2017_v45  ;;  %v2137_v47 = vld [vmem:[#allocation3 + $0x18] sm:$0xff]  ;;  %v2288_v59 = vmax.f32 %v2280_v51, 0.0  ;;  %v4711_v11 = vpack.c.bf16 %v2018_v60, %v2018_v60  ;;  %v2289_v40 = vmax.f32 %v2281_v15, 0.0 }
 0x443   :  { %v2145_v55 = vmax.f32 %v2137_v47, 0.0  ;;  %v4718_v57 = vpack.c.bf16 %v2089_v52, %v2089_v52  ;;  %v4906_v7 = vpop.f32.mrf.mxu0  ;;  %v1866_v8 = vld [vmem:[#allocation3 + $0x19] sm:$0xff]  ;;  %v4719_v16 = vpack.c.bf16 %v2090_v4, %v2090_v4 }
 0x444   :  { %2400 = vst.msk [vmem:[#allocation4 + $0x14] sm:$0xf] %vm926_vm1, %v4710_v54  ;;  %v4907_v13 = vadd.f32 %v4906_v7, %v4905_v58  ;;  %2249 = vrot.lane.b32.xlu1 %v4733_v1, %s5283_s1  ;;  %2401 = vst.msk [vmem:[#allocation4 + $0x20] sm:$0xf] %vm926_vm1, %v4711_v11  ;;  %v4741_v10 = vpack.c.bf16 %v2288_v59, %v2288_v59  ;;  %v1874_v19 = vmax.f32 %v1866_v8, 0.0  ;;  %v1938_v20 = vld [vmem:[#allocation3 + $0x1a] sm:$0xff] }
 0x445   :  { %v4726_v3 = vpack.c.bf16 %v2145_v55, %v2145_v55  ;;  %2129 = vst.msk [vmem:[#allocation4 + $0x1c] sm:$0xf] %vm926_vm1, %v4718_v57  ;;  %1979 = vrot.lane.b32.xlu0 %v4702_v2, %s5283_s1  ;;  %v4908_v17 = vpop.f32.mrf.mxu0  ;;  %2130 = vst.msk [vmem:[#allocation4 + $0x28] sm:$0xf] %vm926_vm1, %v4719_v16  ;;  %v2209_v24 = vld [vmem:[#allocation3 + $0x1c] sm:$0xff]  ;;  %v1946_v30 = vmax.f32 %v1938_v20, 0.0  ;;  %v4742_v41 = vpack.c.bf16 %v2289_v40, %v2289_v40 }
 0x446   :  { %v1712_v18 = vadd.f32 %v4907_v13, %v5883_v26  ;;  %v4695_v35 = vpack.c.bf16 %v1874_v19, %v1874_v19  ;;  %v2217_v36 = vmax.f32 %v2209_v24, 0.0 }
 0x447   :  { %1858 = vst.msk [vmem:[#allocation4 + $0x24] sm:$0xf] %vm926_vm1, %v4726_v3  ;;  %v4909_v22 = vpop.f32.mrf.mxu0  ;;  %v4703_v28 = vpack.c.bf16 %v1946_v30, %v1946_v30 }
 0x448   :  { %v1777_v25 = vadd.f32 %v1776_v6, %v1712_v18  ;;  %v4910_v27 = vadd.f32 %v4909_v22, %v4908_v17  ;;  %2321 = vrot.lane.b32.xlu1 %v4741_v10, %s5284_s20  ;;  %v4734_v32 = vpack.c.bf16 %v2217_v36, %v2217_v36  ;;  %v6020_v22 = vld [vmem:[%s6515_s0 + $0x30] sm:$0xff] }
 0x449   :  { %2051 = vrot.lane.b32.xlu0 %v4710_v54, %s5284_s20 }
 0x44a   :  { %v1795_v31 = vmul.f32 %v5258_v23, %v1777_v25  ;;  %v1715_v34 = vadd.f32 %v4910_v27, %v5883_v26 }
 0x44b   :  { %v5188_v29 = vld [vmem:[#allocation4 + $0x8] ss:$12 sps:$4 sm:$0xff]  }
 0x44c   :  { %5066 = vmatprep.mubr.msk.bf16.mxu1 %vm859_vm14, %v5188_v29  ;;  %1803 = vst.msk [vmem:[#allocation3 + $0x27] sm:$0xff] %vm859_vm14, %v1795_v31  ;;  %v1780_v33 = vadd.f32 %v1779_v37, %v1715_v34  ;;  %1909 = vrot.lane.b32.xlu1 %v4695_v35, %s5282_s3  ;;  %v6032_v34 = vld [vmem:[%s6515_s0 + $0x38] sm:$0x3] }
 0x44d   :  { %2179 = vrot.lane.b32.xlu0 %v4726_v3, %s5282_s3 }
 0x44e   :  { %v1796_v39 = vmul.f32 %v5259_v38, %v1780_v33 }
 0x450   :  { %1804 = vst.msk [vmem:[#allocation3 + $0x2f] sm:$0xff] %vm859_vm14, %v1796_v39  ;;  %1981 = vrot.lane.b32.xlu1 %v4703_v28, %s5283_s1 }
 0x451   :  { %2251 = vrot.lane.b32.xlu0 %v4734_v32, %s5283_s1 }
 0x453   :  { %v2138_v42 = vld [vmem:[#allocation3 + $0x20] sm:$0xff] }
 0x454   :  { %v1867_v43 = vld [vmem:[#allocation3 + $0x21] sm:$0xff]  ;;  %2053 = vrot.lane.b32.xlu1 %v4711_v11, %s5284_s20  ;;  %v2146_v5 = vmax.f32 %v2138_v42, 0.0 }
 0x455   :  { %v2210_v44 = vld [vmem:[#allocation3 + $0x24] sm:$0xff]  ;;  %2323 = vrot.lane.b32.xlu0 %v4742_v41, %s5284_s20  ;;  %v1875_v45 = vmax.f32 %v1867_v43, 0.0  ;;  %v4911_v49 = vpop.f32.mrf.mxu0 }
 0x456   :  { %v1939_v46 = vld [vmem:[#allocation3 + $0x22] sm:$0xff]  ;;  %v2218_v50 = vmax.f32 %v2210_v44, 0.0  ;;  %v4727_v52 = vpack.c.bf16 %v2146_v5, %v2146_v5 }
 0x457   :  { %v2011_v48 = vld [vmem:[#allocation3 + $0x26] sm:$0xff]  ;;  %v4696_v54 = vpack.c.bf16 %v1875_v45, %v1875_v45  ;;  %v1947_v47 = vmax.f32 %v1939_v46, 0.0  ;;  %v4912_v57 = vpop.f32.mrf.mxu0  ;;  %v2012_v62 = vld [vmem:[#allocation3 + $0x2e] sm:$0xff] }
 0x458   :  { %v2019_v14 = vmax.f32 %v2011_v48, 0.0  ;;  %v2083_v51 = vld [vmem:[#allocation3 + $0x27] sm:$0xff]  ;;  %v4913_v60 = vadd.f32 %v4912_v57, %v4911_v49  ;;  %2181 = vrot.lane.b32.xlu1 %v4727_v52, %s5282_s3  ;;  %1859 = vst.msk [vmem:[#allocation4 + $0x30] sm:$0xf] %vm926_vm1, %v4727_v52  ;;  %v2020_v3 = vmax.f32 %v2012_v62, 0.0  ;;  %v2084_v6 = vld [vmem:[#allocation3 + $0x2f] sm:$0xff]  ;;  %v4735_v8 = vpack.c.bf16 %v2218_v50, %v2218_v50 }
 0x459   :  { %v2282_v55 = vld [vmem:[#allocation3 + $0x25] sm:$0xff]  ;;  %v2091_v56 = vmax.f32 %v2083_v51, 0.0  ;;  %1911 = vrot.lane.b32.xlu0 %v4696_v54, %s5282_s3  ;;  %v4914_v1 = vpop.f32.mrf.mxu0  ;;  %v4704_v11 = vpack.c.bf16 %v1947_v47, %v1947_v47  ;;  %v2092_v18 = vmax.f32 %v2084_v6, 0.0  ;;  %v2283_v15 = vld [vmem:[#allocation3 + $0x2d] sm:$0xff] }
 0x45a   :  { %v4712_v58 = vpack.c.bf16 %v2019_v14, %v2019_v14  ;;  %v2139_v59 = vld [vmem:[#allocation3 + $0x28] sm:$0xff]  ;;  %v2290_v2 = vmax.f32 %v2282_v55, 0.0  ;;  %v1720_v7 = vadd.f32 %v4913_v60, %v5883_v26  ;;  %v4713_v17 = vpack.c.bf16 %v2020_v3, %v2020_v3  ;;  %v3463_v51 = vld [vmem:[#allocation3 + $0x46] sm:$0x3] }
 0x45b   :  { %v2147_v61 = vmax.f32 %v2139_v59, 0.0  ;;  %v4720_v4 = vpack.c.bf16 %v2091_v56, %v2091_v56  ;;  %v4915_v13 = vpop.f32.mrf.mxu0  ;;  %v1868_v16 = vld [vmem:[#allocation3 + $0x29] sm:$0xff]  ;;  %v4721_v20 = vpack.c.bf16 %v2092_v18, %v2092_v18  ;;  %v2291_v38 = vmax.f32 %v2283_v15, 0.0 }
 0x45c   :  { %2402 = vst.msk [vmem:[#allocation4 + $0x2c] sm:$0xf] %vm926_vm1, %v4712_v58  ;;  %v1785_v10 = vadd.f32 %v5961_v53, %v1720_v7  ;;  %v4916_v19 = vadd.f32 %v4915_v13, %v4914_v1  ;;  %2253 = vrot.lane.b32.xlu1 %v4735_v8, %s5283_s1  ;;  %2403 = vst.msk [vmem:[#allocation4 + $0x38] sm:$0xf] %vm926_vm1, %v4713_v17  ;;  %v4743_v53 = vpack.c.bf16 %v2290_v2, %v2290_v2  ;;  %v1940_v29 = vld [vmem:[#allocation3 + $0x2a] sm:$0xff] }
 0x45d   :  { %v4728_v12 = vpack.c.bf16 %v2147_v61, %v2147_v61  ;;  %2131 = vst.msk [vmem:[#allocation4 + $0x34] sm:$0xf] %vm926_vm1, %v4720_v4  ;;  %1983 = vrot.lane.b32.xlu0 %v4704_v11, %s5283_s1  ;;  %v1876_v27 = vmax.f32 %v1868_v16, 0.0  ;;  %v2211_v30 = vld [vmem:[#allocation3 + $0x2c] sm:$0xff]  ;;  %2132 = vst.msk [vmem:[#allocation4 + $0x40] sm:$0xf] %vm926_vm1, %v4721_v20  ;;  %v4744_v42 = vpack.c.bf16 %v2291_v38, %v2291_v38 }
 0x45e   :  { %v1797_v24 = vmul.f32 %v6020_v22, %v1785_v10  ;;  %v1723_v25 = vadd.f32 %v4916_v19, %v5883_v26  ;;  %v1948_v36 = vmax.f32 %v1940_v29, 0.0  ;;  %v2219_v37 = vmax.f32 %v2211_v30, 0.0 }
 0x45f   :  { %1860 = vst.msk [vmem:[#allocation4 + $0x3c] sm:$0xf] %vm926_vm1, %v4728_v12  ;;  %v4697_v35 = vpack.c.bf16 %v1876_v27, %v1876_v27  ;;  %v3471_v61 = vmax.f32 %v3463_v51, 0.0 }
 0x460   :  { %1805 = vst.msk [vmem:[#allocation3 + $0x37] sm:$0xff] %vm859_vm14, %v1797_v24  ;;  %v1788_v23 = vadd.f32 %v5986_v21, %v1723_v25  ;;  %2325 = vrot.lane.b32.xlu1 %v4743_v53, %s5284_s20  ;;  %v4705_v21 = vpack.c.bf16 %v1948_v36, %v1948_v36  ;;  %v4736_v33 = vpack.c.bf16 %v2219_v37, %v2219_v37  ;;  %v2286_v36 = vld [vmem:[#allocation3 + $0x45] sm:$0x3] }
 0x461   :  { %2055 = vrot.lane.b32.xlu0 %v4712_v58, %s5284_s20 }
 0x462   :  { %v1798_v26 = vmul.f32 %v6032_v34, %v1788_v23 }
 0x463   :  { %v5191_v31 = vld [vmem:[#allocation4 + $0x20] ss:$12 sps:$4 sm:$0xff]  }
 0x464   :  { %5067 = vmatmul.mubr.msk.bf16.vlgmr.msra.gmra.mxu1 %vm859_vm14, %v5191_v31  ;;  %1806 = vst.msk [vmem:[#allocation3 + $0x3f] sm:$0x3] %vm884_vm2, %v1798_v26  ;;  %1913 = vrot.lane.b32.xlu1 %v4697_v35, %s5282_s3 }
 0x465   :  { %2183 = vrot.lane.b32.xlu0 %v4728_v12, %s5282_s3  ;;  %v4827_v12 = vpack.c.bf16 %v3471_v61, %v3471_v61 }
 0x467   :  { %v2140_v39 = vld [vmem:[#allocation3 + $0x30] sm:$0xff]  ;;  %v1814_v5 = vld [vmem:[#allocation3 + $0x38] sm:$0x3]  ;;  %v1942_v18 = vld [vmem:[#allocation3 + $0x3a] sm:$0x3] }
 0x468   :  { %v1869_v28 = vld [vmem:[#allocation3 + $0x31] sm:$0xff]  ;;  %1985 = vrot.lane.b32.xlu1 %v4705_v21, %s5283_s1  ;;  %v2148_v32 = vmax.f32 %v2140_v39, 0.0  ;;  %v1822_v52 = vmax.f32 %v1814_v5, 0.0  ;;  %v1870_v7 = vld [vmem:[#allocation3 + $0x39] sm:$0x3]  ;;  %v1950_v25 = vmax.f32 %v1942_v18, 0.0 }
 0x469   :  { %2255 = vrot.lane.b32.xlu0 %v4736_v33, %s5283_s1  ;;  %v2356_v40 = vld [vmem:[#allocation3 + $0x36] sm:$0xff]  ;;  %v1877_v44 = vmax.f32 %v1869_v28, 0.0  ;;  %v1878_v16 = vmax.f32 %v1870_v7, 0.0  ;;  %v2294_v33 = vmax.f32 %v2286_v36, 0.0  ;;  %v6069_v28 = vpop.permute.xlu1 %2261 }
 0x46a   :  { %v2364_v41 = vmax.f32 %v2356_v40, 0.0  ;;  %v4729_v43 = vpack.c.bf16 %v2148_v32, %v2148_v32  ;;  %v2212_v45 = vld [vmem:[#allocation3 + $0x34] sm:$0xff]  ;;  %v4691_v59 = vpack.c.bf16 %v1822_v52, %v1822_v52  ;;  %v4707_v30 = vpack.c.bf16 %v1950_v25, %v1950_v25 }
 0x46b   :  { %v1941_v46 = vld [vmem:[#allocation3 + $0x32] sm:$0xff]  ;;  %v2357_v49 = vld [vmem:[#allocation3 + $0x3e] sm:$0xff]  ;;  %v4698_v54 = vpack.c.bf16 %v1877_v44, %v1877_v44  ;;  %v2220_v47 = vmax.f32 %v2212_v45, 0.0  ;;  %v4699_v20 = vpack.c.bf16 %v1878_v16, %v1878_v16  ;;  %v4747_v39 = vpack.c.bf16 %v2294_v33, %v2294_v33 }
 0x46c   :  { %v4753_v48 = vpack.c.bf16 %v2364_v41, %v2364_v41  ;;  %2057 = vrot.lane.b32.xlu1 %v4713_v17, %s5284_s20  ;;  %v2365_v50 = vmax.f32 %v2357_v49, 0.0  ;;  %1861 = vst.msk [vmem:[#allocation4 + $0x48] sm:$0xf] %vm926_vm1, %v4729_v43  ;;  %v6044_v14 = vld [vmem:[#allocation3 + $0x37] sm:$0xff]  ;;  %v1949_v55 = vmax.f32 %v1941_v46, 0.0 }
 0x46d   :  { %2327 = vrot.lane.b32.xlu0 %v4744_v42, %s5284_s20  ;;  %v2086_v57 = vld [vmem:[#allocation3 + $0x3f] sm:$0x3]  ;;  %v2284_v58 = vld [vmem:[#allocation3 + $0x35] sm:$0xff]  ;;  %v2093_v60 = vmax.f32 %v6044_v14, 0.0  ;;  %1862 = vst.msk [vmem:[#allocation4 + $0x54] sm:$0x1] %vm934_vm15, %v4691_v59  ;;  %v4737_v2 = vpack.c.bf16 %v2220_v47, %v2220_v47 }
 0x46e   :  { %2404 = vst.msk [vmem:[#allocation4 + $0x44] sm:$0xf] %vm926_vm1, %v4753_v48  ;;  %v4754_v56 = vpack.c.bf16 %v2365_v50, %v2365_v50  ;;  %v2094_v62 = vmax.f32 %v2086_v57, 0.0  ;;  %v4706_v3 = vpack.c.bf16 %v1949_v55, %v1949_v55  ;;  %v2292_v4 = vmax.f32 %v2284_v58, 0.0  ;;  %v2141_v8 = vld [vmem:[#allocation3 + $0x38] sm:$0xff] }
 0x46f   :  { %v4722_v1 = vpack.c.bf16 %v2093_v60, %v2093_v60  ;;  %v2149_v17 = vmax.f32 %v2141_v8, 0.0  ;;  %v2213_v19 = vld [vmem:[#allocation3 + $0x3c] sm:$0xff] }
 0x470   :  { %2185 = vrot.lane.b32.xlu1 %v4729_v43, %s5282_s3  ;;  %2405 = vst.msk [vmem:[#allocation4 + $0x50] sm:$0xf] %vm926_vm1, %v4754_v56  ;;  %v4723_v6 = vpack.c.bf16 %v2094_v62, %v2094_v62  ;;  %v4745_v13 = vpack.c.bf16 %v2292_v4, %v2292_v4  ;;  %v2221_v53 = vmax.f32 %v2213_v19, 0.0  ;;  %v2142_v27 = vld [vmem:[#allocation3 + $0x40] sm:$0x3] }
 0x471   :  { %1915 = vrot.lane.b32.xlu0 %v4698_v54, %s5282_s3  ;;  %2133 = vst.msk [vmem:[#allocation4 + $0x4c] sm:$0xf] %vm926_vm1, %v4722_v1  ;;  %v4730_v24 = vpack.c.bf16 %v2149_v17, %v2149_v17  ;;  %v2285_v29 = vld [vmem:[#allocation3 + $0x3d] sm:$0xff]  ;;  %v2150_v31 = vmax.f32 %v2142_v27, 0.0 }
 0x472   :  { %2134 = vst.msk [vmem:[#allocation4 + $0x58] sm:$0x1] %vm934_vm15, %v4723_v6  ;;  %v4738_v23 = vpack.c.bf16 %v2221_v53, %v2221_v53  ;;  %v2293_v26 = vmax.f32 %v2285_v29, 0.0  ;;  %v2014_v35 = vld [vmem:[#allocation3 + $0x3e] sm:$0x3] }
 0x473   :  { %v4731_v37 = vpack.c.bf16 %v2150_v31, %v2150_v31  ;;  %v2022_v21 = vmax.f32 %v2014_v35, 0.0 }
 0x474   :  { %2257 = vrot.lane.b32.xlu1 %v4737_v2, %s5283_s1  ;;  %v4746_v15 = vpack.c.bf16 %v2293_v26, %v2293_v26 }
 0x475   :  { %1987 = vrot.lane.b32.xlu0 %v4706_v3, %s5283_s1  ;;  %v5192_v11 = vld [vmem:[#allocation4 + $0x38] ss:$12 sps:$4 sm:$0xff]   ;;  %v4715_v38 = vpack.c.bf16 %v2022_v21, %v2022_v21 }
 0x476   :  { %5070 = vmatprep.mubr.msk.bf16.mxu1 %vm859_vm14, %v5192_v11 }
 0x477   :  { %v5193_v10 = vld [vmem:[#allocation4 + $0x50] ss:$12 sps:$4 sm:$0x1f]  }
 0x478   :  { %2329 = vrot.lane.b32.xlu1 %v4745_v13, %s5284_s20  ;;  %3511 = vst.msk [vmem:[#allocation4 + $0x5c] sm:$0x1] %vm934_vm15, %v4827_v12  ;;  %5071 = vmatmul.mubr.msk.bf16.gmra.mxu1 %vm859_vm14, %v5193_v10 }
 0x479   :  { %2059 = vrot.lane.b32.xlu0 %v4753_v48, %s5284_s20 }
 0x47c   :  { %1917 = vrot.lane.b32.xlu1 %v4699_v20, %s5282_s3 }
 0x47d   :  { %2187 = vrot.lane.b32.xlu0 %v4730_v24, %s5282_s3 }
 0x480   :  { %1989 = vrot.lane.b32.xlu1 %v4707_v30, %s5283_s1 }
 0x481   :  { %2259 = vrot.lane.b32.xlu0 %v4738_v23, %s5283_s1 }
 0x484   :  { %2189 = vrot.lane.b32.xlu1 %v4731_v37, %s5282_s3 }
 0x485   :  { %2331 = vrot.lane.b32.xlu0 %v4746_v15, %s5284_s20 }
 0x488   :  { %2061 = vrot.lane.b32.xlu1 %v4715_v38, %s5284_s20 }
 0x48c   :  { %2333 = vrot.lane.b32.xlu1 %v4747_v39, %s5284_s20 }
 0x49a   :  { %v1904_v32 = vpop.permute.xlu0 %1903 }
 0x49b   :  { %1927 = vst.msk [vmem:[#allocation4] sm:$0xf] %vm992_vm3, %v1904_v32 }
 0x49e   :  { %v1976_v41 = vpop.permute.xlu0 %1975 }
 0x49f   :  { %v1906_v40 = vpop.permute.xlu1 %1905  ;;  %1999 = vst.msk [vmem:[#allocation4] sm:$0xf] %vm1058_vm4, %v1976_v41 }
 0x4a0   :  { %1928 = vst.msk [vmem:[#allocation4 + $0xc] sm:$0xf] %vm992_vm3, %v1906_v40 }
 0x4a2   :  { %v2048_v43 = vpop.permute.xlu0 %2047 }
 0x4a3   :  { %v1978_v42 = vpop.permute.xlu1 %1977  ;;  %2071 = vst.msk [vmem:[#allocation4] sm:$0xf] %vm1124_vm5, %v2048_v43  ;;  %v5219_v43 = vld [vmem:[%s6518_s10] sm:$0xff]  }
 0x4a4   :  { %2000 = vst.msk [vmem:[#allocation4 + $0xc] sm:$0xf] %vm1058_vm4, %v1978_v42  ;;  %5074 = vmatprep.subr.bf16.mxu1 %v5219_v43 }
 0x4a5   :  { %5075 = vmatpush3.bf16.msra.mxu1 %v5219_v43 }
 0x4a6   :  { %v2176_v5 = vpop.permute.xlu0 %2175 }
 0x4a7   :  { %v2050_v44 = vpop.permute.xlu1 %2049  ;;  %2199 = vst.msk [vmem:[#allocation4 + $0x4] sm:$0xf] %vm992_vm3, %v2176_v5 }
 0x4a8   :  { %2072 = vst.msk [vmem:[#allocation4 + $0xc] sm:$0xf] %vm1124_vm5, %v2050_v44 }
 0x4aa   :  { %v2248_v45 = vpop.permute.xlu0 %2247 }
 0x4ab   :  { %2271 = vst.msk [vmem:[#allocation4 + $0x4] sm:$0xf] %vm1058_vm4, %v2248_v45 }
 0x4ae   :  { %v2320_v46 = vpop.permute.xlu0 %2319 }
 0x4af   :  { %2343 = vst.msk [vmem:[#allocation4 + $0x4] sm:$0xf] %vm1124_vm5, %v2320_v46 }
 0x4b2   :  { %v2178_v48 = vpop.permute.xlu1 %2177 }
 0x4b3   :  { %v1908_v49 = vpop.permute.xlu0 %1907  ;;  %2200 = vst.msk [vmem:[#allocation4 + $0x10] sm:$0xf] %vm992_vm3, %v2178_v48 }
 0x4b4   :  { %1929 = vst.msk [vmem:[#allocation4 + $0x18] sm:$0xf] %vm992_vm3, %v1908_v49 }
 0x4b6   :  { %v2250_v50 = vpop.permute.xlu1 %2249  ;;  %v2407_v58 = vld [vmem:[#allocation4] sm:$0xff] }
 0x4b7   :  { %v1980_v51 = vpop.permute.xlu0 %1979  ;;  %2272 = vst.msk [vmem:[#allocation4 + $0x10] sm:$0xf] %vm1058_vm4, %v2250_v50 }
 0x4b8   :  { %2001 = vst.msk [vmem:[#allocation4 + $0x18] sm:$0xf] %vm1058_vm4, %v1980_v51 }
 0x4ba   :  { %v2322_v52 = vpop.permute.xlu1 %2321 }
 0x4bb   :  { %v2052_v54 = vpop.permute.xlu0 %2051  ;;  %2344 = vst.msk [vmem:[#allocation4 + $0x10] sm:$0xf] %vm1124_vm5, %v2322_v52 }
 0x4bc   :  { %2073 = vst.msk [vmem:[#allocation4 + $0x18] sm:$0xf] %vm1124_vm5, %v2052_v54 }
 0x4be   :  { %v1910_v47 = vpop.permute.xlu1 %1909 }
 0x4bf   :  { %v2180_v55 = vpop.permute.xlu0 %2179  ;;  %1930 = vst.msk [vmem:[#allocation4 + $0x24] sm:$0xf] %vm992_vm3, %v1910_v47 }
 0x4c0   :  { %2201 = vst.msk [vmem:[#allocation4 + $0x1c] sm:$0xf] %vm992_vm3, %v2180_v55 }
 0x4c2   :  { %v1982_v56 = vpop.permute.xlu1 %1981  ;;  %v2409_v59 = vld [vmem:[#allocation4 + $0xc] sm:$0xff] }
 0x4c3   :  { %v2252_v57 = vpop.permute.xlu0 %2251  ;;  %v5210_v60 = vld [vmem:[#allocation4 + $0x4] ss:$12 sps:$4 sm:$0xff]   ;;  %2002 = vst.msk [vmem:[#allocation4 + $0x24] sm:$0xf] %vm1058_vm4, %v1982_v56  ;;  %v4419_v61 = vcombine.low %v2407_v58, %v2409_v59 }
 0x4c4   :  { %2273 = vst.msk [vmem:[#allocation4 + $0x1c] sm:$0xf] %vm1058_vm4, %v2252_v57  ;;  %2678 = vmatprep.mubr.bf16.mxu0 %v5210_v60 }
 0x4c5   :  { %2679 = vmatmul.mubr.bf16.vlgmr.msra.gmra.mxu0 %v4419_v61 }
 0x4c6   :  { %v2054_v62 = vpop.permute.xlu1 %2053 }
 0x4c7   :  { %v2324_v1 = vpop.permute.xlu0 %2323  ;;  %2074 = vst.msk [vmem:[#allocation4 + $0x24] sm:$0xf] %vm1124_vm5, %v2054_v62 }
 0x4c8   :  { %2345 = vst.msk [vmem:[#allocation4 + $0x1c] sm:$0xf] %vm1124_vm5, %v2324_v1 }
 0x4ca   :  { %v2182_v2 = vpop.permute.xlu1 %2181 }
 0x4cb   :  { %v1912_v3 = vpop.permute.xlu0 %1911  ;;  %2202 = vst.msk [vmem:[#allocation4 + $0x28] sm:$0xf] %vm992_vm3, %v2182_v2 }
 0x4cc   :  { %1931 = vst.msk [vmem:[#allocation4 + $0x30] sm:$0xf] %vm992_vm3, %v1912_v3 }
 0x4ce   :  { %v2254_v4 = vpop.permute.xlu1 %2253 }
 0x4cf   :  { %v1984_v6 = vpop.permute.xlu0 %1983  ;;  %2274 = vst.msk [vmem:[#allocation4 + $0x28] sm:$0xf] %vm1058_vm4, %v2254_v4  ;;  %v2411_v17 = vld [vmem:[#allocation4 + $0x18] sm:$0xff] }
 0x4d0   :  { %2003 = vst.msk [vmem:[#allocation4 + $0x30] sm:$0xf] %vm1058_vm4, %v1984_v6 }
 0x4d2   :  { %v2326_v7 = vpop.permute.xlu1 %2325 }
 0x4d3   :  { %v2056_v8 = vpop.permute.xlu0 %2055  ;;  %2346 = vst.msk [vmem:[#allocation4 + $0x28] sm:$0xf] %vm1124_vm5, %v2326_v7 }
 0x4d4   :  { %2075 = vst.msk [vmem:[#allocation4 + $0x30] sm:$0xf] %vm1124_vm5, %v2056_v8 }
 0x4d6   :  { %v1914_v11 = vpop.permute.xlu1 %1913 }
 0x4d7   :  { %v2184_v12 = vpop.permute.xlu0 %2183  ;;  %1932 = vst.msk [vmem:[#allocation4 + $0x3c] sm:$0xf] %vm992_vm3, %v1914_v11 }
 0x4d8   :  { %2203 = vst.msk [vmem:[#allocation4 + $0x34] sm:$0xf] %vm992_vm3, %v2184_v12 }
 0x4da   :  { %v1986_v13 = vpop.permute.xlu1 %1985  ;;  %v2413_v18 = vld [vmem:[#allocation4 + $0x24] sm:$0xff] }
 0x4db   :  { %v2256_v16 = vpop.permute.xlu0 %2255  ;;  %v5212_v10 = vld [vmem:[#allocation4 + $0x1c] ss:$12 sps:$4 sm:$0xff]   ;;  %2004 = vst.msk [vmem:[#allocation4 + $0x3c] sm:$0xf] %vm1058_vm4, %v1986_v13  ;;  %v4422_v19 = vcombine.low %v2411_v17, %v2413_v18 }
 0x4dc   :  { %2275 = vst.msk [vmem:[#allocation4 + $0x34] sm:$0xf] %vm1058_vm4, %v2256_v16  ;;  %2686 = vmatprep.mubr.bf16.mxu0 %v5212_v10 }
 0x4dd   :  { %2687 = vmatmul.mubr.bf16.gmra.mxu0 %v4422_v19 }
 0x4de   :  { %v2058_v20 = vpop.permute.xlu1 %2057 }
 0x4df   :  { %v2328_v24 = vpop.permute.xlu0 %2327  ;;  %2076 = vst.msk [vmem:[#allocation4 + $0x3c] sm:$0xf] %vm1124_vm5, %v2058_v20 }
 0x4e0   :  { %2347 = vst.msk [vmem:[#allocation4 + $0x34] sm:$0xf] %vm1124_vm5, %v2328_v24 }
 0x4e2   :  { %v2186_v25 = vpop.permute.xlu1 %2185 }
 0x4e3   :  { %v1916_v53 = vpop.permute.xlu0 %1915  ;;  %2204 = vst.msk [vmem:[#allocation4 + $0x40] sm:$0xf] %vm992_vm3, %v2186_v25 }
 0x4e4   :  { %1933 = vst.msk [vmem:[#allocation4 + $0x48] sm:$0xf] %vm992_vm3, %v1916_v53 }
 0x4e6   :  { %v2258_v27 = vpop.permute.xlu1 %2257 }
 0x4e7   :  { %v1988_v29 = vpop.permute.xlu0 %1987  ;;  %2276 = vst.msk [vmem:[#allocation4 + $0x40] sm:$0xf] %vm1058_vm4, %v2258_v27  ;;  %v2415_v37 = vld [vmem:[#allocation4 + $0x30] sm:$0xff] }
 0x4e8   :  { %2005 = vst.msk [vmem:[#allocation4 + $0x48] sm:$0xf] %vm1058_vm4, %v1988_v29 }
 0x4ea   :  { %v2330_v30 = vpop.permute.xlu1 %2329 }
 0x4eb   :  { %v2060_v23 = vpop.permute.xlu0 %2059  ;;  %2348 = vst.msk [vmem:[#allocation4 + $0x40] sm:$0xf] %vm1124_vm5, %v2330_v30 }
 0x4ec   :  { %2077 = vst.msk [vmem:[#allocation4 + $0x48] sm:$0xf] %vm1124_vm5, %v2060_v23 }
 0x4ee   :  { %v1918_v31 = vpop.permute.xlu1 %1917 }
 0x4ef   :  { %v2188_v26 = vpop.permute.xlu0 %2187  ;;  %1934 = vst.msk [vmem:[#allocation4 + $0x54] sm:$0x1] %vm1000_vm6, %v1918_v31 }
 0x4f0   :  { %2205 = vst.msk [vmem:[#allocation4 + $0x4c] sm:$0xf] %vm992_vm3, %v2188_v26 }
 0x4f2   :  { %v1990_v35 = vpop.permute.xlu1 %1989  ;;  %v2417_v15 = vld [vmem:[#allocation4 + $0x3c] sm:$0xff] }
 0x4f3   :  { %v2260_v36 = vpop.permute.xlu0 %2259  ;;  %v5214_v21 = vld [vmem:[#allocation4 + $0x34] ss:$12 sps:$4 sm:$0xff]   ;;  %2006 = vst.msk [vmem:[#allocation4 + $0x54] sm:$0x1] %vm1066_vm7, %v1990_v35  ;;  %v4425_v33 = vcombine.low %v2415_v37, %v2417_v15 }
 0x4f4   :  { %2277 = vst.msk [vmem:[#allocation4 + $0x4c] sm:$0xf] %vm1058_vm4, %v2260_v36  ;;  %2694 = vmatprep.mubr.bf16.mxu0 %v5214_v21 }
 0x4f5   :  { %2695 = vmatmul.mubr.bf16.gmra.mxu0 %v4425_v33 }
 0x4f6   :  { %v2190_v38 = vpop.permute.xlu1 %2189 }
 0x4f7   :  { %v2332_v39 = vpop.permute.xlu0 %2331  ;;  %2206 = vst.msk [vmem:[#allocation4 + $0x58] sm:$0x1] %vm1000_vm6, %v2190_v38 }
 0x4f8   :  { %2349 = vst.msk [vmem:[#allocation4 + $0x4c] sm:$0xf] %vm1124_vm5, %v2332_v39 }
 0x4f9   :  { %2278 = vst.msk [vmem:[#allocation4 + $0x58] sm:$0x1] %vm1066_vm7, %v6069_v28  ;;  %v4418_v28 = vld [vmem:[%s6519_s9] ss:$0 sm:$0xff] }
 0x4fa   :  { %v2062_v32 = vpop.permute.xlu1 %2061 }
 0x4fb   :  { %2078 = vst.msk [vmem:[#allocation4 + $0x54] sm:$0x1] %vm1132_vm8, %v2062_v32 }
 0x4fe   :  { %v2334_v40 = vpop.permute.xlu1 %2333 }
 0x4ff   :  { %2350 = vst.msk [vmem:[#allocation4 + $0x58] sm:$0x1] %vm1132_vm8, %v2334_v40 }
 0x502   :  { %v5218_v42 = vld [vmem:[#allocation4 + $0x48] ss:$12 sps:$4 sm:$0x1f]  }
 0x506   :  { %v5216_v41 = vld [vmem:[#allocation4 + $0x4c] ss:$12 sps:$4 sm:$0x1f]  }
 0x507   :  { %2702 = vmatprep.mubr.bf16.mxu0 %v5216_v41 }
 0x508   :  { %2703 = vmatmul.mubr.bf16.gmra.mxu0 %v5218_v42 }
 0x524   :  { %v5068_v44 = vpop.f32.mrf.mxu1 }
 0x526   :  { %v2745_v45 = vpop.f32.mrf.mxu1 }
 0x528   :  { %v5069_v51 = vpop.f32.mrf.mxu1 }
 0x52a   :  { %v2748_v56 = vpop.f32.mrf.mxu1 }
 0x538   :  { %v5072_v17 = vpop.f32.mrf.mxu1 }
 0x53a   :  { %v2761_v10 = vpop.f32.mrf.mxu1 }
 0x53c   :  { %v5073_v53 = vpop.f32.mrf.mxu1 }
 0x53e   :  { %v2764_v31 = vpop.f32.mrf.mxu1 }
 0x585   :  { %v4939_v5 = vpop.f32.mrf.mxu0 }
 0x587   :  { %v4940_v46 = vpop.f32.mrf.mxu0 }
 0x588   :  { %v4941_v48 = vadd.f32 %v4940_v46, %v4939_v5  ;;  %v3319_v46 = vld [vmem:[#allocation3 + $0x44] sm:$0x3] }
 0x589   :  { %v4942_v49 = vpop.f32.mrf.mxu0 }
 0x58a   :  { %v2681_v50 = vadd.f32 %v4941_v48, %v4418_v28  ;;  %v3327_v48 = vmax.f32 %v3319_v46, 0.0 }
 0x58b   :  { %v4943_v52 = vpop.f32.mrf.mxu0 }
 0x58c   :  { %v4944_v54 = vadd.f32 %v4943_v52, %v4942_v49  ;;  %v2746_v47 = vadd.f32 %v2745_v45, %v2681_v50  ;;  %v4811_v49 = vpack.c.bf16 %v3327_v48, %v3327_v48  ;;  %v5221_v50 = vld [vmem:[%s6520_s12 + $0x88] sm:$0xff]  }
 0x58d   :  { %5084 = vmatprep.subr.bf16.mxu1 %v5221_v50 }
 0x58e   :  { %v2684_v55 = vadd.f32 %v4944_v54, %v4418_v28  ;;  %v2776_v58 = vmax.f32 %v2746_v47, 0.0  ;;  %3366 = vrot.lane.b32.xlu1 %v4811_v49, %s5283_s1 }
 0x590   :  { %v2749_v57 = vadd.f32 %v2748_v56, %v2684_v55  ;;  %v5262_v55 = vld [vmem:[%s6515_s0 + $0x10] sm:$0xff] }
 0x592   :  { %v2777_v59 = vmax.f32 %v2749_v57, 0.0 }
 0x594   :  { %v2784_v60 = vpack.c.bf16 %v2777_v59, %v2776_v58 }
 0x596   :  { %5076 = vmatprep.mubr.msk.bf16.mxu1 %vm139_vm0, %v2784_v60  ;;  %v5263_v60 = vld [vmem:[%s6515_s0] sm:$0xff] }
 0x59d   :  { %v4945_v61 = vpop.f32.mrf.mxu0 }
 0x59f   :  { %v4946_v62 = vpop.f32.mrf.mxu0 }
 0x5a0   :  { %v4947_v1 = vadd.f32 %v4946_v62, %v4945_v61 }
 0x5a1   :  { %v4948_v2 = vpop.f32.mrf.mxu0 }
 0x5a2   :  { %v2689_v3 = vadd.f32 %v4947_v1, %v4418_v28 }
 0x5a3   :  { %v4949_v4 = vpop.f32.mrf.mxu0 }
 0x5a4   :  { %v4950_v6 = vadd.f32 %v4949_v4, %v4948_v2  ;;  %v2754_v7 = vadd.f32 %v5068_v44, %v2689_v3  ;;  %v5264_v2 = vld [vmem:[#allocation3 + $0x7] sm:$0xff]  ;;  %v5265_v4 = vld [vmem:[%s6515_s0 + $0x18] sm:$0xff] }
 0x5a6   :  { %v2692_v8 = vadd.f32 %v4950_v6, %v4418_v28  ;;  %v2778_v12 = vmax.f32 %v2754_v7, 0.0 }
 0x5a8   :  { %v2757_v11 = vadd.f32 %v5069_v51, %v2692_v8  ;;  %v6140_v51 = vld [vmem:[%s6521_s11] ss:$0 sm:$0xff]  ;;  %v5266_v8 = vld [vmem:[%s6515_s0 + $0x8] sm:$0xff] }
 0x5aa   :  { %v2779_v13 = vmax.f32 %v2757_v11, 0.0 }
 0x5ac   :  { %v2785_v16 = vpack.c.bf16 %v2779_v13, %v2778_v12  ;;  %v5267_v12 = vld [vmem:[#allocation3 + $0xf] sm:$0xff] }
 0x5ae   :  { %5077 = vmatmul.mubr.msk.bf16.vlgmr.msra.gmra.mxu1 %vm139_vm0, %v2785_v16 }
 0x5af   :  { %5085 = vmatpush3.bf16.msra.mxu1 %v5221_v50  ;;  %v5226_v50 = vld [vmem:[%s6520_s12 + $0x78] sm:$0xff]  }
 0x5b0   :  { %4974 = vmatprep.subr.bf16.mxu0 %v5226_v50  ;;  %v5240_v50 = vld [vmem:[%s6520_s12 + $0x40] sm:$0xff]  }
 0x5b5   :  { %v4951_v18 = vpop.f32.mrf.mxu0 }
 0x5b7   :  { %v4952_v19 = vpop.f32.mrf.mxu0 }
 0x5b8   :  { %v4953_v20 = vadd.f32 %v4952_v19, %v4951_v18 }
 0x5b9   :  { %v4954_v24 = vpop.f32.mrf.mxu0 }
 0x5ba   :  { %v2697_v25 = vadd.f32 %v4953_v20, %v4418_v28 }
 0x5bb   :  { %v4955_v27 = vpop.f32.mrf.mxu0 }
 0x5bc   :  { %v4956_v29 = vadd.f32 %v4955_v27, %v4954_v24  ;;  %v2762_v30 = vadd.f32 %v2761_v10, %v2697_v25 }
 0x5be   :  { %v2700_v23 = vadd.f32 %v4956_v29, %v4418_v28  ;;  %v2780_v35 = vmax.f32 %v2762_v30, 0.0 }
 0x5c0   :  { %v2765_v26 = vadd.f32 %v2764_v31, %v2700_v23 }
 0x5c2   :  { %v2781_v36 = vmax.f32 %v2765_v26, 0.0 }
 0x5c4   :  { %v2786_v37 = vpack.c.bf16 %v2781_v36, %v2780_v35 }
 0x5c6   :  { %5080 = vmatprep.mubr.msk.bf16.mxu1 %vm139_vm0, %v2786_v37 }
 0x5c8   :  { %v4957_v15 = vpop.f32.mrf.mxu0 }
 0x5ca   :  { %v4958_v21 = vpop.f32.mrf.mxu0 }
 0x5cb   :  { %v4959_v33 = vadd.f32 %v4958_v21, %v4957_v15 }
 0x5cc   :  { %v4960_v38 = vpop.f32.mrf.mxu0 }
 0x5cd   :  { %v2705_v39 = vadd.f32 %v4959_v33, %v4418_v28 }
 0x5ce   :  { %v4961_v32 = vpop.f32.mrf.mxu0 }
 0x5cf   :  { %v4962_v40 = vadd.f32 %v4961_v32, %v4960_v38  ;;  %v2770_v41 = vadd.f32 %v5072_v17, %v2705_v39 }
 0x5d1   :  { %v2708_v42 = vadd.f32 %v4962_v40, %v4418_v28  ;;  %v2782_v44 = vmax.f32 %v2770_v41, 0.0  ;;  %v5222_v28 = vld [vmem:[%s6520_s12 + $0x80] sm:$0xff]  }
 0x5d2   :  { %5086 = vmatprep.subr.bf16.mxu1 %v5222_v28 }
 0x5d3   :  { %v2773_v43 = vadd.f32 %v5073_v53, %v2708_v42  ;;  %5087 = vmatpush3.bf16.msra.mxu1 %v5222_v28  ;;  %v5227_v28 = vld [vmem:[%s6520_s12 + $0x38] sm:$0xff]  }
 0x5d4   :  { %4975 = vmatpush3.bf16.msra.mxu0 %v5227_v28 }
 0x5d5   :  { %v2783_v5 = vmax.f32 %v2773_v43, 0.0 }
 0x5d7   :  { %v2787_v45 = vpack.c.bf16 %v2783_v5, %v2782_v44 }
 0x5d9   :  { %5081 = vmatmul.mubr.msk.bf16.gmra.mxu1 %vm139_vm0, %v2787_v45 }
 0x66e   :  { %v5078_v52 = vpop.f32.mrf.mxu1 }
 0x66f   :  { %v2858_v54 = vadd.f32 %v5078_v52, %v6140_v51  ;;  %v5228_v52 = vld [vmem:[%s6520_s12 + $0x70] sm:$0xff]  }
 0x670   :  { %v2849_v47 = vpop.f32.mrf.mxu1  ;;  %4976 = vmatprep.subr.bf16.mxu0 %v5228_v52 }
 0x671   :  { %v2890_v56 = vmul.f32 %v5262_v55, %v2858_v54  ;;  %v2850_v57 = vadd.f32 %v6140_v51, %v2849_v47 }
 0x672   :  { %v5079_v58 = vpop.f32.mrf.mxu1 }
 0x673   :  { %v2898_v59 = vadd.f32 %v2890_v56, %v5958_v0  ;;  %v2888_v61 = vmul.f32 %v5263_v60, %v2850_v57  ;;  %v2861_v62 = vadd.f32 %v5079_v58, %v6140_v51 }
 0x674   :  { %v2852_v1 = vpop.f32.mrf.mxu1 }
 0x675   :  { %2906 = vst.msk [vmem:[#allocation3 + $0x17] sm:$0xff] %vm859_vm14, %v2898_v59  ;;  %v2896_v3 = vadd.f32 %v5264_v2, %v2888_v61  ;;  %v2891_v6 = vmul.f32 %v5265_v4, %v2861_v62  ;;  %v2853_v7 = vadd.f32 %v6140_v51, %v2852_v1  ;;  %v5229_v61 = vld [vmem:[%s6520_s12 + $0x30] sm:$0xff]  }
 0x676   :  { %4977 = vmatpush3.bf16.msra.mxu0 %v5229_v61 }
 0x677   :  { %2904 = vst.msk [vmem:[#allocation3 + $0x7] sm:$0xff] %vm859_vm14, %v2896_v3  ;;  %v2899_v0 = vadd.f32 %v2891_v6, %v5973_v63  ;;  %v2889_v11 = vmul.f32 %v5266_v8, %v2853_v7  ;;  %v5230_v3 = vld [vmem:[%s6520_s12 + $0x68] sm:$0xff]  }
 0x678   :  { %4978 = vmatprep.subr.bf16.mxu0 %v5230_v3 }
 0x679   :  { %2907 = vst.msk [vmem:[#allocation3 + $0x1f] sm:$0xff] %vm859_vm14, %v2899_v0  ;;  %v2897_v13 = vadd.f32 %v5267_v12, %v2889_v11  ;;  %v5231_v12 = vld [vmem:[%s6520_s12 + $0x28] sm:$0xff]  }
 0x67a   :  { %4979 = vmatpush3.bf16.msra.mxu0 %v5231_v12 }
 0x67b   :  { %2905 = vst.msk [vmem:[#allocation3 + $0xf] sm:$0xff] %vm859_vm14, %v2897_v13 }
 0x67c   :  { %v3186_v16 = vld [vmem:[#allocation3 + $0x17] sm:$0xff] }
 0x67d   :  { %v3194_v17 = vmax.f32 %v3186_v16, 0.0 }
 0x67e   :  { %v2968_v18 = vld [vmem:[#allocation3 + $0x1] sm:$0xff] }
 0x67f   :  { %v3040_v10 = vld [vmem:[#allocation3 + $0x2] sm:$0xff]  ;;  %v2976_v19 = vmax.f32 %v2968_v18, 0.0  ;;  %v4790_v20 = vpack.c.bf16 %v3194_v17, %v3194_v17  ;;  %v5232_v18 = vld [vmem:[%s6520_s12 + $0x60] sm:$0xff]  }
 0x680   :  { %v2971_v24 = vld [vmem:[#allocation3 + $0x19] sm:$0xff]  ;;  %v3048_v29 = vmax.f32 %v3040_v10, 0.0  ;;  %v3112_v30 = vld [vmem:[#allocation3 + $0x6] sm:$0xff]  ;;  %4980 = vmatprep.subr.bf16.mxu0 %v5232_v18 }
 0x681   :  { %v3043_v25 = vld [vmem:[#allocation3 + $0x1a] sm:$0xff]  ;;  %v4764_v53 = vpack.c.bf16 %v2976_v19, %v2976_v19  ;;  %v2979_v27 = vmax.f32 %v2971_v24, 0.0  ;;  %3234 = vst.msk [vmem:[#allocation4 + $0x1c] sm:$0xf] %vm926_vm1, %v4790_v20  ;;  %v6166_v40 = vld [vmem:[#allocation3 + $0x7] sm:$0xff]  ;;  %v3120_v41 = vmax.f32 %v3112_v30, 0.0 }
 0x682   :  { %v3115_v63 = vld [vmem:[#allocation3 + $0x1e] sm:$0xff]  ;;  %v3456_v35 = vld [vmem:[#allocation3 + $0xe] sm:$0xff]  ;;  %v3457_v36 = vld [vmem:[#allocation3 + $0x16] sm:$0xff]  ;;  %v3051_v21 = vmax.f32 %v3043_v25, 0.0  ;;  %v4772_v44 = vpack.c.bf16 %v3048_v29, %v3048_v29  ;;  %v3192_v54 = vmax.f32 %v6166_v40, 0.0 }
 0x683   :  { %v3242_v23 = vld [vmem:[#allocation3 + $0x18] sm:$0xff]  ;;  %v3123_v31 = vmax.f32 %v3115_v63, 0.0  ;;  %v2912_v37 = vld [vmem:[#allocation3] sm:$0xff]  ;;  %3008 = vrot.lane.b32.xlu0 %v4764_v53, %s5282_s3  ;;  %v4767_v15 = vpack.c.bf16 %v2979_v27, %v2979_v27  ;;  %v3464_v33 = vmax.f32 %v3456_v35, 0.0  ;;  %v3465_v38 = vmax.f32 %v3457_v36, 0.0  ;;  %v3241_v39 = vld [vmem:[#allocation3 + $0x10] sm:$0xff] }
 0x684   :  { %v3250_v26 = vmax.f32 %v3242_v23, 0.0  ;;  %v3240_v32 = vld [vmem:[#allocation3 + $0x8] sm:$0xff]  ;;  %v3249_v46 = vmax.f32 %v3241_v39, 0.0  ;;  %v2920_v49 = vmax.f32 %v2912_v37, 0.0  ;;  %v4775_v47 = vpack.c.bf16 %v3051_v21, %v3051_v21  ;;  %v6194_v59 = vld [vmem:[#allocation3 + $0x1f] sm:$0xff]  ;;  %v5234_v25 = vld [vmem:[%s6520_s12 + $0x58] sm:$0xff]  }
 0x685   :  { %v4783_v42 = vpack.c.bf16 %v3123_v31, %v3123_v31  ;;  %3014 = vrot.lane.b32.xlu1 %v4767_v15, %s5282_s3  ;;  %v6169_v5 = vpack.c.bf16 %v3464_v33, %v3464_v33  ;;  %v6171_v45 = vpack.c.bf16 %v3465_v38, %v3465_v38  ;;  %v3248_v48 = vmax.f32 %v3240_v32, 0.0  ;;  %v6190_v56 = vld [vmem:[#allocation3 + $0xf] sm:$0xff]  ;;  %v3314_v62 = vld [vmem:[#allocation3 + $0x1c] sm:$0xff] }
 0x686   :  { %v4798_v43 = vpack.c.bf16 %v3250_v26, %v3250_v26  ;;  %v4797_v55 = vpack.c.bf16 %v3249_v46, %v3249_v46  ;;  %v2969_v57 = vld [vmem:[#allocation3 + $0x9] sm:$0xff]  ;;  %v4780_v60 = vpack.c.bf16 %v3120_v41, %v3120_v41  ;;  %v4756_v1 = vpack.c.bf16 %v2920_v49, %v2920_v49  ;;  %v3386_v11 = vld [vmem:[#allocation3 + $0x1d] sm:$0xff]  ;;  %v3313_v53 = vld [vmem:[#allocation3 + $0x14] sm:$0xff] }
 0x687   :  { %3506 = vst.msk [vmem:[#allocation4 + $0x20] sm:$0xf] %vm926_vm1, %v4783_v42  ;;  %3080 = vrot.lane.b32.xlu0 %v4772_v44, %s5283_s1  ;;  %3504 = vst.msk [vmem:[#allocation4 + $0x8] sm:$0xf] %vm926_vm1, %v6169_v5  ;;  %v6192_v58 = vpack.c.bf16 %v3248_v48, %v3248_v48  ;;  %v3193_v2 = vmax.f32 %v6190_v56, 0.0  ;;  %v4788_v4 = vpack.c.bf16 %v3192_v54, %v3192_v54  ;;  %v2977_v6 = vmax.f32 %v2969_v57, 0.0 }
 0x688   :  { %2963 = vst.msk [vmem:[#allocation4 + $0x24] sm:$0xf] %vm926_vm1, %v4798_v43  ;;  %3505 = vst.msk [vmem:[#allocation4 + $0x14] sm:$0xf] %vm926_vm1, %v6171_v45  ;;  %v3195_v7 = vmax.f32 %v6194_v59, 0.0  ;;  %v3322_v8 = vmax.f32 %v3314_v62, 0.0 }
 0x689   :  { %3086 = vrot.lane.b32.xlu1 %v4775_v47, %s5283_s1  ;;  %2962 = vst.msk [vmem:[#allocation4 + $0x18] sm:$0xf] %vm926_vm1, %v4797_v55  ;;  %2961 = vst.msk [vmem:[#allocation4 + $0xc] sm:$0xf] %vm926_vm1, %v6192_v58  ;;  %v4789_v0 = vpack.c.bf16 %v3193_v2, %v3193_v2  ;;  %v4765_v17 = vpack.c.bf16 %v2977_v6, %v2977_v6  ;;  %v3041_v10 = vld [vmem:[#allocation3 + $0xa] sm:$0xff]  ;;  %v3394_v20 = vmax.f32 %v3386_v11, 0.0 }
 0x68a   :  { %2960 = vst.msk [vmem:[#allocation4] sm:$0xf] %vm926_vm1, %v4756_v1  ;;  %3232 = vst.msk [vmem:[#allocation4 + $0x4] sm:$0xf] %vm926_vm1, %v4788_v4  ;;  %v4791_v13 = vpack.c.bf16 %v3195_v7, %v3195_v7  ;;  %v4806_v19 = vpack.c.bf16 %v3322_v8, %v3322_v8  ;;  %v5233_v24 = vld [vmem:[%s6520_s12 + $0x20] sm:$0xff]   ;;  %v3049_v63 = vmax.f32 %v3041_v10, 0.0 }
 0x68b   :  { %3152 = vrot.lane.b32.xlu0 %v4780_v60, %s5284_s20  ;;  %3233 = vst.msk [vmem:[#allocation4 + $0x10] sm:$0xf] %vm926_vm1, %v4789_v0  ;;  %v4814_v27 = vpack.c.bf16 %v3394_v20, %v3394_v20  ;;  %4981 = vmatpush3.bf16.msra.mxu0 %v5233_v24  ;;  %v5235_v29 = vld [vmem:[%s6520_s12 + $0x18] sm:$0xff]   ;;  %v5236_v23 = vld [vmem:[%s6520_s12 + $0x50] sm:$0xff]   ;;  %v3321_v26 = vmax.f32 %v3313_v53, 0.0  ;;  %v5238_v21 = vld [vmem:[%s6520_s12 + $0x48] sm:$0xff]  }
 0x68c   :  { %3235 = vst.msk [vmem:[#allocation4 + $0x28] sm:$0xf] %vm926_vm1, %v4791_v13  ;;  %v3312_v30 = vld [vmem:[#allocation3 + $0xc] sm:$0xff]  ;;  %4982 = vmatprep.subr.bf16.mxu0 %v5234_v25  ;;  %v4773_v31 = vpack.c.bf16 %v3049_v63, %v3049_v63  ;;  %v3385_v41 = vld [vmem:[#allocation3 + $0x15] sm:$0xff]  ;;  %v5239_v46 = vld [vmem:[%s6520_s12 + $0x8] sm:$0xff]  }
 0x68d   :  { %3158 = vrot.lane.b32.xlu1 %v4783_v42, %s5284_s20  ;;  %v3320_v35 = vmax.f32 %v3312_v30, 0.0  ;;  %v3384_v36 = vld [vmem:[#allocation3 + $0xd] sm:$0xff]  ;;  %v4805_v38 = vpack.c.bf16 %v3321_v26, %v3321_v26  ;;  %v3393_v47 = vmax.f32 %v3385_v41, 0.0  ;;  %v5241_v1 = vld [vmem:[%s6520_s12] sm:$0xff]  }
 0x68e   :  { %v5237_v37 = vld [vmem:[%s6520_s12 + $0x10] sm:$0xff]   ;;  %v3392_v32 = vmax.f32 %v3384_v36, 0.0  ;;  %v2970_v49 = vld [vmem:[#allocation3 + $0x11] sm:$0xff]  ;;  %v2887_v2 = vld [vmem:[#allocation3 + $0x3f] sm:$0x3] }
 0x68f   :  { %v5220_v16 = vld [vmem:[#allocation4 + $0x8] ss:$12 sps:$4 sm:$0xff]   ;;  %3284 = vrot.lane.b32.xlu0 %v4798_v43, %s5282_s3  ;;  %4983 = vmatpush3.bf16.msra.mxu0 %v5235_v29  ;;  %v4804_v44 = vpack.c.bf16 %v3320_v35, %v3320_v35  ;;  %v2978_v62 = vmax.f32 %v2970_v49, 0.0 }
 0x690   :  { %5088 = vmatprep.mubr.msk.bf16.mxu1 %vm859_vm14, %v5220_v16  ;;  %4984 = vmatprep.subr.bf16.mxu0 %v5236_v23  ;;  %v4812_v57 = vpack.c.bf16 %v3392_v32, %v3392_v32  ;;  %v3042_v3 = vld [vmem:[#allocation3 + $0x12] sm:$0xff] }
 0x691   :  { %3010 = vrot.lane.b32.xlu1 %v4765_v17, %s5282_s3  ;;  %v5271_v6 = vld [vmem:[#allocation3 + $0x2f] sm:$0xff]  ;;  %v4766_v0 = vpack.c.bf16 %v2978_v62, %v2978_v62  ;;  %v3050_v8 = vmax.f32 %v3042_v3, 0.0 }
 0x693   :  { %3356 = vrot.lane.b32.xlu0 %v4806_v19, %s5283_s1  ;;  %4985 = vmatpush3.bf16.msra.mxu0 %v5237_v37  ;;  %v4774_v13 = vpack.c.bf16 %v3050_v8, %v3050_v8 }
 0x694   :  { %4986 = vmatprep.subr.bf16.mxu0 %v5238_v21 }
 0x695   :  { %3282 = vrot.lane.b32.xlu1 %v4797_v55, %s5282_s3 }
 0x697   :  { %3428 = vrot.lane.b32.xlu0 %v4814_v27, %s5284_s20  ;;  %4987 = vmatpush3.bf16.msra.mxu0 %v5239_v46 }
 0x698   :  { %4988 = vmatprep.subr.bf16.mxu0 %v5240_v50 }
 0x699   :  { %3082 = vrot.lane.b32.xlu1 %v4773_v31, %s5283_s1  ;;  %v5082_v15 = vpop.f32.mrf.mxu1 }
 0x69a   :  { %v2874_v33 = vadd.f32 %v5082_v15, %v6140_v51 }
 0x69b   :  { %3280 = vrot.lane.b32.xlu0 %v6192_v58, %s5282_s3  ;;  %v2865_v39 = vpop.f32.mrf.mxu1  ;;  %v5269_v58 = vld [vmem:[#allocation3 + $0x27] sm:$0xff]  ;;  %4989 = vmatpush3.bf16.msra.mxu0 %v5241_v1 }
 0x69c   :  { %v2894_v42 = vmul.f32 %v6020_v22, %v2874_v33  ;;  %v2866_v43 = vadd.f32 %v6140_v51, %v2865_v39  ;;  %v6261_v22 = vld [vmem:[%s6515_s0 + $0x20] sm:$0xff]  ;;  %5106 = vmatprep.subr.bf16.mxu0 %v5279_v9 }
 0x69d   :  { %3354 = vrot.lane.b32.xlu1 %v4805_v38, %s5283_s1  ;;  %v5083_v48 = vpop.f32.mrf.mxu1 }
 0x69e   :  { %v2902_v28 = vadd.f32 %v2894_v42, %v6044_v14  ;;  %v2892_v52 = vmul.f32 %v6261_v22, %v2866_v43  ;;  %v2877_v54 = vadd.f32 %v5083_v48, %v6140_v51 }
 0x69f   :  { %3352 = vrot.lane.b32.xlu0 %v4804_v44, %s5283_s1  ;;  %v2868_v55 = vpop.f32.mrf.mxu1 }
 0x6a0   :  { %2910 = vst.msk [vmem:[#allocation3 + $0x37] sm:$0xff] %vm859_vm14, %v2902_v28  ;;  %v2900_v60 = vadd.f32 %v5269_v58, %v2892_v52  ;;  %v2895_v14 = vmul.f32 %v6032_v34, %v2877_v54  ;;  %v2869_v61 = vadd.f32 %v6140_v51, %v2868_v55  ;;  %v6278_v34 = vld [vmem:[%s6515_s0 + $0x28] sm:$0xff] }
 0x6a1   :  { %3154 = vrot.lane.b32.xlu1 %v6169_v5, %s5284_s20  ;;  %v4813_v5 = vpack.c.bf16 %v3393_v47, %v3393_v47 }
 0x6a2   :  { %2908 = vst.msk [vmem:[#allocation3 + $0x27] sm:$0xff] %vm859_vm14, %v2900_v60  ;;  %v2903_v4 = vadd.f32 %v2895_v14, %v2887_v2  ;;  %v2893_v51 = vmul.f32 %v6278_v34, %v2869_v61 }
 0x6a3   :  { %3424 = vrot.lane.b32.xlu0 %v4812_v57, %s5284_s20 }
 0x6a4   :  { %2911 = vst.msk [vmem:[#allocation3 + $0x3f] sm:$0x3] %vm884_vm2, %v2903_v4  ;;  %v2901_v7 = vadd.f32 %v5271_v6, %v2893_v51 }
 0x6a5   :  { %3426 = vrot.lane.b32.xlu1 %v4813_v5, %s5284_s20 }
 0x6a6   :  { %2909 = vst.msk [vmem:[#allocation3 + $0x2f] sm:$0xff] %vm859_vm14, %v2901_v7 }
 0x6a7   :  { %3012 = vrot.lane.b32.xlu0 %v4766_v0, %s5282_s3  ;;  %v2975_v11 = vld [vmem:[#allocation3 + $0x39] sm:$0x3] }
 0x6a8   :  { %v3047_v12 = vld [vmem:[#allocation3 + $0x3a] sm:$0x3]  ;;  %v2983_v16 = vmax.f32 %v2975_v11, 0.0  ;;  %v2919_v41 = vld [vmem:[#allocation3 + $0x38] sm:$0x3] }
 0x6a9   :  { %v2972_v17 = vld [vmem:[#allocation3 + $0x21] sm:$0xff]  ;;  %v3055_v19 = vmax.f32 %v3047_v12, 0.0  ;;  %v6293_v42 = vld [vmem:[#allocation3 + $0x37] sm:$0xff]  ;;  %v2927_v28 = vmax.f32 %v2919_v41, 0.0 }
 0x6aa   :  { %v3243_v18 = vld [vmem:[#allocation3 + $0x20] sm:$0xff]  ;;  %v4771_v10 = vpack.c.bf16 %v2983_v16, %v2983_v16  ;;  %v2980_v53 = vmax.f32 %v2972_v17, 0.0  ;;  %v3198_v52 = vmax.f32 %v6293_v42, 0.0 }
 0x6ab   :  { %3084 = vrot.lane.b32.xlu0 %v4774_v13, %s5283_s1  ;;  %v3251_v20 = vmax.f32 %v3243_v18, 0.0  ;;  %v3459_v24 = vld [vmem:[#allocation3 + $0x26] sm:$0xff]  ;;  %v3462_v63 = vld [vmem:[#allocation3 + $0x3e] sm:$0xff]  ;;  %v4779_v35 = vpack.c.bf16 %v3055_v19, %v3055_v19  ;;  %v4763_v1 = vpack.c.bf16 %v2927_v28, %v2927_v28 }
 0x6ac   :  { %v3467_v25 = vmax.f32 %v3459_v24, 0.0  ;;  %3022 = vrot.lane.b32.xlu1 %v4771_v10, %s5282_s3  ;;  %v3044_v29 = vld [vmem:[#allocation3 + $0x22] sm:$0xff]  ;;  %v3470_v30 = vmax.f32 %v3462_v63, 0.0  ;;  %v4768_v43 = vpack.c.bf16 %v2980_v53, %v2980_v53  ;;  %v3191_v55 = vld [vmem:[#allocation3 + $0x3f] sm:$0x3]  ;;  %v4794_v2 = vpack.c.bf16 %v3198_v52, %v3198_v52 }
 0x6ad   :  { %v4799_v27 = vpack.c.bf16 %v3251_v20, %v3251_v20  ;;  %v3460_v31 = vld [vmem:[#allocation3 + $0x2e] sm:$0xff]  ;;  %v3461_v26 = vld [vmem:[#allocation3 + $0x36] sm:$0xff]  ;;  %v3052_v38 = vmax.f32 %v3044_v29, 0.0  ;;  %v3315_v39 = vld [vmem:[#allocation3 + $0x24] sm:$0xff]  ;;  %v3199_v4 = vmax.f32 %v3191_v55, 0.0 }
 0x6ae   :  { %v4823_v23 = vpack.c.bf16 %v3467_v25, %v3467_v25  ;;  %v3468_v36 = vmax.f32 %v3460_v31, 0.0  ;;  %v3469_v37 = vmax.f32 %v3461_v26, 0.0  ;;  %v4826_v15 = vpack.c.bf16 %v3470_v30, %v3470_v30  ;;  %v3244_v21 = vld [vmem:[#allocation3 + $0x28] sm:$0xff]  ;;  %v3245_v33 = vld [vmem:[#allocation3 + $0x30] sm:$0xff]  ;;  %v3246_v57 = vld [vmem:[#allocation3 + $0x38] sm:$0xff] }
 0x6af   :  { %3156 = vrot.lane.b32.xlu0 %v6171_v45, %s5284_s20  ;;  %2964 = vst.msk [vmem:[#allocation4 + $0x30] sm:$0xf] %vm926_vm1, %v4799_v27  ;;  %v3252_v32 = vmax.f32 %v3244_v21, 0.0  ;;  %v3253_v46 = vmax.f32 %v3245_v33, 0.0  ;;  %v3323_v49 = vmax.f32 %v3315_v39, 0.0  ;;  %v3387_v54 = vld [vmem:[#allocation3 + $0x25] sm:$0xff]  ;;  %v4776_v47 = vpack.c.bf16 %v3052_v38, %v3052_v38 }
 0x6b0   :  { %3507 = vst.msk [vmem:[#allocation4 + $0x2c] sm:$0xf] %vm926_vm1, %v4823_v23  ;;  %3094 = vrot.lane.b32.xlu1 %v4779_v35, %s5283_s1  ;;  %v6296_v45 = vpack.c.bf16 %v3468_v36, %v3468_v36  ;;  %v6298_v44 = vpack.c.bf16 %v3469_v37, %v3469_v37  ;;  %3510 = vst.msk [vmem:[#allocation4 + $0x50] sm:$0xf] %vm926_vm1, %v4826_v15  ;;  %v6310_v58 = vld [vmem:[#allocation3 + $0x27] sm:$0xff]  ;;  %v6312_v60 = vld [vmem:[#allocation3 + $0x2f] sm:$0xff]  ;;  %v4795_v8 = vpack.c.bf16 %v3199_v4, %v3199_v4 }
 0x6b1   :  { %v4800_v48 = vpack.c.bf16 %v3252_v32, %v3252_v32  ;;  %v4801_v50 = vpack.c.bf16 %v3253_v46, %v3253_v46  ;;  %v4807_v61 = vpack.c.bf16 %v3323_v49, %v3323_v49  ;;  %v3395_v62 = vmax.f32 %v3387_v54, 0.0  ;;  %v3247_v3 = vld [vmem:[#allocation3 + $0x40] sm:$0x3]  ;;  %2967 = vst.msk [vmem:[#allocation4 + $0x54] sm:$0x1] %vm934_vm15, %v4763_v1  ;;  %v2973_v17 = vld [vmem:[#allocation3 + $0x29] sm:$0xff] }
 0x6b2   :  { %3508 = vst.msk [vmem:[#allocation4 + $0x38] sm:$0xf] %vm926_vm1, %v6296_v45  ;;  %3509 = vst.msk [vmem:[#allocation4 + $0x44] sm:$0xf] %vm926_vm1, %v6298_v44  ;;  %v3254_v51 = vmax.f32 %v3246_v57, 0.0  ;;  %v3318_v5 = vld [vmem:[#allocation3 + $0x3c] sm:$0xff] }
 0x6b3   :  { %3016 = vrot.lane.b32.xlu0 %v4768_v43, %s5282_s3  ;;  %2965 = vst.msk [vmem:[#allocation4 + $0x3c] sm:$0xf] %vm926_vm1, %v4800_v48  ;;  %2966 = vst.msk [vmem:[#allocation4 + $0x48] sm:$0xf] %vm926_vm1, %v4801_v50  ;;  %v3196_v6 = vmax.f32 %v6310_v58, 0.0  ;;  %v3197_v7 = vmax.f32 %v6312_v60, 0.0  ;;  %v4815_v11 = vpack.c.bf16 %v3395_v62, %v3395_v62 }
 0x6b4   :  { %3286 = vrot.lane.b32.xlu1 %v4799_v27, %s5282_s3  ;;  %3238 = vst.msk [vmem:[#allocation4 + $0x4c] sm:$0xf] %vm926_vm1, %v4794_v2  ;;  %v3255_v12 = vmax.f32 %v3247_v3, 0.0  ;;  %v4802_v18 = vpack.c.bf16 %v3254_v51, %v3254_v51  ;;  %v3326_v10 = vmax.f32 %v3318_v5, 0.0  ;;  %v2981_v24 = vmax.f32 %v2973_v17, 0.0  ;;  %v3316_v63 = vld [vmem:[#allocation3 + $0x2c] sm:$0xff] }
 0x6b5   :  { %v4792_v13 = vpack.c.bf16 %v3196_v6, %v3196_v6  ;;  %v4793_v16 = vpack.c.bf16 %v3197_v7, %v3197_v7  ;;  %3239 = vst.msk [vmem:[#allocation4 + $0x58] sm:$0x1] %vm934_vm15, %v4795_v8  ;;  %v3045_v27 = vld [vmem:[#allocation3 + $0x2a] sm:$0xff]  ;;  %v3324_v29 = vmax.f32 %v3316_v63, 0.0  ;;  %v3317_v31 = vld [vmem:[#allocation3 + $0x34] sm:$0xff] }
 0x6b6   :  { %v4803_v20 = vpack.c.bf16 %v3255_v12, %v3255_v12  ;;  %v4810_v25 = vpack.c.bf16 %v3326_v10, %v3326_v10  ;;  %v4769_v53 = vpack.c.bf16 %v2981_v24, %v2981_v24  ;;  %v3388_v30 = vld [vmem:[#allocation3 + $0x2d] sm:$0xff]  ;;  %v3325_v15 = vmax.f32 %v3317_v31, 0.0  ;;  %v3389_v32 = vld [vmem:[#allocation3 + $0x35] sm:$0xff]  ;;  %v3391_v28 = vld [vmem:[#allocation3 + $0x45] sm:$0x3] }
 0x6b7   :  { %3088 = vrot.lane.b32.xlu0 %v4776_v47, %s5283_s1  ;;  %v5223_v14 = vld [vmem:[#allocation4 + $0x20] ss:$12 sps:$4 sm:$0xff]   ;;  %3236 = vst.msk [vmem:[#allocation4 + $0x34] sm:$0xf] %vm926_vm1, %v4792_v13  ;;  %3237 = vst.msk [vmem:[#allocation4 + $0x40] sm:$0xf] %vm926_vm1, %v4793_v16  ;;  %v4808_v26 = vpack.c.bf16 %v3324_v29, %v3324_v29 }
 0x6b8   :  { %5089 = vmatmul.mubr.msk.bf16.vlgmr.msra.gmra.mxu1 %vm859_vm14, %v5223_v14  ;;  %3358 = vrot.lane.b32.xlu1 %v4807_v61, %s5283_s1  ;;  %v5225_v19 = vld [vmem:[#allocation4 + $0x50] ss:$12 sps:$4 sm:$0x1f]   ;;  %v3396_v35 = vmax.f32 %v3388_v30, 0.0  ;;  %v4809_v39 = vpack.c.bf16 %v3325_v15, %v3325_v15  ;;  %v3397_v46 = vmax.f32 %v3389_v32, 0.0  ;;  %v3399_v55 = vmax.f32 %v3391_v28, 0.0 }
 0x6b9   :  { %v5224_v0 = vld [vmem:[#allocation4 + $0x38] ss:$12 sps:$4 sm:$0xff]   ;;  %v2974_v36 = vld [vmem:[#allocation3 + $0x31] sm:$0xff] }
 0x6ba   :  { %5092 = vmatprep.mubr.msk.bf16.mxu1 %vm859_vm14, %v5224_v0  ;;  %v4816_v21 = vpack.c.bf16 %v3396_v35, %v3396_v35  ;;  %v2982_v33 = vmax.f32 %v2974_v36, 0.0  ;;  %v3046_v38 = vld [vmem:[#allocation3 + $0x32] sm:$0xff]  ;;  %v4817_v52 = vpack.c.bf16 %v3397_v46, %v3397_v46  ;;  %v4819_v61 = vpack.c.bf16 %v3399_v55, %v3399_v55 }
 0x6bb   :  { %3160 = vrot.lane.b32.xlu0 %v4823_v23, %s5284_s20  ;;  %v3053_v23 = vmax.f32 %v3045_v27, 0.0  ;;  %v3054_v43 = vmax.f32 %v3046_v38, 0.0 }
 0x6bc   :  { %3430 = vrot.lane.b32.xlu1 %v4815_v11, %s5284_s20  ;;  %v4770_v41 = vpack.c.bf16 %v2982_v33, %v2982_v33 }
 0x6bd   :  { %v4777_v37 = vpack.c.bf16 %v3053_v23, %v3053_v23  ;;  %v4778_v49 = vpack.c.bf16 %v3054_v43, %v3054_v43 }
 0x6bf   :  { %3292 = vrot.lane.b32.xlu0 %v4802_v18, %s5282_s3 }
 0x6c0   :  { %5093 = vmatmul.mubr.msk.bf16.gmra.mxu1 %vm859_vm14, %v5225_v19  ;;  %3294 = vrot.lane.b32.xlu1 %v4803_v20, %s5282_s3 }
 0x6c3   :  { %3364 = vrot.lane.b32.xlu0 %v4810_v25, %s5283_s1 }
 0x6c4   :  { %3018 = vrot.lane.b32.xlu1 %v4769_v53, %s5282_s3 }
 0x6c7   :  { %3288 = vrot.lane.b32.xlu0 %v4800_v48, %s5282_s3  ;;  %v3119_v48 = vld [vmem:[#allocation3 + $0x3e] sm:$0x3] }
 0x6c8   :  { %3290 = vrot.lane.b32.xlu1 %v4801_v50, %s5282_s3  ;;  %v3390_v50 = vld [vmem:[#allocation3 + $0x3d] sm:$0xff]  ;;  %v3127_v54 = vmax.f32 %v3119_v48, 0.0 }
 0x6c9   :  { %v3398_v47 = vmax.f32 %v3390_v50, 0.0 }
 0x6ca   :  { %v4787_v57 = vpack.c.bf16 %v3127_v54, %v3127_v54 }
 0x6cb   :  { %3360 = vrot.lane.b32.xlu0 %v4808_v26, %s5283_s1  ;;  %v4818_v14 = vpack.c.bf16 %v3398_v47, %v3398_v47 }
 0x6cc   :  { %3090 = vrot.lane.b32.xlu1 %v4777_v37, %s5283_s1 }
 0x6cf   :  { %3432 = vrot.lane.b32.xlu0 %v4816_v21, %s5284_s20 }
 0x6d0   :  { %3362 = vrot.lane.b32.xlu1 %v4809_v39, %s5283_s1 }
 0x6d3   :  { %3020 = vrot.lane.b32.xlu0 %v4770_v41, %s5282_s3 }
 0x6d4   :  { %3162 = vrot.lane.b32.xlu1 %v6296_v45, %s5284_s20  ;;  %v6348_v45 = vpop.permute.xlu1 %3366 }
 0x6d7   :  { %3092 = vrot.lane.b32.xlu0 %v4778_v49, %s5283_s1 }
 0x6d8   :  { %3434 = vrot.lane.b32.xlu1 %v4817_v52, %s5284_s20 }
 0x6db   :  { %3164 = vrot.lane.b32.xlu0 %v6298_v44, %s5284_s20 }
 0x6dc   :  { %3166 = vrot.lane.b32.xlu1 %v4787_v57, %s5284_s20 }
 0x6df   :  { %3436 = vrot.lane.b32.xlu0 %v4818_v14, %s5284_s20 }
 0x6e0   :  { %3438 = vrot.lane.b32.xlu1 %v4819_v61, %s5284_s20 }
 0x6f5   :  { %v3009_v62 = vpop.permute.xlu0 %3008 }
 0x6f6   :  { %3032 = vst.msk [vmem:[#allocation4] sm:$0xf] %vm992_vm3, %v3009_v62 }
 0x6f7   :  { %v3015_v1 = vpop.permute.xlu1 %3014 }
 0x6f8   :  { %3035 = vst.msk [vmem:[#allocation4 + $0x24] sm:$0xf] %vm992_vm3, %v3015_v1 }
 0x6f9   :  { %v3081_v2 = vpop.permute.xlu0 %3080 }
 0x6fa   :  { %3104 = vst.msk [vmem:[#allocation4] sm:$0xf] %vm1058_vm4, %v3081_v2  ;;  %v5253_v2 = vld [vmem:[%s6522_s14] sm:$0xff]  }
 0x6fb   :  { %v3087_v44 = vpop.permute.xlu1 %3086  ;;  %5096 = vmatprep.subr.bf16.mxu1 %v5253_v2 }
 0x6fc   :  { %3107 = vst.msk [vmem:[#allocation4 + $0x24] sm:$0xf] %vm1058_vm4, %v3087_v44  ;;  %5097 = vmatpush3.bf16.msra.mxu1 %v5253_v2 }
 0x6fd   :  { %v3153_v3 = vpop.permute.xlu0 %3152  ;;  %5130 = vmatprep.subr.bf16.mxu1 %v5279_v9 }
 0x6fe   :  { %3176 = vst.msk [vmem:[#allocation4] sm:$0xf] %vm1124_vm5, %v3153_v3 }
 0x6ff   :  { %v3159_v4 = vpop.permute.xlu1 %3158 }
 0x700   :  { %3179 = vst.msk [vmem:[#allocation4 + $0x24] sm:$0xf] %vm1124_vm5, %v3159_v4 }
 0x701   :  { %v3285_v51 = vpop.permute.xlu0 %3284 }
 0x702   :  { %3306 = vst.msk [vmem:[#allocation4 + $0x1c] sm:$0xf] %vm992_vm3, %v3285_v51  ;;  %v4531_v51 = vld [vmem:[%s6523_s13] ss:$0 sm:$0xff] }
 0x703   :  { %v3011_v5 = vpop.permute.xlu1 %3010 }
 0x704   :  { %3033 = vst.msk [vmem:[#allocation4 + $0xc] sm:$0xf] %vm992_vm3, %v3011_v5 }
 0x705   :  { %v3357_v6 = vpop.permute.xlu0 %3356 }
 0x706   :  { %3378 = vst.msk [vmem:[#allocation4 + $0x1c] sm:$0xf] %vm1058_vm4, %v3357_v6 }
 0x707   :  { %v3283_v7 = vpop.permute.xlu1 %3282 }
 0x708   :  { %3305 = vst.msk [vmem:[#allocation4 + $0x10] sm:$0xf] %vm992_vm3, %v3283_v7 }
 0x709   :  { %v3429_v0 = vpop.permute.xlu0 %3428 }
 0x70a   :  { %3450 = vst.msk [vmem:[#allocation4 + $0x1c] sm:$0xf] %vm1124_vm5, %v3429_v0 }
 0x70b   :  { %v3083_v8 = vpop.permute.xlu1 %3082 }
 0x70c   :  { %3105 = vst.msk [vmem:[#allocation4 + $0xc] sm:$0xf] %vm1058_vm4, %v3083_v8 }
 0x70d   :  { %v3281_v11 = vpop.permute.xlu0 %3280 }
 0x70e   :  { %3304 = vst.msk [vmem:[#allocation4 + $0x4] sm:$0xf] %vm992_vm3, %v3281_v11 }
 0x70f   :  { %v3355_v12 = vpop.permute.xlu1 %3354 }
 0x710   :  { %3377 = vst.msk [vmem:[#allocation4 + $0x10] sm:$0xf] %vm1058_vm4, %v3355_v12 }
 0x711   :  { %v3353_v13 = vpop.permute.xlu0 %3352 }
 0x712   :  { %3376 = vst.msk [vmem:[#allocation4 + $0x4] sm:$0xf] %vm1058_vm4, %v3353_v13 }
 0x713   :  { %v3155_v16 = vpop.permute.xlu1 %3154 }
 0x714   :  { %3177 = vst.msk [vmem:[#allocation4 + $0xc] sm:$0xf] %vm1124_vm5, %v3155_v16 }
 0x715   :  { %v3425_v17 = vpop.permute.xlu0 %3424 }
 0x716   :  { %3448 = vst.msk [vmem:[#allocation4 + $0x4] sm:$0xf] %vm1124_vm5, %v3425_v17 }
 0x717   :  { %v3427_v18 = vpop.permute.xlu1 %3426 }
 0x718   :  { %3449 = vst.msk [vmem:[#allocation4 + $0x10] sm:$0xf] %vm1124_vm5, %v3427_v18 }
 0x719   :  { %v3013_v10 = vpop.permute.xlu0 %3012 }
 0x71a   :  { %3034 = vst.msk [vmem:[#allocation4 + $0x18] sm:$0xf] %vm992_vm3, %v3013_v10 }
 0x71b   :  { %v5242_v24 = vld [vmem:[#allocation4] ss:$12 sps:$4 sm:$0xff]  }
 0x71d   :  { %v3085_v19 = vpop.permute.xlu0 %3084 }
 0x71e   :  { %3106 = vst.msk [vmem:[#allocation4 + $0x18] sm:$0xf] %vm1058_vm4, %v3085_v19  ;;  %v3023_v20 = vpop.permute.xlu1 %3022 }
 0x71f   :  { %v5244_v25 = vld [vmem:[#allocation4 + $0x4] ss:$12 sps:$4 sm:$0xff]   ;;  %3039 = vst.msk [vmem:[#allocation4 + $0x54] sm:$0x1] %vm1000_vm6, %v3023_v20 }
 0x720   :  { %3783 = vmatprep.mubr.bf16.mxu0 %v5244_v25 }
 0x721   :  { %v3157_v63 = vpop.permute.xlu0 %3156  ;;  %3784 = vmatmul.mubr.bf16.vlgmr.msra.gmra.mxu0 %v5242_v24 }
 0x722   :  { %3178 = vst.msk [vmem:[#allocation4 + $0x18] sm:$0xf] %vm1124_vm5, %v3157_v63  ;;  %v3095_v53 = vpop.permute.xlu1 %3094 }
 0x723   :  { %3111 = vst.msk [vmem:[#allocation4 + $0x54] sm:$0x1] %vm1066_vm7, %v3095_v53 }
 0x725   :  { %v3017_v27 = vpop.permute.xlu0 %3016 }
 0x726   :  { %3036 = vst.msk [vmem:[#allocation4 + $0x30] sm:$0xf] %vm992_vm3, %v3017_v27  ;;  %v3287_v29 = vpop.permute.xlu1 %3286 }
 0x727   :  { %3307 = vst.msk [vmem:[#allocation4 + $0x28] sm:$0xf] %vm992_vm3, %v3287_v29 }
 0x729   :  { %v3089_v30 = vpop.permute.xlu0 %3088  ;;  %v3516_v21 = vld [vmem:[#allocation4 + $0x18] sm:$0xff] }
 0x72a   :  { %3108 = vst.msk [vmem:[#allocation4 + $0x30] sm:$0xf] %vm1058_vm4, %v3089_v30  ;;  %v3359_v23 = vpop.permute.xlu1 %3358 }
 0x72b   :  { %3379 = vst.msk [vmem:[#allocation4 + $0x28] sm:$0xf] %vm1058_vm4, %v3359_v23 }
 0x72d   :  { %v3161_v31 = vpop.permute.xlu0 %3160 }
 0x72e   :  { %3180 = vst.msk [vmem:[#allocation4 + $0x30] sm:$0xf] %vm1124_vm5, %v3161_v31  ;;  %v3431_v26 = vpop.permute.xlu1 %3430 }
 0x72f   :  { %3451 = vst.msk [vmem:[#allocation4 + $0x28] sm:$0xf] %vm1124_vm5, %v3431_v26 }
 0x731   :  { %v3293_v35 = vpop.permute.xlu0 %3292 }
 0x732   :  { %3310 = vst.msk [vmem:[#allocation4 + $0x4c] sm:$0xf] %vm992_vm3, %v3293_v35  ;;  %v3295_v36 = vpop.permute.xlu1 %3294 }
 0x733   :  { %3311 = vst.msk [vmem:[#allocation4 + $0x58] sm:$0x1] %vm1000_vm6, %v3295_v36 }
 0x734   :  { %3383 = vst.msk [vmem:[#allocation4 + $0x58] sm:$0x1] %vm1066_vm7, %v6348_v45 }
 0x735   :  { %v3365_v37 = vpop.permute.xlu0 %3364 }
 0x736   :  { %3382 = vst.msk [vmem:[#allocation4 + $0x4c] sm:$0xf] %vm1058_vm4, %v3365_v37  ;;  %v3019_v15 = vpop.permute.xlu1 %3018  ;;  %v3518_v33 = vld [vmem:[#allocation4 + $0x24] sm:$0xff] }
 0x737   :  { %v5245_v38 = vld [vmem:[#allocation4 + $0x1c] ss:$12 sps:$4 sm:$0xff]   ;;  %3037 = vst.msk [vmem:[#allocation4 + $0x3c] sm:$0xf] %vm992_vm3, %v3019_v15  ;;  %v4535_v39 = vcombine.low %v3516_v21, %v3518_v33 }
 0x738   :  { %3791 = vmatprep.mubr.bf16.mxu0 %v5245_v38 }
 0x739   :  { %v3289_v32 = vpop.permute.xlu0 %3288  ;;  %3792 = vmatmul.mubr.bf16.gmra.mxu0 %v4535_v39 }
 0x73a   :  { %3308 = vst.msk [vmem:[#allocation4 + $0x34] sm:$0xf] %vm992_vm3, %v3289_v32  ;;  %v3291_v41 = vpop.permute.xlu1 %3290 }
 0x73b   :  { %3309 = vst.msk [vmem:[#allocation4 + $0x40] sm:$0xf] %vm992_vm3, %v3291_v41 }
 0x73d   :  { %v3361_v43 = vpop.permute.xlu0 %3360 }
 0x73e   :  { %3380 = vst.msk [vmem:[#allocation4 + $0x34] sm:$0xf] %vm1058_vm4, %v3361_v43  ;;  %v3091_v46 = vpop.permute.xlu1 %3090 }
 0x73f   :  { %3109 = vst.msk [vmem:[#allocation4 + $0x3c] sm:$0xf] %vm1058_vm4, %v3091_v46 }
 0x741   :  { %v3433_v48 = vpop.permute.xlu0 %3432 }
 0x742   :  { %3452 = vst.msk [vmem:[#allocation4 + $0x34] sm:$0xf] %vm1124_vm5, %v3433_v48  ;;  %v3363_v49 = vpop.permute.xlu1 %3362 }
 0x743   :  { %3381 = vst.msk [vmem:[#allocation4 + $0x40] sm:$0xf] %vm1058_vm4, %v3363_v49 }
 0x745   :  { %v3021_v50 = vpop.permute.xlu0 %3020 }
 0x746   :  { %3038 = vst.msk [vmem:[#allocation4 + $0x48] sm:$0xf] %vm992_vm3, %v3021_v50  ;;  %v3163_v28 = vpop.permute.xlu1 %3162 }
 0x747   :  { %3181 = vst.msk [vmem:[#allocation4 + $0x3c] sm:$0xf] %vm1124_vm5, %v3163_v28 }
 0x749   :  { %v3093_v52 = vpop.permute.xlu0 %3092 }
 0x74a   :  { %3110 = vst.msk [vmem:[#allocation4 + $0x48] sm:$0xf] %vm1058_vm4, %v3093_v52  ;;  %v3435_v54 = vpop.permute.xlu1 %3434 }
 0x74b   :  { %3453 = vst.msk [vmem:[#allocation4 + $0x40] sm:$0xf] %vm1124_vm5, %v3435_v54 }
 0x74d   :  { %v3165_v47 = vpop.permute.xlu0 %3164 }
 0x74e   :  { %3182 = vst.msk [vmem:[#allocation4 + $0x48] sm:$0xf] %vm1124_vm5, %v3165_v47  ;;  %v3167_v55 = vpop.permute.xlu1 %3166  ;;  %v5249_v45 = vld [vmem:[#allocation4 + $0x30] ss:$12 sps:$4 sm:$0xff]  }
 0x74f   :  { %3183 = vst.msk [vmem:[#allocation4 + $0x54] sm:$0x1] %vm1132_vm8, %v3167_v55 }
 0x751   :  { %v3437_v57 = vpop.permute.xlu0 %3436 }
 0x752   :  { %3454 = vst.msk [vmem:[#allocation4 + $0x4c] sm:$0xf] %vm1124_vm5, %v3437_v57  ;;  %v3439_v14 = vpop.permute.xlu1 %3438  ;;  %v5247_v61 = vld [vmem:[#allocation4 + $0x34] ss:$12 sps:$4 sm:$0xff]  }
 0x753   :  { %3455 = vst.msk [vmem:[#allocation4 + $0x58] sm:$0x1] %vm1132_vm8, %v3439_v14  ;;  %3799 = vmatprep.mubr.bf16.mxu0 %v5247_v61 }
 0x754   :  { %3800 = vmatmul.mubr.bf16.gmra.mxu0 %v5249_v45 }
 0x756   :  { %v5252_v1 = vld [vmem:[#allocation4 + $0x48] ss:$12 sps:$4 sm:$0x1f]  }
 0x75a   :  { %v5250_v62 = vld [vmem:[#allocation4 + $0x4c] ss:$12 sps:$4 sm:$0x1f]  }
 0x75b   :  { %3807 = vmatprep.mubr.bf16.mxu0 %v5250_v62 }
 0x75c   :  { %3808 = vmatmul.mubr.bf16.gmra.mxu0 %v5252_v1 }
 0x75d   :  { %5110 = vmatprep.mubr.msk.bf16.mxu0 %vm5285_vm9, %v5279_v9 }
 0x778   :  { %v5090_v44 = vpop.f32.mrf.mxu1 }
 0x77a   :  { %v3850_v4 = vpop.f32.mrf.mxu1 }
 0x77c   :  { %v5091_v8 = vpop.f32.mrf.mxu1 }
 0x77e   :  { %v3853_v17 = vpop.f32.mrf.mxu1 }
 0x780   :  { %v5094_v15 = vpop.f32.mrf.mxu1 }
 0x782   :  { %v3866_v33 = vpop.f32.mrf.mxu1 }
 0x784   :  { %v5095_v43 = vpop.f32.mrf.mxu1 }
 0x786   :  { %v3869_v52 = vpop.f32.mrf.mxu1 }
 0x7e1   :  { %v4990_v3 = vpop.f32.mrf.mxu0 }
 0x7e3   :  { %v4991_v5 = vpop.f32.mrf.mxu0 }
 0x7e4   :  { %v4992_v6 = vadd.f32 %v4991_v5, %v4990_v3 }
 0x7e5   :  { %v4993_v7 = vpop.f32.mrf.mxu0 }
 0x7e6   :  { %v3786_v0 = vadd.f32 %v4992_v6, %v4531_v51 }
 0x7e7   :  { %v4994_v11 = vpop.f32.mrf.mxu0 }
 0x7e8   :  { %v4995_v12 = vadd.f32 %v4994_v11, %v4993_v7  ;;  %v3851_v13 = vadd.f32 %v3850_v4, %v3786_v0  ;;  %v5254_v0 = vld [vmem:[%s6524_s16 + $0x8] sm:$0xff]  }
 0x7e9   :  { %5107 = vmatpush3.bf16.msra.mxu0 %v5254_v0 }
 0x7ea   :  { %v3789_v16 = vadd.f32 %v4995_v12, %v4531_v51  ;;  %v3881_v10 = vmax.f32 %v3851_v13, 0.0  ;;  %5108 = vmatprep.subr.bf16.mxu0 %v5279_v9 }
 0x7ec   :  { %v3854_v18 = vadd.f32 %v3853_v17, %v3789_v16  ;;  %v5272_v16 = vld [vmem:[%s6515_s0 + $0x10] sm:$0xff] }
 0x7ee   :  { %v3882_v19 = vmax.f32 %v3854_v18, 0.0 }
 0x7f0   :  { %v3889_v20 = vpack.c.bf16 %v3882_v19, %v3881_v10  ;;  %v5273_v19 = vld [vmem:[#allocation3 + $0x17] sm:$0xff] }
 0x7f2   :  { %5098 = vmatprep.mubr.msk.bf16.mxu1 %vm139_vm0, %v3889_v20 }
 0x7f9   :  { %v4996_v24 = vpop.f32.mrf.mxu0 }
 0x7fb   :  { %v4997_v25 = vpop.f32.mrf.mxu0 }
 0x7fc   :  { %v4998_v63 = vadd.f32 %v4997_v25, %v4996_v24  ;;  %v5274_v24 = vld [vmem:[%s6515_s0] sm:$0xff] }
 0x7fd   :  { %v4999_v53 = vpop.f32.mrf.mxu0 }
 0x7fe   :  { %v3794_v27 = vadd.f32 %v4998_v63, %v4531_v51 }
 0x7ff   :  { %v5000_v29 = vpop.f32.mrf.mxu0 }
 0x800   :  { %v5001_v30 = vadd.f32 %v5000_v29, %v4999_v53  ;;  %v3859_v23 = vadd.f32 %v5090_v44, %v3794_v27  ;;  %v5275_v29 = vld [vmem:[%s6515_s0 + $0x18] sm:$0xff] }
 0x802   :  { %v3797_v31 = vadd.f32 %v5001_v30, %v4531_v51  ;;  %v3883_v35 = vmax.f32 %v3859_v23, 0.0 }
 0x804   :  { %v3862_v26 = vadd.f32 %v5091_v8, %v3797_v31  ;;  %v4566_v8 = vld [vmem:[%s6525_s15] ss:$0 sm:$0xff] }
 0x806   :  { %v3884_v36 = vmax.f32 %v3862_v26, 0.0  ;;  %v5276_v26 = vld [vmem:[%s6515_s0 + $0x8] sm:$0xff] }
 0x808   :  { %v3890_v37 = vpack.c.bf16 %v3884_v36, %v3883_v35 }
 0x80a   :  { %5099 = vmatmul.mubr.msk.bf16.vlgmr.msra.gmra.mxu1 %vm139_vm0, %v3890_v37 }
 0x80b   :  { %5132 = vmatpush3.bf16.msra.mxu1 %v5254_v0 }
 0x80c   :  { %5131 = vmatprep.subr.bf16.mxu1 %v5279_v9 }
 0x814   :  { %v5002_v21 = vpop.f32.mrf.mxu0 }
 0x816   :  { %v5003_v38 = vpop.f32.mrf.mxu0 }
 0x817   :  { %v5004_v39 = vadd.f32 %v5003_v38, %v5002_v21 }
 0x818   :  { %v5005_v32 = vpop.f32.mrf.mxu0 }
 0x819   :  { %v3802_v41 = vadd.f32 %v5004_v39, %v4531_v51 }
 0x81a   :  { %v5006_v46 = vpop.f32.mrf.mxu0 }
 0x81b   :  { %v5007_v48 = vadd.f32 %v5006_v46, %v5005_v32  ;;  %v3867_v50 = vadd.f32 %v3866_v33, %v3802_v41 }
 0x81c   :  { %v5008_v49 = vpop.f32.mrf.mxu0 }
 0x81d   :  { %v3805_v28 = vadd.f32 %v5007_v48, %v4531_v51  ;;  %v3885_v14 = vmax.f32 %v3867_v50, 0.0  ;;  %v5277_v48 = vld [vmem:[%s6515_s0 + $0x30] sm:$0xff] }
 0x81e   :  { %v5009_v54 = vpop.f32.mrf.mxu0 }
 0x81f   :  { %v3870_v47 = vadd.f32 %v3869_v52, %v3805_v28  ;;  %v5010_v55 = vadd.f32 %v5009_v54, %v5008_v49 }
 0x820   :  { %v5011_v57 = vpop.f32.mrf.mxu0 }
 0x821   :  { %v3886_v61 = vmax.f32 %v3870_v47, 0.0  ;;  %v3810_v45 = vadd.f32 %v5010_v55, %v4531_v51 }
 0x822   :  { %v5012_v62 = vpop.f32.mrf.mxu0 }
 0x823   :  { %v3891_v1 = vpack.c.bf16 %v3886_v61, %v3885_v14  ;;  %v5013_v2 = vadd.f32 %v5012_v62, %v5011_v57  ;;  %v3875_v44 = vadd.f32 %v5094_v15, %v3810_v45  ;;  %v5278_v14 = vld [vmem:[%s6515_s0 + $0x38] sm:$0x3]  ;;  %v3992_v62 = vld [vmem:[#allocation3 + $0x3f] sm:$0x3] }
 0x825   :  { %v3813_v3 = vadd.f32 %v5013_v2, %v4531_v51  ;;  %5102 = vmatprep.mubr.msk.bf16.mxu1 %vm139_vm0, %v3891_v1  ;;  %v3887_v5 = vmax.f32 %v3875_v44, 0.0  ;;  %v5255_v51 = vld [vmem:[%s6524_s16] sm:$0xff]  }
 0x826   :  { %5109 = vmatpush3.bf16.msra.mxu0 %v5255_v51  ;;  %5133 = vmatpush3.bf16.msra.mxu1 %v5255_v51 }
 0x827   :  { %v3878_v4 = vadd.f32 %v5095_v43, %v3813_v3 }
 0x829   :  { %v3888_v6 = vmax.f32 %v3878_v4, 0.0 }
 0x82b   :  { %v3892_v7 = vpack.c.bf16 %v3888_v6, %v3887_v5 }
 0x82d   :  { %5103 = vmatmul.mubr.msk.bf16.gmra.mxu1 %vm139_vm0, %v3892_v7  ;;  %vm4150_vm0 = vcmask 64512  }
 0x82e   :  { %5126 = vmatprep.mubr.msk.bf16.mxu1 %vm5285_vm9, %v5279_v9 }
 0x8ca   :  { %v5100_v11 = vpop.f32.mrf.mxu1 }
 0x8cb   :  { %v3963_v12 = vadd.f32 %v5100_v11, %v4566_v8  ;;  %v4572_v11 = vld [vmem:[%s6526_s17] ss:$0 sm:$0xff] }
 0x8cc   :  { %v3954_v13 = vpop.f32.mrf.mxu1 }
 0x8cd   :  { %v3995_v17 = vmul.f32 %v5272_v16, %v3963_v12  ;;  %v3955_v18 = vadd.f32 %v4566_v8, %v3954_v13 }
 0x8ce   :  { %v5101_v10 = vpop.f32.mrf.mxu1 }
 0x8cf   :  { %v4003_v20 = vadd.f32 %v5273_v19, %v3995_v17  ;;  %v3993_v25 = vmul.f32 %v5274_v24, %v3955_v18  ;;  %v3966_v63 = vadd.f32 %v5101_v10, %v4566_v8 }
 0x8d0   :  { %v3957_v53 = vpop.f32.mrf.mxu1 }
 0x8d1   :  { %4011 = vst.msk [vmem:[#allocation3 + $0x17] sm:$0xff] %vm859_vm14, %v4003_v20  ;;  %v4001_v27 = vadd.f32 %v3993_v25, %v6166_v40  ;;  %v3996_v30 = vmul.f32 %v5275_v29, %v3966_v63  ;;  %v3958_v23 = vadd.f32 %v4566_v8, %v3957_v53 }
 0x8d3   :  { %4009 = vst.msk [vmem:[#allocation3 + $0x7] sm:$0xff] %vm859_vm14, %v4001_v27  ;;  %v4004_v31 = vadd.f32 %v3996_v30, %v6194_v59  ;;  %v3994_v35 = vmul.f32 %v5276_v26, %v3958_v23 }
 0x8d5   :  { %4012 = vst.msk [vmem:[#allocation3 + $0x1f] sm:$0xff] %vm859_vm14, %v4004_v31  ;;  %v4002_v36 = vadd.f32 %v3994_v35, %v6190_v56 }
 0x8d7   :  { %4010 = vst.msk [vmem:[#allocation3 + $0xf] sm:$0xff] %vm859_vm14, %v4002_v36 }
 0x8da   :  { %v4017_v40 = vld [vmem:[#allocation3] sm:$0xff] }
 0x8db   :  { %v4026_v15 = vmax.f32 %v4017_v40, 0.0 }
 0x8dc   :  { %v4020_v59 = vld [vmem:[#allocation3 + $0x18] sm:$0xff] }
 0x8dd   :  { %v4029_v32 = vmax.f32 %v4020_v59, 0.0 }
 0x8de   :  { %v4018_v37 = vld [vmem:[#allocation3 + $0x8] sm:$0xff]  ;;  %v4019_v38 = vld [vmem:[#allocation3 + $0x10] sm:$0xff] }
 0x8df   :  { %v4027_v21 = vmax.f32 %v4018_v37, 0.0  ;;  %v4028_v39 = vmax.f32 %v4019_v38, 0.0 }
 0x8e1   :  { %v4035_v33 = vpack.c.bf16 %v4027_v21, %v4026_v15  ;;  %v4036_v41 = vpack.c.bf16 %v4029_v32, %v4028_v39 }
 0x8e3   :  { %5111 = vmatmul.mubr.msk.bf16.vlgmr.msra.gmra.mxu0 %vm859_vm14, %v4035_v33 }
 0x8e4   :  { %5114 = vmatprep.mubr.msk.bf16.mxu0 %vm5285_vm9, %v5279_v9 }
 0x8eb   :  { %5115 = vmatmul.mubr.msk.bf16.gmra.mxu0 %vm859_vm14, %v4036_v41 }
 0x8ec   :  { %5118 = vmatprep.mubr.msk.bf16.mxu0 %vm5285_vm9, %v5279_v9 }
 0x8ed   :  { %v5104_v56 = vpop.f32.mrf.mxu1 }
 0x8ee   :  { %v3979_v43 = vadd.f32 %v5104_v56, %v4566_v8 }
 0x8ef   :  { %v3970_v46 = vpop.f32.mrf.mxu1 }
 0x8f0   :  { %v3999_v49 = vmul.f32 %v5277_v48, %v3979_v43  ;;  %v3971_v50 = vadd.f32 %v4566_v8, %v3970_v46 }
 0x8f1   :  { %v5105_v28 = vpop.f32.mrf.mxu1 }
 0x8f2   :  { %v4007_v52 = vadd.f32 %v3999_v49, %v6293_v42  ;;  %v3997_v54 = vmul.f32 %v6261_v22, %v3971_v50  ;;  %v3982_v47 = vadd.f32 %v5105_v28, %v4566_v8 }
 0x8f3   :  { %v3973_v55 = vpop.f32.mrf.mxu1 }
 0x8f4   :  { %4015 = vst.msk [vmem:[#allocation3 + $0x37] sm:$0xff] %vm859_vm14, %v4007_v52  ;;  %v4005_v57 = vadd.f32 %v3997_v54, %v6310_v58  ;;  %v4000_v61 = vmul.f32 %v5278_v14, %v3982_v47  ;;  %v3974_v45 = vadd.f32 %v4566_v8, %v3973_v55 }
 0x8f6   :  { %4013 = vst.msk [vmem:[#allocation3 + $0x27] sm:$0xff] %vm859_vm14, %v4005_v57  ;;  %v4008_v1 = vadd.f32 %v4000_v61, %v3992_v62  ;;  %v3998_v42 = vmul.f32 %v6278_v34, %v3974_v45 }
 0x8f8   :  { %4016 = vst.msk [vmem:[#allocation3 + $0x3f] sm:$0x3] %vm884_vm2, %v4008_v1  ;;  %v4006_v22 = vadd.f32 %v3998_v42, %v6312_v60 }
 0x8fa   :  { %4014 = vst.msk [vmem:[#allocation3 + $0x2f] sm:$0xff] %vm859_vm14, %v4006_v22 }
 0x8fd   :  { %v4021_v58 = vld [vmem:[#allocation3 + $0x20] sm:$0xff] }
 0x8fe   :  { %v4030_v5 = vmax.f32 %v4021_v58, 0.0 }
 0x8ff   :  { %v4025_v2 = vld [vmem:[#allocation3 + $0x40] sm:$0xff]  ;;  %v4024_v34 = vld [vmem:[#allocation3 + $0x38] sm:$0xff] }
 0x900   :  { %v4034_v44 = vmax.f32 %v4025_v2, 0.0  ;;  %v4033_v51 = vmax.f32 %v4024_v34, 0.0 }
 0x901   :  { %v4022_v3 = vld [vmem:[#allocation3 + $0x28] sm:$0xff]  ;;  %v4023_v0 = vld [vmem:[#allocation3 + $0x30] sm:$0xff] }
 0x902   :  { %v4039_v4 = vpack.c.bf16 %v4034_v44, %v4034_v44  ;;  %v4031_v6 = vmax.f32 %v4022_v3, 0.0  ;;  %v4032_v60 = vmax.f32 %v4023_v0, 0.0 }
 0x904   :  { %5127 = vmatmul.mubr.msk.bf16.vlgmr.msra.gmra.mxu1 %vm859_vm14, %v4039_v4  ;;  %v4037_v7 = vpack.c.bf16 %v4031_v6, %v4030_v5  ;;  %v4038_v8 = vpack.c.bf16 %v4033_v51, %v4032_v60 }
 0x906   :  { %5119 = vmatmul.mubr.msk.bf16.gmra.mxu0 %vm859_vm14, %v4037_v7 }
 0x907   :  { %5122 = vmatprep.mubr.msk.bf16.mxu0 %vm5285_vm9, %v5279_v9 }
 0x90e   :  { %5123 = vmatmul.mubr.msk.bf16.gmra.mxu0 %vm859_vm14, %v4038_v8 }
 0x9a3   :  { %v4112_v12 = vpop.f32.mrf.mxu0 }
 0x9a4   :  { %v4113_v13 = vadd.f32 %v4572_v11, %v4112_v12 }
 0x9a5   :  { %v5112_v16 = vpop.f32.mrf.mxu0 }
 0x9a6   :  { %4151 = vst.msk [vmem:[%s6527_s18] sm:$0xff] %vm4150_vm0, %v4113_v13 }
 0x9a7   :  { %v4115_v9 = vpop.f32.mrf.mxu0 }
 0x9a8   :  { %v4116_v17 = vadd.f32 %v4572_v11, %v4115_v9 }
 0x9a9   :  { %v5113_v18 = vpop.f32.mrf.mxu0 }
 0x9aa   :  { %4152 = vst.msk [vmem:[%s6527_s18 + $0x8] sm:$0xff] %vm4150_vm0, %v4116_v17 }
 0x9ab   :  { %v4120_v10 = vpop.f32.mrf.mxu0 }
 0x9ac   :  { %v4121_v19 = vadd.f32 %v4572_v11, %v4120_v10 }
 0x9ad   :  { %v5116_v20 = vpop.f32.mrf.mxu0 }
 0x9ae   :  { %4153 = vst.msk [vmem:[%s6527_s18 + $0x10] sm:$0xff] %vm4150_vm0, %v4121_v19 }
 0x9af   :  { %v4123_v24 = vpop.f32.mrf.mxu0 }
 0x9b0   :  { %v4124_v25 = vadd.f32 %v4572_v11, %v4123_v24 }
 0x9b1   :  { %v5117_v63 = vpop.f32.mrf.mxu0 }
 0x9b2   :  { %4154 = vst.msk [vmem:[%s6527_s18 + $0x18] sm:$0xff] %vm4150_vm0, %v4124_v25 }
 0x9c4   :  { %v4144_v53 = vpop.f32.mrf.mxu1 }
 0x9c5   :  { %v4145_v27 = vadd.f32 %v4572_v11, %v4144_v53 }
 0x9c6   :  { %v4128_v29 = vpop.f32.mrf.mxu0  ;;  %v5128_v30 = vpop.f32.mrf.mxu1 }
 0x9c7   :  { %4159 = vst.msk [vmem:[%s6527_s18 + $0x40] sm:$0xff] %vm4150_vm0, %v4145_v27  ;;  %v4129_v23 = vadd.f32 %v4572_v11, %v4128_v29 }
 0x9c8   :  { %v5120_v31 = vpop.f32.mrf.mxu0  ;;  %v4147_v26 = vpop.f32.mrf.mxu1 }
 0x9c9   :  { %4155 = vst.msk [vmem:[%s6527_s18 + $0x20] sm:$0xff] %vm4150_vm0, %v4129_v23 }
 0x9ca   :  { %v4131_v35 = vpop.f32.mrf.mxu0  ;;  %v5129_v36 = vpop.f32.mrf.mxu1 }
 0x9cb   :  { %v4132_v40 = vadd.f32 %v4572_v11, %v4131_v35 }
 0x9cc   :  { %v5121_v37 = vpop.f32.mrf.mxu0 }
 0x9cd   :  { %4156 = vst.msk [vmem:[%s6527_s18 + $0x28] sm:$0xff] %vm4150_vm0, %v4132_v40 }
 0x9ce   :  { %v4136_v15 = vpop.f32.mrf.mxu0 }
 0x9cf   :  { %v4137_v21 = vadd.f32 %v4572_v11, %v4136_v15 }
 0x9d0   :  { %v5124_v33 = vpop.f32.mrf.mxu0 }
 0x9d1   :  { %4157 = vst.msk [vmem:[%s6527_s18 + $0x30] sm:$0xff] %vm4150_vm0, %v4137_v21 }
 0x9d2   :  { %v4139_v38 = vpop.f32.mrf.mxu0 }
 0x9d3   :  { %v4140_v59 = vadd.f32 %v4572_v11, %v4139_v38 }
 0x9d4   :  { %v5125_v39 = vpop.f32.mrf.mxu0 }
 0x9d5   :  { %4158 = vst.msk [vmem:[%s6527_s18 + $0x38] sm:$0xff] %vm4150_vm0, %v4140_v59 }

</bundles_post_ra>
